<compile_context>
chip_gen: v5e
topology: v5e:2x2
jax: 0.10.0
libtpu: 0.0.40
codegen_flags: <defaults>
</compile_context>

<pallas_src>
import functools

import jax
import jax.numpy as jnp
from jax.experimental import pallas as pl
from jax.experimental.pallas import tpu as pltpu


# ----------------------------------------------------------------------------
# Kernel 1: fused SepConv2d (depthwise 3x3 + folded BN + pointwise 1x1) for
#           q, k and v.  Grid = (batch,); the 3 projections are unrolled so
#           the padded image is loaded once and the weights stay resident.
# ----------------------------------------------------------------------------

def _sepconv_qkv_kernel(xp_ref, dww_ref, dwb_ref, pww_ref, pwb_ref,
                        q_ref, k_ref, v_ref, *, H, W):
    xp = xp_ref[0]                                   # (H+2, W+2, C) f32, zero-padded
    C = xp.shape[-1]

    # One sublane-offset slice per kernel column; the row offset (dh) below is
    # taken on the untiled leading axis (cheap, no relayout).
    xs = [xp[:, dw:dw + W, :] for dw in range(3)]    # 3 x (H+2, W, C)

    outs = (q_ref, k_ref, v_ref)
    for j in range(3):                               # q, k, v
        acc = jnp.zeros((H, W, C), jnp.float32)
        for t in range(9):                           # 3x3 depthwise = 9 VPU MACs
            dh, dw = divmod(t, 3)
            acc = acc + xs[dw][dh:dh + H] * dww_ref[j, t]
        acc = acc + dwb_ref[j, 0]                    # depthwise bias + BN shift (folded)

        a = acc.reshape(H * W, C).astype(jnp.bfloat16)
        y = jnp.dot(a, pww_ref[j], preferred_element_type=jnp.float32) + pwb_ref[j, 0]
        outs[j][0] = y.astype(outs[j].dtype)         # lane-dense (H*W, inner) bf16


def sepconv_qkv_pallas(xim, qkv_p):
    """xim: (B, H, W, C) float32 -> (q, k, v), each (B, H*W, inner) bfloat16."""
    b, H, W, C = xim.shape
    inner = qkv_p['pww'].shape[-1]
    xpad = jnp.pad(xim.astype(jnp.float32), ((0, 0), (1, 1), (1, 1), (0, 0)))
    Hp, Wp = H + 2, W + 2

    kern = functools.partial(_sepconv_qkv_kernel, H=H, W=W)
    out_shape = tuple(jax.ShapeDtypeStruct((b, H * W, inner), jnp.bfloat16)
                      for _ in range(3))
    return pl.pallas_call(
        kern,
        out_shape=out_shape,
        grid=(b,),
        in_specs=[
            pl.BlockSpec((1, Hp, Wp, C), lambda i: (i, 0, 0, 0)),
            pl.BlockSpec((3, 9, C), lambda i: (0, 0, 0)),       # weights: constant maps
            pl.BlockSpec((3, 1, C), lambda i: (0, 0, 0)),
            pl.BlockSpec((3, C, inner), lambda i: (0, 0, 0)),
            pl.BlockSpec((3, 1, inner), lambda i: (0, 0, 0)),
        ],
        out_specs=tuple(pl.BlockSpec((1, H * W, inner), lambda i: (i, 0, 0))
                        for _ in range(3)),
        compiler_params=pltpu.CompilerParams(dimension_semantics=("parallel",)),
    )(xpad, qkv_p['dww'], qkv_p['dwb'], qkv_p['pww'], qkv_p['pwb'])


# ----------------------------------------------------------------------------
# Kernel 2: multi-head softmax attention with the to_out Linear fused as an
#           MXU epilogue.  One batch element per grid step; cls token (if any)
#           is concatenated in-VMEM; heads handled by a static lane-slice loop
#           so no HBM-level head transposes exist anywhere.
# ----------------------------------------------------------------------------

def _attn_proj_kernel(*refs, heads, dim_head, scale, has_cls, project_out):
    idx = 0
    q_ref = refs[idx]; idx += 1
    k_ref = refs[idx]; idx += 1
    v_ref = refs[idx]; idx += 1
    cls_ref = None
    wo_ref = bo_ref = None
    if has_cls:
        cls_ref = refs[idx]; idx += 1
    if project_out:
        wo_ref = refs[idx]; idx += 1
        bo_ref = refs[idx]; idx += 1
    o_ref = refs[idx]

    q2 = q_ref[0]                                    # (n, h*d) bf16 (scale pre-folded)
    k2 = k_ref[0]
    v2 = v_ref[0]

    if has_cls:
        c = cls_ref[0]                               # (1, h*d) f32
        cb = c.astype(q2.dtype)
        # Projected q already carries the softmax scale (folded into to_q);
        # the unprojected cls row of q gets it here.
        q2 = jnp.concatenate([(c * scale).astype(q2.dtype), q2], axis=0)
        k2 = jnp.concatenate([cb, k2], axis=0)
        v2 = jnp.concatenate([cb, v2], axis=0)

    acc = None
    parts = []
    for h in range(heads):                           # static unroll over heads
        sl = slice(h * dim_head, (h + 1) * dim_head)
        qh, kh, vh = q2[:, sl], k2[:, sl], v2[:, sl]

        s = jax.lax.dot_general(qh, kh, (((1,), (1,)), ((), ())),
                                preferred_element_type=jnp.float32)   # (n, n)
        m = jnp.max(s, axis=-1, keepdims=True)
        p = jnp.exp(s - m)
        denom = jnp.sum(p, axis=-1, keepdims=True)
        p = (p * pl.reciprocal(denom, approx=True)).astype(v2.dtype)
        oh = jnp.dot(p, vh, preferred_element_type=jnp.float32)        # (n, d)

        if project_out:
            contrib = jnp.dot(oh.astype(jnp.bfloat16), wo_ref[h],
                              preferred_element_type=jnp.float32)       # (n, dim)
            acc = contrib if acc is None else acc + contrib
        else:
            parts.append(oh)

    if project_out:
        out = acc + bo_ref[...]
    else:
        out = jnp.concatenate(parts, axis=-1)        # (n, h*d)
    o_ref[0] = out.astype(o_ref.dtype)


def attention_out_pallas(q, k, v, *, cls, wo, bo, heads, dim_head, scale):
    """q, k, v: (B, n, inner) bf16; cls: (B, 1, inner) f32 or None;
    wo: (heads, dim_head, dim) bf16 or None; bo: (1, dim) f32 or None.
    Returns (B, n(+1), dim or inner) float32."""
    b, n, inner = q.shape
    has_cls = cls is not None
    project_out = wo is not None
    nq = n + (1 if has_cls else 0)
    out_dim = wo.shape[-1] if project_out else inner

    kern = functools.partial(_attn_proj_kernel, heads=heads, dim_head=dim_head,
                             scale=scale, has_cls=has_cls, project_out=project_out)

    in_specs = [pl.BlockSpec((1, n, inner), lambda i: (i, 0, 0)) for _ in range(3)]
    args = [q, k, v]
    if has_cls:
        in_specs.append(pl.BlockSpec((1, 1, inner), lambda i: (i, 0, 0)))
        args.append(cls)
    if project_out:
        in_specs.append(pl.BlockSpec((heads, dim_head, out_dim), lambda i: (0, 0, 0)))
        in_specs.append(pl.BlockSpec((1, out_dim), lambda i: (0, 0)))
        args.extend([wo, bo])

    return pl.pallas_call(
        kern,
        out_shape=jax.ShapeDtypeStruct((b, nq, out_dim), jnp.float32),
        grid=(b,),
        in_specs=in_specs,
        out_specs=pl.BlockSpec((1, nq, out_dim), lambda i: (i, 0, 0)),
        compiler_params=pltpu.CompilerParams(dimension_semantics=("parallel",)),
    )(*args)


# ----------------------------------------------------------------------------
# ConvAttention forward (matches the PyTorch module's eval-mode semantics).
# ----------------------------------------------------------------------------

def conv_attention_forward(x, params, *, heads, dim_head, img_h, img_w,
                           last_stage=False):
    b, n, dim = x.shape

    cls_tok = None
    if last_stage:
        cls_tok = x[:, :1, :]                        # (b, 1, dim); dim == heads*dim_head
        x = x[:, 1:, :]

    # 'b (l w) c -> b l w c'  (channels-last throughout -> no NCHW transposes)
    xim = x.reshape(b, img_h, img_w, dim)

    q, k, v = sepconv_qkv_pallas(xim, params['qkv'])  # each (b, l*w, inner) bf16

    out = attention_out_pallas(
        q, k, v, cls=cls_tok,
        wo=params.get('out_w'), bo=params.get('out_b'),
        heads=heads, dim_head=dim_head, scale=dim_head ** (-0.5))
    return out


# ----------------------------------------------------------------------------
# Parameter construction (synthetic, deterministic) and one-time weight prep
# (BN folding, scale folding into to_q, to_out pre-transpose / reshape / cast).
# ----------------------------------------------------------------------------

class KeyGen:
    def __init__(self, key):
        self._key = key

    def __call__(self):
        self._key, sub = jax.random.split(self._key)
        return sub


def init_conv_attention_params(key, dim, heads, dim_head, kernel_size=3):
    inner = heads * dim_head
    project_out = not (heads == 1 and dim_head == dim)
    kg = KeyGen(key)

    def sepconv():
        return dict(
            dw_w=jax.random.normal(kg(), (dim, 1, kernel_size, kernel_size), jnp.float32) * 0.1,
            dw_b=jax.random.normal(kg(), (dim,), jnp.float32) * 0.02,
            bn=dict(gamma=1.0 + 0.1 * jax.random.normal(kg(), (dim,), jnp.float32),
                    beta=0.02 * jax.random.normal(kg(), (dim,), jnp.float32),
                    mean=0.02 * jax.random.normal(kg(), (dim,), jnp.float32),
                    var=1.0 + 0.1 * jnp.abs(jax.random.normal(kg(), (dim,), jnp.float32))),
            pw_w=jax.random.normal(kg(), (inner, dim, 1, 1), jnp.float32) * 0.1,
            pw_b=jax.random.normal(kg(), (inner,), jnp.float32) * 0.02,
        )

    p = dict(to_q=sepconv(), to_k=sepconv(), to_v=sepconv())
    if project_out:
        p['to_out'] = dict(w=jax.random.normal(kg(), (dim, inner), jnp.float32) * 0.1,
                           b=jax.random.normal(kg(), (dim,), jnp.float32) * 0.02)
    return p


def prepare_conv_attention_params(raw, heads, dim_head, eps=1e-5):
    """Fold eval-mode BN into the depthwise conv, fold the softmax scale into
    to_q's pointwise projection, pack q/k/v weights, and pre-reshape/pre-cast
    the to_out Linear for the fused attention epilogue."""
    scale = dim_head ** (-0.5)
    dww, dwb, pww, pwb = [], [], [], []
    for name in ('to_q', 'to_k', 'to_v'):
        sp = raw[name]
        bn = sp['bn']
        s = bn['gamma'] * jax.lax.rsqrt(bn['var'] + eps)          # (dim,)
        shift = bn['beta'] - bn['mean'] * s
        w = sp['dw_w'][:, 0] * s[:, None, None]                   # (dim, 3, 3), BN scale folded
        dww.append(w.transpose(1, 2, 0).reshape(9, -1))           # (9, dim): [kh*3+kw, c]
        dwb.append((sp['dw_b'] * s + shift)[None, :])             # (1, dim)
        pw = sp['pw_w'][:, :, 0, 0].T                             # (dim, inner)
        pb = sp['pw_b']                                           # (inner,)
        if name == 'to_q':                                        # fold softmax scale into q
            pw = pw * scale
            pb = pb * scale
        pww.append(pw)
        pwb.append(pb[None, :])

    params = dict(qkv=dict(dww=jnp.stack(dww).astype(jnp.float32),
                           dwb=jnp.stack(dwb).astype(jnp.float32),
                           pww=jnp.stack(pww).astype(jnp.bfloat16),
                           pwb=jnp.stack(pwb).astype(jnp.float32)))

    to_out = raw.get('to_out')
    if to_out is not None:
        dim_out = to_out['w'].shape[0]
        # Linear: y = x @ w.T + b ; pre-transpose + reshape to (heads, dh, dim).
        params['out_w'] = (to_out['w'].T.reshape(heads, dim_head, dim_out)
                           .astype(jnp.bfloat16))
        params['out_b'] = to_out['b'].reshape(1, dim_out).astype(jnp.float32)
    return params


# ---------------------------------- main ------------------------------------

if __name__ == "__main__":
    key = jax.random.PRNGKey(0)
    k1, k2, k3, k4 = jax.random.split(key, 4)

    B, H, W = 2, 8, 8

    # ---- Config A: intermediate stage (no cls token), lane-dense inner=128 ----
    dim_a, heads_a, dh_a = 32, 4, 32
    raw_a = init_conv_attention_params(k1, dim_a, heads_a, dh_a)
    params_a = prepare_conv_attention_params(raw_a, heads_a, dh_a)
    x_a = jax.random.normal(k2, (B, H * W, dim_a), jnp.float32)

    fwd_a = jax.jit(functools.partial(conv_attention_forward,
                                      heads=heads_a, dim_head=dh_a,
                                      img_h=H, img_w=W, last_stage=False))
    out_a = fwd_a(x_a, params_a)

    # ---- Config B: last stage (with cls token), dim == inner ----
    dim_b, heads_b, dh_b = 64, 4, 16
    raw_b = init_conv_attention_params(k3, dim_b, heads_b, dh_b)
    params_b = prepare_conv_attention_params(raw_b, heads_b, dh_b)
    x_b = jax.random.normal(k4, (B, H * W + 1, dim_b), jnp.float32)

    fwd_b = jax.jit(functools.partial(conv_attention_forward,
                                      heads=heads_b, dim_head=dh_b,
                                      img_h=H, img_w=W, last_stage=True))
    out_b = fwd_b(x_b, params_b)

    jax.block_until_ready((out_a, out_b))

    assert out_a.shape == (B, H * W, dim_a)
    assert out_b.shape == (B, H * W + 1, dim_b)
    assert jnp.all(jnp.isfinite(out_a)) and jnp.all(jnp.isfinite(out_b))
    print("KERNEL_OK")
</pallas_src>

<mosaic_0001>
module attributes {stable_mosaic.version = 11 : i64} {
  func.func @_sepconv_qkv_kernel(%arg0: i32, %arg1: memref<1x10x10x32xf32, #tpu.memory_space<vmem>>, %arg2: memref<3x9x32xf32, #tpu.memory_space<vmem>>, %arg3: memref<3x1x32xf32, #tpu.memory_space<vmem>>, %arg4: memref<3x32x128xbf16, #tpu.memory_space<vmem>>, %arg5: memref<3x1x128xf32, #tpu.memory_space<vmem>>, %arg6: memref<1x64x128xbf16, #tpu.memory_space<vmem>>, %arg7: memref<1x64x128xbf16, #tpu.memory_space<vmem>>, %arg8: memref<1x64x128xbf16, #tpu.memory_space<vmem>>) attributes {dimension_semantics = [#tpu.dimension_semantics<parallel>], iteration_bounds = array<i64: 2>, scalar_prefetch = 0 : i64, scratch_operands = 0 : i64, tpu.core_type = #tpu.core_type<tc>, window_params = [{transform_indices = @transform_0, window_bounds = array<i64: 1, 10, 10, 32>}, {pipeline_mode = #tpu.pipeline_mode<synchronous>, transform_indices = @transform_1, window_bounds = array<i64: 3, 9, 32>}, {pipeline_mode = #tpu.pipeline_mode<synchronous>, transform_indices = @transform_2, window_bounds = array<i64: 3, 1, 32>}, {pipeline_mode = #tpu.pipeline_mode<synchronous>, transform_indices = @transform_3, window_bounds = array<i64: 3, 32, 128>}, {pipeline_mode = #tpu.pipeline_mode<synchronous>, transform_indices = @transform_4, window_bounds = array<i64: 3, 1, 128>}, {transform_indices = @transform_5, window_bounds = array<i64: 1, 64, 128>}, {transform_indices = @transform_6, window_bounds = array<i64: 1, 64, 128>}, {transform_indices = @transform_7, window_bounds = array<i64: 1, 64, 128>}]} {
    %c0 = arith.constant 0 : index
    %c0_0 = arith.constant 0 : index
    %c0_1 = arith.constant 0 : index
    %c0_2 = arith.constant 0 : index
    %0 = vector.load %arg1[%c0, %c0_0, %c0_1, %c0_2] : memref<1x10x10x32xf32, #tpu.memory_space<vmem>>, vector<1x10x10x32xf32>
    %1 = vector.shape_cast %0 : vector<1x10x10x32xf32> to vector<10x10x32xf32>
    %2 = vector.extract_strided_slice %1 {offsets = [0, 0, 0], sizes = [10, 8, 32], strides = [1, 1, 1]} : vector<10x10x32xf32> to vector<10x8x32xf32>
    %3 = vector.extract_strided_slice %1 {offsets = [0, 1, 0], sizes = [10, 8, 32], strides = [1, 1, 1]} : vector<10x10x32xf32> to vector<10x8x32xf32>
    %4 = vector.extract_strided_slice %1 {offsets = [0, 2, 0], sizes = [10, 8, 32], strides = [1, 1, 1]} : vector<10x10x32xf32> to vector<10x8x32xf32>
    %cst = arith.constant 0.000000e+00 : f32
    %5 = vector.broadcast %cst : f32 to vector<8x8x32xf32>
    %6 = vector.extract_strided_slice %2 {offsets = [0, 0, 0], sizes = [8, 8, 32], strides = [1, 1, 1]} : vector<10x8x32xf32> to vector<8x8x32xf32>
    %c0_3 = arith.constant 0 : index
    %c0_4 = arith.constant 0 : index
    %c0_5 = arith.constant 0 : index
    %7 = vector.load %arg2[%c0_3, %c0_4, %c0_5] : memref<3x9x32xf32, #tpu.memory_space<vmem>>, vector<1x1x32xf32>
    %8 = vector.shape_cast %7 : vector<1x1x32xf32> to vector<32xf32>
    %9 = vector.shape_cast %8 : vector<32xf32> to vector<1x1x32xf32>
    %10 = vector.broadcast %9 : vector<1x1x32xf32> to vector<8x8x32xf32>
    %11 = arith.mulf %6, %10 : vector<8x8x32xf32>
    %12 = arith.addf %5, %11 : vector<8x8x32xf32>
    %13 = vector.extract_strided_slice %3 {offsets = [0, 0, 0], sizes = [8, 8, 32], strides = [1, 1, 1]} : vector<10x8x32xf32> to vector<8x8x32xf32>
    %c0_6 = arith.constant 0 : index
    %c1 = arith.constant 1 : index
    %c0_7 = arith.constant 0 : index
    %14 = vector.load %arg2[%c0_6, %c1, %c0_7] : memref<3x9x32xf32, #tpu.memory_space<vmem>>, vector<1x1x32xf32>
    %15 = vector.shape_cast %14 : vector<1x1x32xf32> to vector<32xf32>
    %16 = vector.shape_cast %15 : vector<32xf32> to vector<1x1x32xf32>
    %17 = vector.broadcast %16 : vector<1x1x32xf32> to vector<8x8x32xf32>
    %18 = arith.mulf %13, %17 : vector<8x8x32xf32>
    %19 = arith.addf %12, %18 : vector<8x8x32xf32>
    %20 = vector.extract_strided_slice %4 {offsets = [0, 0, 0], sizes = [8, 8, 32], strides = [1, 1, 1]} : vector<10x8x32xf32> to vector<8x8x32xf32>
    %c0_8 = arith.constant 0 : index
    %c2 = arith.constant 2 : index
    %c0_9 = arith.constant 0 : index
    %21 = vector.load %arg2[%c0_8, %c2, %c0_9] : memref<3x9x32xf32, #tpu.memory_space<vmem>>, vector<1x1x32xf32>
    %22 = vector.shape_cast %21 : vector<1x1x32xf32> to vector<32xf32>
    %23 = vector.shape_cast %22 : vector<32xf32> to vector<1x1x32xf32>
    %24 = vector.broadcast %23 : vector<1x1x32xf32> to vector<8x8x32xf32>
    %25 = arith.mulf %20, %24 : vector<8x8x32xf32>
    %26 = arith.addf %19, %25 : vector<8x8x32xf32>
    %27 = vector.extract_strided_slice %2 {offsets = [1, 0, 0], sizes = [8, 8, 32], strides = [1, 1, 1]} : vector<10x8x32xf32> to vector<8x8x32xf32>
    %c0_10 = arith.constant 0 : index
    %c3 = arith.constant 3 : index
    %c0_11 = arith.constant 0 : index
    %28 = vector.load %arg2[%c0_10, %c3, %c0_11] : memref<3x9x32xf32, #tpu.memory_space<vmem>>, vector<1x1x32xf32>
    %29 = vector.shape_cast %28 : vector<1x1x32xf32> to vector<32xf32>
    %30 = vector.shape_cast %29 : vector<32xf32> to vector<1x1x32xf32>
    %31 = vector.broadcast %30 : vector<1x1x32xf32> to vector<8x8x32xf32>
    %32 = arith.mulf %27, %31 : vector<8x8x32xf32>
    %33 = arith.addf %26, %32 : vector<8x8x32xf32>
    %34 = vector.extract_strided_slice %3 {offsets = [1, 0, 0], sizes = [8, 8, 32], strides = [1, 1, 1]} : vector<10x8x32xf32> to vector<8x8x32xf32>
    %c0_12 = arith.constant 0 : index
    %c4 = arith.constant 4 : index
    %c0_13 = arith.constant 0 : index
    %35 = vector.load %arg2[%c0_12, %c4, %c0_13] : memref<3x9x32xf32, #tpu.memory_space<vmem>>, vector<1x1x32xf32>
    %36 = vector.shape_cast %35 : vector<1x1x32xf32> to vector<32xf32>
    %37 = vector.shape_cast %36 : vector<32xf32> to vector<1x1x32xf32>
    %38 = vector.broadcast %37 : vector<1x1x32xf32> to vector<8x8x32xf32>
    %39 = arith.mulf %34, %38 : vector<8x8x32xf32>
    %40 = arith.addf %33, %39 : vector<8x8x32xf32>
    %41 = vector.extract_strided_slice %4 {offsets = [1, 0, 0], sizes = [8, 8, 32], strides = [1, 1, 1]} : vector<10x8x32xf32> to vector<8x8x32xf32>
    %c0_14 = arith.constant 0 : index
    %c5 = arith.constant 5 : index
    %c0_15 = arith.constant 0 : index
    %42 = vector.load %arg2[%c0_14, %c5, %c0_15] : memref<3x9x32xf32, #tpu.memory_space<vmem>>, vector<1x1x32xf32>
    %43 = vector.shape_cast %42 : vector<1x1x32xf32> to vector<32xf32>
    %44 = vector.shape_cast %43 : vector<32xf32> to vector<1x1x32xf32>
    %45 = vector.broadcast %44 : vector<1x1x32xf32> to vector<8x8x32xf32>
    %46 = arith.mulf %41, %45 : vector<8x8x32xf32>
    %47 = arith.addf %40, %46 : vector<8x8x32xf32>
    %48 = vector.extract_strided_slice %2 {offsets = [2, 0, 0], sizes = [8, 8, 32], strides = [1, 1, 1]} : vector<10x8x32xf32> to vector<8x8x32xf32>
    %c0_16 = arith.constant 0 : index
    %c6 = arith.constant 6 : index
    %c0_17 = arith.constant 0 : index
    %49 = vector.load %arg2[%c0_16, %c6, %c0_17] : memref<3x9x32xf32, #tpu.memory_space<vmem>>, vector<1x1x32xf32>
    %50 = vector.shape_cast %49 : vector<1x1x32xf32> to vector<32xf32>
    %51 = vector.shape_cast %50 : vector<32xf32> to vector<1x1x32xf32>
    %52 = vector.broadcast %51 : vector<1x1x32xf32> to vector<8x8x32xf32>
    %53 = arith.mulf %48, %52 : vector<8x8x32xf32>
    %54 = arith.addf %47, %53 : vector<8x8x32xf32>
    %55 = vector.extract_strided_slice %3 {offsets = [2, 0, 0], sizes = [8, 8, 32], strides = [1, 1, 1]} : vector<10x8x32xf32> to vector<8x8x32xf32>
    %c0_18 = arith.constant 0 : index
    %c7 = arith.constant 7 : index
    %c0_19 = arith.constant 0 : index
    %56 = vector.load %arg2[%c0_18, %c7, %c0_19] : memref<3x9x32xf32, #tpu.memory_space<vmem>>, vector<1x1x32xf32>
    %57 = vector.shape_cast %56 : vector<1x1x32xf32> to vector<32xf32>
    %58 = vector.shape_cast %57 : vector<32xf32> to vector<1x1x32xf32>
    %59 = vector.broadcast %58 : vector<1x1x32xf32> to vector<8x8x32xf32>
    %60 = arith.mulf %55, %59 : vector<8x8x32xf32>
    %61 = arith.addf %54, %60 : vector<8x8x32xf32>
    %62 = vector.extract_strided_slice %4 {offsets = [2, 0, 0], sizes = [8, 8, 32], strides = [1, 1, 1]} : vector<10x8x32xf32> to vector<8x8x32xf32>
    %c0_20 = arith.constant 0 : index
    %c8 = arith.constant 8 : index
    %c0_21 = arith.constant 0 : index
    %63 = vector.load %arg2[%c0_20, %c8, %c0_21] : memref<3x9x32xf32, #tpu.memory_space<vmem>>, vector<1x1x32xf32>
    %64 = vector.shape_cast %63 : vector<1x1x32xf32> to vector<32xf32>
    %65 = vector.shape_cast %64 : vector<32xf32> to vector<1x1x32xf32>
    %66 = vector.broadcast %65 : vector<1x1x32xf32> to vector<8x8x32xf32>
    %67 = arith.mulf %62, %66 : vector<8x8x32xf32>
    %68 = arith.addf %61, %67 : vector<8x8x32xf32>
    %c0_22 = arith.constant 0 : index
    %c0_23 = arith.constant 0 : index
    %c0_24 = arith.constant 0 : index
    %69 = vector.load %arg3[%c0_22, %c0_23, %c0_24] : memref<3x1x32xf32, #tpu.memory_space<vmem>>, vector<1x1x32xf32>
    %70 = vector.shape_cast %69 : vector<1x1x32xf32> to vector<32xf32>
    %71 = vector.shape_cast %70 : vector<32xf32> to vector<1x1x32xf32>
    %72 = vector.broadcast %71 : vector<1x1x32xf32> to vector<8x8x32xf32>
    %73 = arith.addf %68, %72 : vector<8x8x32xf32>
    %74 = vector.shape_cast %73 : vector<8x8x32xf32> to vector<64x32xf32>
    %75 = arith.truncf %74 : vector<64x32xf32> to vector<64x32xbf16>
    %c0_25 = arith.constant 0 : index
    %c0_26 = arith.constant 0 : index
    %c0_27 = arith.constant 0 : index
    %76 = vector.load %arg4[%c0_25, %c0_26, %c0_27] : memref<3x32x128xbf16, #tpu.memory_space<vmem>>, vector<1x32x128xbf16>
    %77 = vector.shape_cast %76 : vector<1x32x128xbf16> to vector<32x128xbf16>
    %cst_28 = arith.constant dense<0.000000e+00> : vector<64x128xf32>
    %78 = tpu.matmul %75, %77, %cst_28 {dimension_numbers = #tpu.dot_dimension_numbers<[1], [0], [0], [1], [0, 0, 1, 1], [], []>} : vector<64x32xbf16>, vector<32x128xbf16>, vector<64x128xf32> -> vector<64x128xf32>
    %c0_29 = arith.constant 0 : index
    %c0_30 = arith.constant 0 : index
    %c0_31 = arith.constant 0 : index
    %79 = vector.load %arg5[%c0_29, %c0_30, %c0_31] : memref<3x1x128xf32, #tpu.memory_space<vmem>>, vector<1x1x128xf32>
    %80 = vector.shape_cast %79 : vector<1x1x128xf32> to vector<128xf32>
    %81 = vector.shape_cast %80 : vector<128xf32> to vector<1x128xf32>
    %82 = vector.broadcast %81 : vector<1x128xf32> to vector<64x128xf32>
    %83 = arith.addf %78, %82 : vector<64x128xf32>
    %84 = arith.truncf %83 : vector<64x128xf32> to vector<64x128xbf16>
    %c0_32 = arith.constant 0 : index
    %c0_33 = arith.constant 0 : index
    %c0_34 = arith.constant 0 : index
    %85 = vector.load %arg6[%c0_32, %c0_33, %c0_34] : memref<1x64x128xbf16, #tpu.memory_space<vmem>>, vector<1x64x128xbf16>
    %86 = vector.shape_cast %85 : vector<1x64x128xbf16> to vector<64x128xbf16>
    %87 = vector.shape_cast %84 : vector<64x128xbf16> to vector<1x64x128xbf16>
    tpu.vector_store %arg6[%c0_32, %c0_33, %c0_34], %87 {strides = array<i32>} : memref<1x64x128xbf16, #tpu.memory_space<vmem>>, vector<1x64x128xbf16>,
    %cst_35 = arith.constant 0.000000e+00 : f32
    %88 = vector.broadcast %cst_35 : f32 to vector<8x8x32xf32>
    %89 = vector.extract_strided_slice %2 {offsets = [0, 0, 0], sizes = [8, 8, 32], strides = [1, 1, 1]} : vector<10x8x32xf32> to vector<8x8x32xf32>
    %c1_36 = arith.constant 1 : index
    %c0_37 = arith.constant 0 : index
    %c0_38 = arith.constant 0 : index
    %90 = vector.load %arg2[%c1_36, %c0_37, %c0_38] : memref<3x9x32xf32, #tpu.memory_space<vmem>>, vector<1x1x32xf32>
    %91 = vector.shape_cast %90 : vector<1x1x32xf32> to vector<32xf32>
    %92 = vector.shape_cast %91 : vector<32xf32> to vector<1x1x32xf32>
    %93 = vector.broadcast %92 : vector<1x1x32xf32> to vector<8x8x32xf32>
    %94 = arith.mulf %89, %93 : vector<8x8x32xf32>
    %95 = arith.addf %88, %94 : vector<8x8x32xf32>
    %96 = vector.extract_strided_slice %3 {offsets = [0, 0, 0], sizes = [8, 8, 32], strides = [1, 1, 1]} : vector<10x8x32xf32> to vector<8x8x32xf32>
    %c1_39 = arith.constant 1 : index
    %c1_40 = arith.constant 1 : index
    %c0_41 = arith.constant 0 : index
    %97 = vector.load %arg2[%c1_39, %c1_40, %c0_41] : memref<3x9x32xf32, #tpu.memory_space<vmem>>, vector<1x1x32xf32>
    %98 = vector.shape_cast %97 : vector<1x1x32xf32> to vector<32xf32>
    %99 = vector.shape_cast %98 : vector<32xf32> to vector<1x1x32xf32>
    %100 = vector.broadcast %99 : vector<1x1x32xf32> to vector<8x8x32xf32>
    %101 = arith.mulf %96, %100 : vector<8x8x32xf32>
    %102 = arith.addf %95, %101 : vector<8x8x32xf32>
    %103 = vector.extract_strided_slice %4 {offsets = [0, 0, 0], sizes = [8, 8, 32], strides = [1, 1, 1]} : vector<10x8x32xf32> to vector<8x8x32xf32>
    %c1_42 = arith.constant 1 : index
    %c2_43 = arith.constant 2 : index
    %c0_44 = arith.constant 0 : index
    %104 = vector.load %arg2[%c1_42, %c2_43, %c0_44] : memref<3x9x32xf32, #tpu.memory_space<vmem>>, vector<1x1x32xf32>
    %105 = vector.shape_cast %104 : vector<1x1x32xf32> to vector<32xf32>
    %106 = vector.shape_cast %105 : vector<32xf32> to vector<1x1x32xf32>
    %107 = vector.broadcast %106 : vector<1x1x32xf32> to vector<8x8x32xf32>
    %108 = arith.mulf %103, %107 : vector<8x8x32xf32>
    %109 = arith.addf %102, %108 : vector<8x8x32xf32>
    %110 = vector.extract_strided_slice %2 {offsets = [1, 0, 0], sizes = [8, 8, 32], strides = [1, 1, 1]} : vector<10x8x32xf32> to vector<8x8x32xf32>
    %c1_45 = arith.constant 1 : index
    %c3_46 = arith.constant 3 : index
    %c0_47 = arith.constant 0 : index
    %111 = vector.load %arg2[%c1_45, %c3_46, %c0_47] : memref<3x9x32xf32, #tpu.memory_space<vmem>>, vector<1x1x32xf32>
    %112 = vector.shape_cast %111 : vector<1x1x32xf32> to vector<32xf32>
    %113 = vector.shape_cast %112 : vector<32xf32> to vector<1x1x32xf32>
    %114 = vector.broadcast %113 : vector<1x1x32xf32> to vector<8x8x32xf32>
    %115 = arith.mulf %110, %114 : vector<8x8x32xf32>
    %116 = arith.addf %109, %115 : vector<8x8x32xf32>
    %117 = vector.extract_strided_slice %3 {offsets = [1, 0, 0], sizes = [8, 8, 32], strides = [1, 1, 1]} : vector<10x8x32xf32> to vector<8x8x32xf32>
    %c1_48 = arith.constant 1 : index
    %c4_49 = arith.constant 4 : index
    %c0_50 = arith.constant 0 : index
    %118 = vector.load %arg2[%c1_48, %c4_49, %c0_50] : memref<3x9x32xf32, #tpu.memory_space<vmem>>, vector<1x1x32xf32>
    %119 = vector.shape_cast %118 : vector<1x1x32xf32> to vector<32xf32>
    %120 = vector.shape_cast %119 : vector<32xf32> to vector<1x1x32xf32>
    %121 = vector.broadcast %120 : vector<1x1x32xf32> to vector<8x8x32xf32>
    %122 = arith.mulf %117, %121 : vector<8x8x32xf32>
    %123 = arith.addf %116, %122 : vector<8x8x32xf32>
    %124 = vector.extract_strided_slice %4 {offsets = [1, 0, 0], sizes = [8, 8, 32], strides = [1, 1, 1]} : vector<10x8x32xf32> to vector<8x8x32xf32>
    %c1_51 = arith.constant 1 : index
    %c5_52 = arith.constant 5 : index
    %c0_53 = arith.constant 0 : index
    %125 = vector.load %arg2[%c1_51, %c5_52, %c0_53] : memref<3x9x32xf32, #tpu.memory_space<vmem>>, vector<1x1x32xf32>
    %126 = vector.shape_cast %125 : vector<1x1x32xf32> to vector<32xf32>
    %127 = vector.shape_cast %126 : vector<32xf32> to vector<1x1x32xf32>
    %128 = vector.broadcast %127 : vector<1x1x32xf32> to vector<8x8x32xf32>
    %129 = arith.mulf %124, %128 : vector<8x8x32xf32>
    %130 = arith.addf %123, %129 : vector<8x8x32xf32>
    %131 = vector.extract_strided_slice %2 {offsets = [2, 0, 0], sizes = [8, 8, 32], strides = [1, 1, 1]} : vector<10x8x32xf32> to vector<8x8x32xf32>
    %c1_54 = arith.constant 1 : index
    %c6_55 = arith.constant 6 : index
    %c0_56 = arith.constant 0 : index
    %132 = vector.load %arg2[%c1_54, %c6_55, %c0_56] : memref<3x9x32xf32, #tpu.memory_space<vmem>>, vector<1x1x32xf32>
    %133 = vector.shape_cast %132 : vector<1x1x32xf32> to vector<32xf32>
    %134 = vector.shape_cast %133 : vector<32xf32> to vector<1x1x32xf32>
    %135 = vector.broadcast %134 : vector<1x1x32xf32> to vector<8x8x32xf32>
    %136 = arith.mulf %131, %135 : vector<8x8x32xf32>
    %137 = arith.addf %130, %136 : vector<8x8x32xf32>
    %138 = vector.extract_strided_slice %3 {offsets = [2, 0, 0], sizes = [8, 8, 32], strides = [1, 1, 1]} : vector<10x8x32xf32> to vector<8x8x32xf32>
    %c1_57 = arith.constant 1 : index
    %c7_58 = arith.constant 7 : index
    %c0_59 = arith.constant 0 : index
    %139 = vector.load %arg2[%c1_57, %c7_58, %c0_59] : memref<3x9x32xf32, #tpu.memory_space<vmem>>, vector<1x1x32xf32>
    %140 = vector.shape_cast %139 : vector<1x1x32xf32> to vector<32xf32>
    %141 = vector.shape_cast %140 : vector<32xf32> to vector<1x1x32xf32>
    %142 = vector.broadcast %141 : vector<1x1x32xf32> to vector<8x8x32xf32>
    %143 = arith.mulf %138, %142 : vector<8x8x32xf32>
    %144 = arith.addf %137, %143 : vector<8x8x32xf32>
    %145 = vector.extract_strided_slice %4 {offsets = [2, 0, 0], sizes = [8, 8, 32], strides = [1, 1, 1]} : vector<10x8x32xf32> to vector<8x8x32xf32>
    %c1_60 = arith.constant 1 : index
    %c8_61 = arith.constant 8 : index
    %c0_62 = arith.constant 0 : index
    %146 = vector.load %arg2[%c1_60, %c8_61, %c0_62] : memref<3x9x32xf32, #tpu.memory_space<vmem>>, vector<1x1x32xf32>
    %147 = vector.shape_cast %146 : vector<1x1x32xf32> to vector<32xf32>
    %148 = vector.shape_cast %147 : vector<32xf32> to vector<1x1x32xf32>
    %149 = vector.broadcast %148 : vector<1x1x32xf32> to vector<8x8x32xf32>
    %150 = arith.mulf %145, %149 : vector<8x8x32xf32>
    %151 = arith.addf %144, %150 : vector<8x8x32xf32>
    %c1_63 = arith.constant 1 : index
    %c0_64 = arith.constant 0 : index
    %c0_65 = arith.constant 0 : index
    %152 = vector.load %arg3[%c1_63, %c0_64, %c0_65] : memref<3x1x32xf32, #tpu.memory_space<vmem>>, vector<1x1x32xf32>
    %153 = vector.shape_cast %152 : vector<1x1x32xf32> to vector<32xf32>
    %154 = vector.shape_cast %153 : vector<32xf32> to vector<1x1x32xf32>
    %155 = vector.broadcast %154 : vector<1x1x32xf32> to vector<8x8x32xf32>
    %156 = arith.addf %151, %155 : vector<8x8x32xf32>
    %157 = vector.shape_cast %156 : vector<8x8x32xf32> to vector<64x32xf32>
    %158 = arith.truncf %157 : vector<64x32xf32> to vector<64x32xbf16>
    %c1_66 = arith.constant 1 : index
    %c0_67 = arith.constant 0 : index
    %c0_68 = arith.constant 0 : index
    %159 = vector.load %arg4[%c1_66, %c0_67, %c0_68] : memref<3x32x128xbf16, #tpu.memory_space<vmem>>, vector<1x32x128xbf16>
    %160 = vector.shape_cast %159 : vector<1x32x128xbf16> to vector<32x128xbf16>
    %cst_69 = arith.constant dense<0.000000e+00> : vector<64x128xf32>
    %161 = tpu.matmul %158, %160, %cst_69 {dimension_numbers = #tpu.dot_dimension_numbers<[1], [0], [0], [1], [0, 0, 1, 1], [], []>} : vector<64x32xbf16>, vector<32x128xbf16>, vector<64x128xf32> -> vector<64x128xf32>
    %c1_70 = arith.constant 1 : index
    %c0_71 = arith.constant 0 : index
    %c0_72 = arith.constant 0 : index
    %162 = vector.load %arg5[%c1_70, %c0_71, %c0_72] : memref<3x1x128xf32, #tpu.memory_space<vmem>>, vector<1x1x128xf32>
    %163 = vector.shape_cast %162 : vector<1x1x128xf32> to vector<128xf32>
    %164 = vector.shape_cast %163 : vector<128xf32> to vector<1x128xf32>
    %165 = vector.broadcast %164 : vector<1x128xf32> to vector<64x128xf32>
    %166 = arith.addf %161, %165 : vector<64x128xf32>
    %167 = arith.truncf %166 : vector<64x128xf32> to vector<64x128xbf16>
    %c0_73 = arith.constant 0 : index
    %c0_74 = arith.constant 0 : index
    %c0_75 = arith.constant 0 : index
    %168 = vector.load %arg7[%c0_73, %c0_74, %c0_75] : memref<1x64x128xbf16, #tpu.memory_space<vmem>>, vector<1x64x128xbf16>
    %169 = vector.shape_cast %168 : vector<1x64x128xbf16> to vector<64x128xbf16>
    %170 = vector.shape_cast %167 : vector<64x128xbf16> to vector<1x64x128xbf16>
    tpu.vector_store %arg7[%c0_73, %c0_74, %c0_75], %170 {strides = array<i32>} : memref<1x64x128xbf16, #tpu.memory_space<vmem>>, vector<1x64x128xbf16>,
    %cst_76 = arith.constant 0.000000e+00 : f32
    %171 = vector.broadcast %cst_76 : f32 to vector<8x8x32xf32>
    %172 = vector.extract_strided_slice %2 {offsets = [0, 0, 0], sizes = [8, 8, 32], strides = [1, 1, 1]} : vector<10x8x32xf32> to vector<8x8x32xf32>
    %c2_77 = arith.constant 2 : index
    %c0_78 = arith.constant 0 : index
    %c0_79 = arith.constant 0 : index
    %173 = vector.load %arg2[%c2_77, %c0_78, %c0_79] : memref<3x9x32xf32, #tpu.memory_space<vmem>>, vector<1x1x32xf32>
    %174 = vector.shape_cast %173 : vector<1x1x32xf32> to vector<32xf32>
    %175 = vector.shape_cast %174 : vector<32xf32> to vector<1x1x32xf32>
    %176 = vector.broadcast %175 : vector<1x1x32xf32> to vector<8x8x32xf32>
    %177 = arith.mulf %172, %176 : vector<8x8x32xf32>
    %178 = arith.addf %171, %177 : vector<8x8x32xf32>
    %179 = vector.extract_strided_slice %3 {offsets = [0, 0, 0], sizes = [8, 8, 32], strides = [1, 1, 1]} : vector<10x8x32xf32> to vector<8x8x32xf32>
    %c2_80 = arith.constant 2 : index
    %c1_81 = arith.constant 1 : index
    %c0_82 = arith.constant 0 : index
    %180 = vector.load %arg2[%c2_80, %c1_81, %c0_82] : memref<3x9x32xf32, #tpu.memory_space<vmem>>, vector<1x1x32xf32>
    %181 = vector.shape_cast %180 : vector<1x1x32xf32> to vector<32xf32>
    %182 = vector.shape_cast %181 : vector<32xf32> to vector<1x1x32xf32>
    %183 = vector.broadcast %182 : vector<1x1x32xf32> to vector<8x8x32xf32>
    %184 = arith.mulf %179, %183 : vector<8x8x32xf32>
    %185 = arith.addf %178, %184 : vector<8x8x32xf32>
    %186 = vector.extract_strided_slice %4 {offsets = [0, 0, 0], sizes = [8, 8, 32], strides = [1, 1, 1]} : vector<10x8x32xf32> to vector<8x8x32xf32>
    %c2_83 = arith.constant 2 : index
    %c2_84 = arith.constant 2 : index
    %c0_85 = arith.constant 0 : index
    %187 = vector.load %arg2[%c2_83, %c2_84, %c0_85] : memref<3x9x32xf32, #tpu.memory_space<vmem>>, vector<1x1x32xf32>
    %188 = vector.shape_cast %187 : vector<1x1x32xf32> to vector<32xf32>
    %189 = vector.shape_cast %188 : vector<32xf32> to vector<1x1x32xf32>
    %190 = vector.broadcast %189 : vector<1x1x32xf32> to vector<8x8x32xf32>
    %191 = arith.mulf %186, %190 : vector<8x8x32xf32>
    %192 = arith.addf %185, %191 : vector<8x8x32xf32>
    %193 = vector.extract_strided_slice %2 {offsets = [1, 0, 0], sizes = [8, 8, 32], strides = [1, 1, 1]} : vector<10x8x32xf32> to vector<8x8x32xf32>
    %c2_86 = arith.constant 2 : index
    %c3_87 = arith.constant 3 : index
    %c0_88 = arith.constant 0 : index
    %194 = vector.load %arg2[%c2_86, %c3_87, %c0_88] : memref<3x9x32xf32, #tpu.memory_space<vmem>>, vector<1x1x32xf32>
    %195 = vector.shape_cast %194 : vector<1x1x32xf32> to vector<32xf32>
    %196 = vector.shape_cast %195 : vector<32xf32> to vector<1x1x32xf32>
    %197 = vector.broadcast %196 : vector<1x1x32xf32> to vector<8x8x32xf32>
    %198 = arith.mulf %193, %197 : vector<8x8x32xf32>
    %199 = arith.addf %192, %198 : vector<8x8x32xf32>
    %200 = vector.extract_strided_slice %3 {offsets = [1, 0, 0], sizes = [8, 8, 32], strides = [1, 1, 1]} : vector<10x8x32xf32> to vector<8x8x32xf32>
    %c2_89 = arith.constant 2 : index
    %c4_90 = arith.constant 4 : index
    %c0_91 = arith.constant 0 : index
    %201 = vector.load %arg2[%c2_89, %c4_90, %c0_91] : memref<3x9x32xf32, #tpu.memory_space<vmem>>, vector<1x1x32xf32>
    %202 = vector.shape_cast %201 : vector<1x1x32xf32> to vector<32xf32>
    %203 = vector.shape_cast %202 : vector<32xf32> to vector<1x1x32xf32>
    %204 = vector.broadcast %203 : vector<1x1x32xf32> to vector<8x8x32xf32>
    %205 = arith.mulf %200, %204 : vector<8x8x32xf32>
    %206 = arith.addf %199, %205 : vector<8x8x32xf32>
    %207 = vector.extract_strided_slice %4 {offsets = [1, 0, 0], sizes = [8, 8, 32], strides = [1, 1, 1]} : vector<10x8x32xf32> to vector<8x8x32xf32>
    %c2_92 = arith.constant 2 : index
    %c5_93 = arith.constant 5 : index
    %c0_94 = arith.constant 0 : index
    %208 = vector.load %arg2[%c2_92, %c5_93, %c0_94] : memref<3x9x32xf32, #tpu.memory_space<vmem>>, vector<1x1x32xf32>
    %209 = vector.shape_cast %208 : vector<1x1x32xf32> to vector<32xf32>
    %210 = vector.shape_cast %209 : vector<32xf32> to vector<1x1x32xf32>
    %211 = vector.broadcast %210 : vector<1x1x32xf32> to vector<8x8x32xf32>
    %212 = arith.mulf %207, %211 : vector<8x8x32xf32>
    %213 = arith.addf %206, %212 : vector<8x8x32xf32>
    %214 = vector.extract_strided_slice %2 {offsets = [2, 0, 0], sizes = [8, 8, 32], strides = [1, 1, 1]} : vector<10x8x32xf32> to vector<8x8x32xf32>
    %c2_95 = arith.constant 2 : index
    %c6_96 = arith.constant 6 : index
    %c0_97 = arith.constant 0 : index
    %215 = vector.load %arg2[%c2_95, %c6_96, %c0_97] : memref<3x9x32xf32, #tpu.memory_space<vmem>>, vector<1x1x32xf32>
    %216 = vector.shape_cast %215 : vector<1x1x32xf32> to vector<32xf32>
    %217 = vector.shape_cast %216 : vector<32xf32> to vector<1x1x32xf32>
    %218 = vector.broadcast %217 : vector<1x1x32xf32> to vector<8x8x32xf32>
    %219 = arith.mulf %214, %218 : vector<8x8x32xf32>
    %220 = arith.addf %213, %219 : vector<8x8x32xf32>
    %221 = vector.extract_strided_slice %3 {offsets = [2, 0, 0], sizes = [8, 8, 32], strides = [1, 1, 1]} : vector<10x8x32xf32> to vector<8x8x32xf32>
    %c2_98 = arith.constant 2 : index
    %c7_99 = arith.constant 7 : index
    %c0_100 = arith.constant 0 : index
    %222 = vector.load %arg2[%c2_98, %c7_99, %c0_100] : memref<3x9x32xf32, #tpu.memory_space<vmem>>, vector<1x1x32xf32>
    %223 = vector.shape_cast %222 : vector<1x1x32xf32> to vector<32xf32>
    %224 = vector.shape_cast %223 : vector<32xf32> to vector<1x1x32xf32>
    %225 = vector.broadcast %224 : vector<1x1x32xf32> to vector<8x8x32xf32>
    %226 = arith.mulf %221, %225 : vector<8x8x32xf32>
    %227 = arith.addf %220, %226 : vector<8x8x32xf32>
    %228 = vector.extract_strided_slice %4 {offsets = [2, 0, 0], sizes = [8, 8, 32], strides = [1, 1, 1]} : vector<10x8x32xf32> to vector<8x8x32xf32>
    %c2_101 = arith.constant 2 : index
    %c8_102 = arith.constant 8 : index
    %c0_103 = arith.constant 0 : index
    %229 = vector.load %arg2[%c2_101, %c8_102, %c0_103] : memref<3x9x32xf32, #tpu.memory_space<vmem>>, vector<1x1x32xf32>
    %230 = vector.shape_cast %229 : vector<1x1x32xf32> to vector<32xf32>
    %231 = vector.shape_cast %230 : vector<32xf32> to vector<1x1x32xf32>
    %232 = vector.broadcast %231 : vector<1x1x32xf32> to vector<8x8x32xf32>
    %233 = arith.mulf %228, %232 : vector<8x8x32xf32>
    %234 = arith.addf %227, %233 : vector<8x8x32xf32>
    %c2_104 = arith.constant 2 : index
    %c0_105 = arith.constant 0 : index
    %c0_106 = arith.constant 0 : index
    %235 = vector.load %arg3[%c2_104, %c0_105, %c0_106] : memref<3x1x32xf32, #tpu.memory_space<vmem>>, vector<1x1x32xf32>
    %236 = vector.shape_cast %235 : vector<1x1x32xf32> to vector<32xf32>
    %237 = vector.shape_cast %236 : vector<32xf32> to vector<1x1x32xf32>
    %238 = vector.broadcast %237 : vector<1x1x32xf32> to vector<8x8x32xf32>
    %239 = arith.addf %234, %238 : vector<8x8x32xf32>
    %240 = vector.shape_cast %239 : vector<8x8x32xf32> to vector<64x32xf32>
    %241 = arith.truncf %240 : vector<64x32xf32> to vector<64x32xbf16>
    %c2_107 = arith.constant 2 : index
    %c0_108 = arith.constant 0 : index
    %c0_109 = arith.constant 0 : index
    %242 = vector.load %arg4[%c2_107, %c0_108, %c0_109] : memref<3x32x128xbf16, #tpu.memory_space<vmem>>, vector<1x32x128xbf16>
    %243 = vector.shape_cast %242 : vector<1x32x128xbf16> to vector<32x128xbf16>
    %cst_110 = arith.constant dense<0.000000e+00> : vector<64x128xf32>
    %244 = tpu.matmul %241, %243, %cst_110 {dimension_numbers = #tpu.dot_dimension_numbers<[1], [0], [0], [1], [0, 0, 1, 1], [], []>} : vector<64x32xbf16>, vector<32x128xbf16>, vector<64x128xf32> -> vector<64x128xf32>
    %c2_111 = arith.constant 2 : index
    %c0_112 = arith.constant 0 : index
    %c0_113 = arith.constant 0 : index
    %245 = vector.load %arg5[%c2_111, %c0_112, %c0_113] : memref<3x1x128xf32, #tpu.memory_space<vmem>>, vector<1x1x128xf32>
    %246 = vector.shape_cast %245 : vector<1x1x128xf32> to vector<128xf32>
    %247 = vector.shape_cast %246 : vector<128xf32> to vector<1x128xf32>
    %248 = vector.broadcast %247 : vector<1x128xf32> to vector<64x128xf32>
    %249 = arith.addf %244, %248 : vector<64x128xf32>
    %250 = arith.truncf %249 : vector<64x128xf32> to vector<64x128xbf16>
    %c0_114 = arith.constant 0 : index
    %c0_115 = arith.constant 0 : index
    %c0_116 = arith.constant 0 : index
    %251 = vector.load %arg8[%c0_114, %c0_115, %c0_116] : memref<1x64x128xbf16, #tpu.memory_space<vmem>>, vector<1x64x128xbf16>
    %252 = vector.shape_cast %251 : vector<1x64x128xbf16> to vector<64x128xbf16>
    %253 = vector.shape_cast %250 : vector<64x128xbf16> to vector<1x64x128xbf16>
    tpu.vector_store %arg8[%c0_114, %c0_115, %c0_116], %253 {strides = array<i32>} : memref<1x64x128xbf16, #tpu.memory_space<vmem>>, vector<1x64x128xbf16>,
    return
  }
  func.func @transform_0(%arg0: i32) -> (i32, i32, i32, i32) {
    %c0_i32 = arith.constant 0 : i32
    %c0_i32_0 = arith.constant 0 : i32
    %c0_i32_1 = arith.constant 0 : i32
    %c0_i32_2 = arith.constant 0 : i32
    return %arg0, %c0_i32, %c0_i32_0, %c0_i32_1 : i32, i32, i32, i32
  }
  func.func @transform_1(%arg0: i32) -> (i32, i32, i32) {
    %c0_i32 = arith.constant 0 : i32
    %c0_i32_0 = arith.constant 0 : i32
    %c0_i32_1 = arith.constant 0 : i32
    %c0_i32_2 = arith.constant 0 : i32
    return %c0_i32, %c0_i32_0, %c0_i32_1 : i32, i32, i32
  }
  func.func @transform_2(%arg0: i32) -> (i32, i32, i32) {
    %c0_i32 = arith.constant 0 : i32
    %c0_i32_0 = arith.constant 0 : i32
    %c0_i32_1 = arith.constant 0 : i32
    %c0_i32_2 = arith.constant 0 : i32
    return %c0_i32, %c0_i32_0, %c0_i32_1 : i32, i32, i32
  }
  func.func @transform_3(%arg0: i32) -> (i32, i32, i32) {
    %c0_i32 = arith.constant 0 : i32
    %c0_i32_0 = arith.constant 0 : i32
    %c0_i32_1 = arith.constant 0 : i32
    %c0_i32_2 = arith.constant 0 : i32
    return %c0_i32, %c0_i32_0, %c0_i32_1 : i32, i32, i32
  }
  func.func @transform_4(%arg0: i32) -> (i32, i32, i32) {
    %c0_i32 = arith.constant 0 : i32
    %c0_i32_0 = arith.constant 0 : i32
    %c0_i32_1 = arith.constant 0 : i32
    %c0_i32_2 = arith.constant 0 : i32
    return %c0_i32, %c0_i32_0, %c0_i32_1 : i32, i32, i32
  }
  func.func @transform_5(%arg0: i32) -> (i32, i32, i32) {
    %c0_i32 = arith.constant 0 : i32
    %c0_i32_0 = arith.constant 0 : i32
    %c0_i32_1 = arith.constant 0 : i32
    return %arg0, %c0_i32, %c0_i32_0 : i32, i32, i32
  }
  func.func @transform_6(%arg0: i32) -> (i32, i32, i32) {
    %c0_i32 = arith.constant 0 : i32
    %c0_i32_0 = arith.constant 0 : i32
    %c0_i32_1 = arith.constant 0 : i32
    return %arg0, %c0_i32, %c0_i32_0 : i32, i32, i32
  }
  func.func @transform_7(%arg0: i32) -> (i32, i32, i32) {
    %c0_i32 = arith.constant 0 : i32
    %c0_i32_0 = arith.constant 0 : i32
    %c0_i32_1 = arith.constant 0 : i32
    return %arg0, %c0_i32, %c0_i32_0 : i32, i32, i32
  }
}

module attributes {stable_mosaic.version = 11 : i64} {
  func.func @_attn_proj_kernel(%arg0: i32, %arg1: memref<1x64x128xbf16, #tpu.memory_space<vmem>>, %arg2: memref<1x64x128xbf16, #tpu.memory_space<vmem>>, %arg3: memref<1x64x128xbf16, #tpu.memory_space<vmem>>, %arg4: memref<4x32x32xbf16, #tpu.memory_space<vmem>>, %arg5: memref<1x32xf32, #tpu.memory_space<vmem>>, %arg6: memref<1x64x32xf32, #tpu.memory_space<vmem>>) attributes {dimension_semantics = [#tpu.dimension_semantics<parallel>], iteration_bounds = array<i64: 2>, scalar_prefetch = 0 : i64, scratch_operands = 0 : i64, tpu.core_type = #tpu.core_type<tc>, window_params = [{transform_indices = @transform_0, window_bounds = array<i64: 1, 64, 128>}, {transform_indices = @transform_1, window_bounds = array<i64: 1, 64, 128>}, {transform_indices = @transform_2, window_bounds = array<i64: 1, 64, 128>}, {pipeline_mode = #tpu.pipeline_mode<synchronous>, transform_indices = @transform_3, window_bounds = array<i64: 4, 32, 32>}, {pipeline_mode = #tpu.pipeline_mode<synchronous>, transform_indices = @transform_4, window_bounds = array<i64: 1, 32>}, {transform_indices = @transform_5, window_bounds = array<i64: 1, 64, 32>}]} {
    %c0 = arith.constant 0 : index
    %c0_0 = arith.constant 0 : index
    %c0_1 = arith.constant 0 : index
    %0 = vector.load %arg1[%c0, %c0_0, %c0_1] : memref<1x64x128xbf16, #tpu.memory_space<vmem>>, vector<1x64x128xbf16>
    %1 = vector.shape_cast %0 : vector<1x64x128xbf16> to vector<64x128xbf16>
    %c0_2 = arith.constant 0 : index
    %c0_3 = arith.constant 0 : index
    %c0_4 = arith.constant 0 : index
    %2 = vector.load %arg2[%c0_2, %c0_3, %c0_4] : memref<1x64x128xbf16, #tpu.memory_space<vmem>>, vector<1x64x128xbf16>
    %3 = vector.shape_cast %2 : vector<1x64x128xbf16> to vector<64x128xbf16>
    %c0_5 = arith.constant 0 : index
    %c0_6 = arith.constant 0 : index
    %c0_7 = arith.constant 0 : index
    %4 = vector.load %arg3[%c0_5, %c0_6, %c0_7] : memref<1x64x128xbf16, #tpu.memory_space<vmem>>, vector<1x64x128xbf16>
    %5 = vector.shape_cast %4 : vector<1x64x128xbf16> to vector<64x128xbf16>
    %6 = vector.extract_strided_slice %1 {offsets = [0, 0], sizes = [64, 32], strides = [1, 1]} : vector<64x128xbf16> to vector<64x32xbf16>
    %7 = vector.extract_strided_slice %3 {offsets = [0, 0], sizes = [64, 32], strides = [1, 1]} : vector<64x128xbf16> to vector<64x32xbf16>
    %8 = vector.extract_strided_slice %5 {offsets = [0, 0], sizes = [64, 32], strides = [1, 1]} : vector<64x128xbf16> to vector<64x32xbf16>
    %cst = arith.constant dense<0.000000e+00> : vector<64x64xf32>
    %9 = tpu.matmul %6, %7, %cst {dimension_numbers = #tpu.dot_dimension_numbers<[1], [1], [0], [0], [0, 0, 1, 0], [], []>} : vector<64x32xbf16>, vector<64x32xbf16>, vector<64x64xf32> -> vector<64x64xf32>
    %cst_8 = arith.constant dense<0xFF800000> : vector<64xf32>
    %10 = vector.multi_reduction <maximumf>, %9, %cst_8 [1] : vector<64x64xf32> to vector<64xf32>
    %11 = vector.shape_cast %10 : vector<64xf32> to vector<64x1xf32>
    %12 = vector.broadcast %11 : vector<64x1xf32> to vector<64x64xf32>
    %13 = arith.subf %9, %12 : vector<64x64xf32>
    %14 = math.exp %13 : vector<64x64xf32>
    %cst_9 = arith.constant dense<0.000000e+00> : vector<64xf32>
    %15 = vector.multi_reduction <add>, %14, %cst_9 [1] : vector<64x64xf32> to vector<64xf32>
    %16 = vector.shape_cast %15 : vector<64xf32> to vector<64x1xf32>
    %17 = tpu.reciprocal %16 {approx = true} : vector<64x1xf32> -> vector<64x1xf32>
    %18 = vector.broadcast %17 : vector<64x1xf32> to vector<64x64xf32>
    %19 = arith.mulf %14, %18 : vector<64x64xf32>
    %20 = arith.truncf %19 : vector<64x64xf32> to vector<64x64xbf16>
    %cst_10 = arith.constant dense<0.000000e+00> : vector<64x32xf32>
    %21 = tpu.matmul %20, %8, %cst_10 {dimension_numbers = #tpu.dot_dimension_numbers<[1], [0], [0], [1], [0, 0, 1, 1], [], []>} : vector<64x64xbf16>, vector<64x32xbf16>, vector<64x32xf32> -> vector<64x32xf32>
    %22 = arith.truncf %21 : vector<64x32xf32> to vector<64x32xbf16>
    %c0_11 = arith.constant 0 : index
    %c0_12 = arith.constant 0 : index
    %c0_13 = arith.constant 0 : index
    %23 = vector.load %arg4[%c0_11, %c0_12, %c0_13] : memref<4x32x32xbf16, #tpu.memory_space<vmem>>, vector<1x32x32xbf16>
    %24 = vector.shape_cast %23 : vector<1x32x32xbf16> to vector<32x32xbf16>
    %cst_14 = arith.constant dense<0.000000e+00> : vector<64x32xf32>
    %25 = tpu.matmul %22, %24, %cst_14 {dimension_numbers = #tpu.dot_dimension_numbers<[1], [0], [0], [1], [0, 0, 1, 1], [], []>} : vector<64x32xbf16>, vector<32x32xbf16>, vector<64x32xf32> -> vector<64x32xf32>
    %26 = vector.extract_strided_slice %1 {offsets = [0, 32], sizes = [64, 32], strides = [1, 1]} : vector<64x128xbf16> to vector<64x32xbf16>
    %27 = vector.extract_strided_slice %3 {offsets = [0, 32], sizes = [64, 32], strides = [1, 1]} : vector<64x128xbf16> to vector<64x32xbf16>
    %28 = vector.extract_strided_slice %5 {offsets = [0, 32], sizes = [64, 32], strides = [1, 1]} : vector<64x128xbf16> to vector<64x32xbf16>
    %cst_15 = arith.constant dense<0.000000e+00> : vector<64x64xf32>
    %29 = tpu.matmul %26, %27, %cst_15 {dimension_numbers = #tpu.dot_dimension_numbers<[1], [1], [0], [0], [0, 0, 1, 0], [], []>} : vector<64x32xbf16>, vector<64x32xbf16>, vector<64x64xf32> -> vector<64x64xf32>
    %cst_16 = arith.constant dense<0xFF800000> : vector<64xf32>
    %30 = vector.multi_reduction <maximumf>, %29, %cst_16 [1] : vector<64x64xf32> to vector<64xf32>
    %31 = vector.shape_cast %30 : vector<64xf32> to vector<64x1xf32>
    %32 = vector.broadcast %31 : vector<64x1xf32> to vector<64x64xf32>
    %33 = arith.subf %29, %32 : vector<64x64xf32>
    %34 = math.exp %33 : vector<64x64xf32>
    %cst_17 = arith.constant dense<0.000000e+00> : vector<64xf32>
    %35 = vector.multi_reduction <add>, %34, %cst_17 [1] : vector<64x64xf32> to vector<64xf32>
    %36 = vector.shape_cast %35 : vector<64xf32> to vector<64x1xf32>
    %37 = tpu.reciprocal %36 {approx = true} : vector<64x1xf32> -> vector<64x1xf32>
    %38 = vector.broadcast %37 : vector<64x1xf32> to vector<64x64xf32>
    %39 = arith.mulf %34, %38 : vector<64x64xf32>
    %40 = arith.truncf %39 : vector<64x64xf32> to vector<64x64xbf16>
    %cst_18 = arith.constant dense<0.000000e+00> : vector<64x32xf32>
    %41 = tpu.matmul %40, %28, %cst_18 {dimension_numbers = #tpu.dot_dimension_numbers<[1], [0], [0], [1], [0, 0, 1, 1], [], []>} : vector<64x64xbf16>, vector<64x32xbf16>, vector<64x32xf32> -> vector<64x32xf32>
    %42 = arith.truncf %41 : vector<64x32xf32> to vector<64x32xbf16>
    %c1 = arith.constant 1 : index
    %c0_19 = arith.constant 0 : index
    %c0_20 = arith.constant 0 : index
    %43 = vector.load %arg4[%c1, %c0_19, %c0_20] : memref<4x32x32xbf16, #tpu.memory_space<vmem>>, vector<1x32x32xbf16>
    %44 = vector.shape_cast %43 : vector<1x32x32xbf16> to vector<32x32xbf16>
    %cst_21 = arith.constant dense<0.000000e+00> : vector<64x32xf32>
    %45 = tpu.matmul %42, %44, %cst_21 {dimension_numbers = #tpu.dot_dimension_numbers<[1], [0], [0], [1], [0, 0, 1, 1], [], []>} : vector<64x32xbf16>, vector<32x32xbf16>, vector<64x32xf32> -> vector<64x32xf32>
    %46 = arith.addf %25, %45 : vector<64x32xf32>
    %47 = vector.extract_strided_slice %1 {offsets = [0, 64], sizes = [64, 32], strides = [1, 1]} : vector<64x128xbf16> to vector<64x32xbf16>
    %48 = vector.extract_strided_slice %3 {offsets = [0, 64], sizes = [64, 32], strides = [1, 1]} : vector<64x128xbf16> to vector<64x32xbf16>
    %49 = vector.extract_strided_slice %5 {offsets = [0, 64], sizes = [64, 32], strides = [1, 1]} : vector<64x128xbf16> to vector<64x32xbf16>
    %cst_22 = arith.constant dense<0.000000e+00> : vector<64x64xf32>
    %50 = tpu.matmul %47, %48, %cst_22 {dimension_numbers = #tpu.dot_dimension_numbers<[1], [1], [0], [0], [0, 0, 1, 0], [], []>} : vector<64x32xbf16>, vector<64x32xbf16>, vector<64x64xf32> -> vector<64x64xf32>
    %cst_23 = arith.constant dense<0xFF800000> : vector<64xf32>
    %51 = vector.multi_reduction <maximumf>, %50, %cst_23 [1] : vector<64x64xf32> to vector<64xf32>
    %52 = vector.shape_cast %51 : vector<64xf32> to vector<64x1xf32>
    %53 = vector.broadcast %52 : vector<64x1xf32> to vector<64x64xf32>
    %54 = arith.subf %50, %53 : vector<64x64xf32>
    %55 = math.exp %54 : vector<64x64xf32>
    %cst_24 = arith.constant dense<0.000000e+00> : vector<64xf32>
    %56 = vector.multi_reduction <add>, %55, %cst_24 [1] : vector<64x64xf32> to vector<64xf32>
    %57 = vector.shape_cast %56 : vector<64xf32> to vector<64x1xf32>
    %58 = tpu.reciprocal %57 {approx = true} : vector<64x1xf32> -> vector<64x1xf32>
    %59 = vector.broadcast %58 : vector<64x1xf32> to vector<64x64xf32>
    %60 = arith.mulf %55, %59 : vector<64x64xf32>
    %61 = arith.truncf %60 : vector<64x64xf32> to vector<64x64xbf16>
    %cst_25 = arith.constant dense<0.000000e+00> : vector<64x32xf32>
    %62 = tpu.matmul %61, %49, %cst_25 {dimension_numbers = #tpu.dot_dimension_numbers<[1], [0], [0], [1], [0, 0, 1, 1], [], []>} : vector<64x64xbf16>, vector<64x32xbf16>, vector<64x32xf32> -> vector<64x32xf32>
    %63 = arith.truncf %62 : vector<64x32xf32> to vector<64x32xbf16>
    %c2 = arith.constant 2 : index
    %c0_26 = arith.constant 0 : index
    %c0_27 = arith.constant 0 : index
    %64 = vector.load %arg4[%c2, %c0_26, %c0_27] : memref<4x32x32xbf16, #tpu.memory_space<vmem>>, vector<1x32x32xbf16>
    %65 = vector.shape_cast %64 : vector<1x32x32xbf16> to vector<32x32xbf16>
    %cst_28 = arith.constant dense<0.000000e+00> : vector<64x32xf32>
    %66 = tpu.matmul %63, %65, %cst_28 {dimension_numbers = #tpu.dot_dimension_numbers<[1], [0], [0], [1], [0, 0, 1, 1], [], []>} : vector<64x32xbf16>, vector<32x32xbf16>, vector<64x32xf32> -> vector<64x32xf32>
    %67 = arith.addf %46, %66 : vector<64x32xf32>
    %68 = vector.extract_strided_slice %1 {offsets = [0, 96], sizes = [64, 32], strides = [1, 1]} : vector<64x128xbf16> to vector<64x32xbf16>
    %69 = vector.extract_strided_slice %3 {offsets = [0, 96], sizes = [64, 32], strides = [1, 1]} : vector<64x128xbf16> to vector<64x32xbf16>
    %70 = vector.extract_strided_slice %5 {offsets = [0, 96], sizes = [64, 32], strides = [1, 1]} : vector<64x128xbf16> to vector<64x32xbf16>
    %cst_29 = arith.constant dense<0.000000e+00> : vector<64x64xf32>
    %71 = tpu.matmul %68, %69, %cst_29 {dimension_numbers = #tpu.dot_dimension_numbers<[1], [1], [0], [0], [0, 0, 1, 0], [], []>} : vector<64x32xbf16>, vector<64x32xbf16>, vector<64x64xf32> -> vector<64x64xf32>
    %cst_30 = arith.constant dense<0xFF800000> : vector<64xf32>
    %72 = vector.multi_reduction <maximumf>, %71, %cst_30 [1] : vector<64x64xf32> to vector<64xf32>
    %73 = vector.shape_cast %72 : vector<64xf32> to vector<64x1xf32>
    %74 = vector.broadcast %73 : vector<64x1xf32> to vector<64x64xf32>
    %75 = arith.subf %71, %74 : vector<64x64xf32>
    %76 = math.exp %75 : vector<64x64xf32>
    %cst_31 = arith.constant dense<0.000000e+00> : vector<64xf32>
    %77 = vector.multi_reduction <add>, %76, %cst_31 [1] : vector<64x64xf32> to vector<64xf32>
    %78 = vector.shape_cast %77 : vector<64xf32> to vector<64x1xf32>
    %79 = tpu.reciprocal %78 {approx = true} : vector<64x1xf32> -> vector<64x1xf32>
    %80 = vector.broadcast %79 : vector<64x1xf32> to vector<64x64xf32>
    %81 = arith.mulf %76, %80 : vector<64x64xf32>
    %82 = arith.truncf %81 : vector<64x64xf32> to vector<64x64xbf16>
    %cst_32 = arith.constant dense<0.000000e+00> : vector<64x32xf32>
    %83 = tpu.matmul %82, %70, %cst_32 {dimension_numbers = #tpu.dot_dimension_numbers<[1], [0], [0], [1], [0, 0, 1, 1], [], []>} : vector<64x64xbf16>, vector<64x32xbf16>, vector<64x32xf32> -> vector<64x32xf32>
    %84 = arith.truncf %83 : vector<64x32xf32> to vector<64x32xbf16>
    %c3 = arith.constant 3 : index
    %c0_33 = arith.constant 0 : index
    %c0_34 = arith.constant 0 : index
    %85 = vector.load %arg4[%c3, %c0_33, %c0_34] : memref<4x32x32xbf16, #tpu.memory_space<vmem>>, vector<1x32x32xbf16>
    %86 = vector.shape_cast %85 : vector<1x32x32xbf16> to vector<32x32xbf16>
    %cst_35 = arith.constant dense<0.000000e+00> : vector<64x32xf32>
    %87 = tpu.matmul %84, %86, %cst_35 {dimension_numbers = #tpu.dot_dimension_numbers<[1], [0], [0], [1], [0, 0, 1, 1], [], []>} : vector<64x32xbf16>, vector<32x32xbf16>, vector<64x32xf32> -> vector<64x32xf32>
    %88 = arith.addf %67, %87 : vector<64x32xf32>
    %c0_36 = arith.constant 0 : index
    %c0_37 = arith.constant 0 : index
    %89 = vector.load %arg5[%c0_36, %c0_37] : memref<1x32xf32, #tpu.memory_space<vmem>>, vector<1x32xf32>
    %90 = vector.broadcast %89 : vector<1x32xf32> to vector<64x32xf32>
    %91 = arith.addf %88, %90 : vector<64x32xf32>
    %c0_38 = arith.constant 0 : index
    %c0_39 = arith.constant 0 : index
    %c0_40 = arith.constant 0 : index
    %92 = vector.load %arg6[%c0_38, %c0_39, %c0_40] : memref<1x64x32xf32, #tpu.memory_space<vmem>>, vector<1x64x32xf32>
    %93 = vector.shape_cast %92 : vector<1x64x32xf32> to vector<64x32xf32>
    %94 = vector.shape_cast %91 : vector<64x32xf32> to vector<1x64x32xf32>
    tpu.vector_store %arg6[%c0_38, %c0_39, %c0_40], %94 {strides = array<i32>} : memref<1x64x32xf32, #tpu.memory_space<vmem>>, vector<1x64x32xf32>,
    return
  }
  func.func @transform_0(%arg0: i32) -> (i32, i32, i32) {
    %c0_i32 = arith.constant 0 : i32
    %c0_i32_0 = arith.constant 0 : i32
    %c0_i32_1 = arith.constant 0 : i32
    return %arg0, %c0_i32, %c0_i32_0 : i32, i32, i32
  }
  func.func @transform_1(%arg0: i32) -> (i32, i32, i32) {
    %c0_i32 = arith.constant 0 : i32
    %c0_i32_0 = arith.constant 0 : i32
    %c0_i32_1 = arith.constant 0 : i32
    return %arg0, %c0_i32, %c0_i32_0 : i32, i32, i32
  }
  func.func @transform_2(%arg0: i32) -> (i32, i32, i32) {
    %c0_i32 = arith.constant 0 : i32
    %c0_i32_0 = arith.constant 0 : i32
    %c0_i32_1 = arith.constant 0 : i32
    return %arg0, %c0_i32, %c0_i32_0 : i32, i32, i32
  }
  func.func @transform_3(%arg0: i32) -> (i32, i32, i32) {
    %c0_i32 = arith.constant 0 : i32
    %c0_i32_0 = arith.constant 0 : i32
    %c0_i32_1 = arith.constant 0 : i32
    %c0_i32_2 = arith.constant 0 : i32
    return %c0_i32, %c0_i32_0, %c0_i32_1 : i32, i32, i32
  }
  func.func @transform_4(%arg0: i32) -> (i32, i32) {
    %c0_i32 = arith.constant 0 : i32
    %c0_i32_0 = arith.constant 0 : i32
    %c0_i32_1 = arith.constant 0 : i32
    return %c0_i32, %c0_i32_0 : i32, i32
  }
  func.func @transform_5(%arg0: i32) -> (i32, i32, i32) {
    %c0_i32 = arith.constant 0 : i32
    %c0_i32_0 = arith.constant 0 : i32
    %c0_i32_1 = arith.constant 0 : i32
    return %arg0, %c0_i32, %c0_i32_0 : i32, i32, i32
  }
}

</mosaic_0001>

<bundles_post_ra>
// kernel: conv_attention_forward.3
= control target key start
LH: loop header
LB: loop body
LE: loop exit
PB: predicated region body
PF: predicated region fallthrough
CT: control target
= control target key end

     0   :  { %s1906_s18 = smov 0   ;;  %s2467_s0 = inlined_call_operand.vmem [shape: bf16[2,64,128], index: 0, kind: input, shape index: {}]   ;;  %s2468_s1 = inlined_call_operand.vmem [shape: bf16[2,64,128], index: 1, kind: input, shape index: {}]   ;;  %s2469_s2 = inlined_call_operand.vmem [shape: bf16[2,64,128], index: 2, kind: input, shape index: {}]   ;;  %s2470_s3 = inlined_call_operand.vmem [shape: bf16[4,32,32], index: 3, kind: input, shape index: {}]   ;;  %s2471_s4 = inlined_call_operand.vmem [shape: f32[1,32], index: 4, kind: input, shape index: {}]   ;;  %s2472_s5 = inlined_call_operand.vmem [shape: f32[2,64,32], index: 5, kind: output, shape index: {}]  }
   0x1 LB: > { %s1546_s19 = sadd.s32 4294967295, %s1871_s18   ;;  %p1550_p0 = scmp.ge.s32.totalorder %s1871_s18, 1  ;;  %s1871_s18 = sphi %s1906_s18, %s15_s18  }
   0x2   : > { %p207_p1 = scmp.lt.s32.totalorder %s1871_s18, 3 }
   0x4   : > { %p208_p2 = pnand %p1550_p0, %p207_p1 }
   0x5   : > { %p245_p3 = scmp.lt.s32.totalorder (!%p208_p2), %s1546_s19, 1  ;;  %s1873_s27 = smov (!%p208_p2), 96  }
   0x6   : > { %211 = sbr.rel (%p208_p2) target bundleno = 1630 (0x65e), region = 40  ;;  %s1874_s6 = smov (!%p208_p2), 32  }
   0x7   : > { %s1875_s7 = smov (!%p208_p2), 64  }
   0xb   : > { %s2474_s19 = smov (!%p245_p3, %s1546_s19), 1  ;;  %vm330_vm0 = vcmask 261120   ;;  %vm384_vm1 = vcmask 523264  }
   0xc   : > { %s1917_s20 = sshll.u32 %s2474_s19, 5 }
   0xd   : > { %s254_s23 = scalar_lea.vmem %s2468_s1, %s1917_s20  ;;  %s249_s26 = scalar_lea.vmem %s2467_s0, %s1917_s20 }
   0xe   : > { %v1927_v0 = vld [vmem:[%s254_s23 + $0x18] sm:$0xff]  ;;  %v1929_v1 = vld [vmem:[%s254_s23 + $0x8] sm:$0xff]  ;;  %v1931_v2 = vld [vmem:[%s249_s26] sm:$0xff]  ;;  %s1986_s30 = scalar_lea.vmem %s2469_s2, %s1917_s20 }
   0xf   : > { %564 = vrot.lane.b32.xlu0 %v1927_v0, %s1873_s27  ;;  %v353_v3 = vsel %vm330_vm0, %v1927_v0, 0  ;;  %560 = vrot.lane.b32.xlu1 %v1929_v1, %s1873_s27  ;;  %v1941_v4 = vld [vmem:[%s254_s23 + $0x10] sm:$0xff]  ;;  %v1943_v5 = vld [vmem:[%s254_s23] sm:$0xff]  ;;  %v347_v8 = vsel %vm330_vm0, %v1929_v1, 0 }
  0x10   : > { %359 = vmatpush.bf16.xpose.msra.mxu0 %v353_v3  ;;  %550 = vrot.lane.b32.xlu2 %v1931_v2, %s1873_s27  ;;  %v350_v6 = vsel %vm330_vm0, %v1941_v4, 0  ;;  %v1947_v7 = vld [vmem:[%s249_s26 + $0x8] sm:$0xff]  ;;  %v1957_v9 = vld [vmem:[%s249_s26 + $0x10] sm:$0xff]  ;;  %v344_v10 = vsel %vm330_vm0, %v1943_v5, 0  ;;  %v1965_v11 = vld [vmem:[%s249_s26 + $0x18] sm:$0xff]  ;;  %s1704_s26 = sshll.u32 %s2474_s19, 6 }
  0x11   : > { %v1990_v26 = vld [vmem:[%s1986_s30 + $0x18] sm:$0xff] }
  0x12   : > { %517 = vmatpush.bf16.msra.mxu1 %v1990_v26 }
  0x17   : > { %562 = vrot.lane.b32.xlu0 %v1941_v4, %s1873_s27  ;;  %558 = vrot.lane.b32.xlu1 %v1943_v5, %s1873_s27 }
  0x18   : > { %360 = vmatpush.bf16.xpose.msra.mxu0 %v350_v6  ;;  %552 = vrot.lane.b32.xlu2 %v1947_v7, %s1873_s27 }
  0x1f   : > { %554 = vrot.lane.b32.xlu0 %v1957_v9, %s1873_s27  ;;  %556 = vrot.lane.b32.xlu1 %v1965_v11, %s1873_s27 }
  0x20   : > { %361 = vmatpush.bf16.xpose.msra.mxu0 %v347_v8 }
  0x28   : > { %362 = vmatpush.bf16.xpose.msra.mxu0 %v344_v10 }
  0x2f   : > { %1591 = vmatmul.msk.bf16.vlgmr.msra.gmra.mxu0 %vm330_vm0, %v1931_v2 }
  0x3f   : > { %1592 = vmatmul.msk.bf16.gmra.mxu0 %vm330_vm0, %v1947_v7 }
  0x4f   : > { %1593 = vmatmul.msk.bf16.gmra.mxu0 %vm330_vm0, %v1957_v9 }
  0x5f   : > { %1594 = vmatmul.msk.bf16.gmra.mxu0 %vm330_vm0, %v1965_v11 }
  0x6a   : > { %v551_v20 = vpop.permute.xlu2 %550 }
  0x72   : > { %v553_v23 = vpop.permute.xlu2 %552 }
  0x81   : > { %v565_v12 = vpop.permute.xlu0 %564  ;;  %v561_v16 = vpop.permute.xlu1 %560 }
  0x82   : > { %v588_v13 = vsel %vm330_vm0, %v565_v12, 0  ;;  %v582_v17 = vsel %vm330_vm0, %v561_v16, 0 }
  0x83   : > { %594 = vmatpush.bf16.xpose.msra.mxu2 %v588_v13 }
  0x89   : > { %v563_v14 = vpop.permute.xlu0 %562  ;;  %v559_v18 = vpop.permute.xlu1 %558 }
  0x8a   : > { %v585_v15 = vsel %vm330_vm0, %v563_v14, 0  ;;  %v579_v19 = vsel %vm330_vm0, %v559_v18, 0 }
  0x8b   : > { %595 = vmatpush.bf16.xpose.msra.mxu2 %v585_v15 }
  0x91   : > { %v555_v29 = vpop.permute.xlu0 %554  ;;  %v557_v34 = vpop.permute.xlu1 %556 }
  0x93   : > { %596 = vmatpush.bf16.xpose.msra.mxu2 %v582_v17 }
  0x9b   : > { %597 = vmatpush.bf16.xpose.msra.mxu2 %v579_v19 }
  0xa2   : > { %1615 = vmatmul.msk.bf16.vlgmr.msra.gmra.mxu2 %vm330_vm0, %v551_v20 }
  0xac   : > { %v364_v21 = vpop.f32.mrf.mxu0 }
  0xad   : > { %v385_v22 = vsel %vm384_vm1, %v364_v21, -inf }
  0xae   : > { %386 = vmax.xlane.f32.xlu2 %v385_v22 }
  0xb2   : > { %1616 = vmatmul.msk.bf16.gmra.mxu2 %vm330_vm0, %v553_v23 }
  0xb4   : > { %v366_v24 = vpop.f32.mrf.mxu0 }
  0xb5   : > { %v388_v25 = vsel %vm384_vm1, %v366_v24, -inf }
  0xb6   : > { %389 = vmax.xlane.f32.xlu0 %v388_v25 }
  0xbc   : > { %v369_v27 = vpop.f32.mrf.mxu0 }
  0xbd   : > { %v391_v28 = vsel %vm384_vm1, %v369_v27, -inf }
  0xbe   : > { %392 = vmax.xlane.f32.xlu1 %v391_v28 }
  0xc2   : > { %1617 = vmatmul.msk.bf16.gmra.mxu2 %vm330_vm0, %v555_v29 }
  0xc4   : > { %v371_v30 = vpop.f32.mrf.mxu0 }
  0xc5   : > { %v394_v31 = vsel %vm384_vm1, %v371_v30, -inf }
  0xc6   : > { %395 = vmax.xlane.f32.xlu2 %v394_v31 }
  0xcc   : > { %v374_v32 = vpop.f32.mrf.mxu0 }
  0xcd   : > { %v397_v33 = vsel %vm384_vm1, %v374_v32, -inf }
  0xce   : > { %398 = vmax.xlane.f32.xlu2 %v397_v33 }
  0xd2   : > { %1618 = vmatmul.msk.bf16.gmra.mxu2 %vm330_vm0, %v557_v34 }
  0xd4   : > { %v376_v35 = vpop.f32.mrf.mxu0 }
  0xd5   : > { %v400_v36 = vsel %vm384_vm1, %v376_v35, -inf }
  0xd6   : > { %401 = vmax.xlane.f32.xlu0 %v400_v36 }
  0xd7   : > { %717 = vrot.lane.b32.xlu1 %v1990_v26, %s1873_s27 }
  0xdc   : > { %v2001_v37 = vpop.f32.mrf.mxu0 }
  0xdd   : > { %v403_v40 = vsel %vm384_vm1, %v2001_v37, -inf }
  0xe4   : > { %v2003_v38 = vpop.f32.mrf.mxu0 }
  0xe5   : > { %v406_v39 = vsel %vm384_vm1, %v2003_v38, -inf }
  0xe6   : > { %407 = vmax.xlane.f32.xlu2 %v406_v39 }
 0x101   : > { %404 = vmax.xlane.f32.xlu1 %v403_v40 }
 0x121   : > { %v387_v41 = vpop.xlane.xlu2 %386 }
 0x122   : > { %v409_v42 = vsub.f32 %v364_v21, %v387_v41 }
 0x124   : > { %v417_v43 = vmul.f32 1.442695, %v409_v42 }
 0x125   : > { %v2009_v44 = vpop.f32.mrf.mxu2 }
 0x126   : > { %1737 = vpow2.f32 %v417_v43  ;;  %v619_v45 = vsel %vm384_vm1, %v2009_v44, -inf }
 0x127   : > { %620 = vmax.xlane.f32.xlu1 %v619_v45  ;;  %v2076_v45 = vld [vmem:[%s1986_s30 + $0x10] sm:$0xff] }
 0x128   : > { %518 = vmatpush.bf16.msra.mxu1 %v2076_v45 }
 0x129   : > { %v390_v46 = vpop.xlane.xlu0 %389 }
 0x12a   : > { %v410_v47 = vsub.f32 %v366_v24, %v390_v46  ;;  %v2080_v46 = vld [vmem:[%s1986_s30 + $0x8] sm:$0xff] }
 0x12c   : > { %v2013_v48 = vpop.eup %1737  ;;  %v419_v49 = vmul.f32 1.442695, %v410_v47  ;;  %519 = vmatpush.bf16.msra.mxu1 %v2080_v46  ;;  %v2084_v47 = vld [vmem:[%s1986_s30] sm:$0xff] }
 0x12d   : > { %v2015_v50 = vpop.f32.mrf.mxu2  ;;  %v433_v51 = vsel %vm384_vm1, %v2013_v48, 0.0 }
 0x12e   : > { %1739 = vpow2.f32 %v419_v49  ;;  %434 = vadd.xlane.f32.xlu0 %v433_v51  ;;  %v622_v52 = vsel %vm384_vm1, %v2015_v50, -inf }
 0x12f   : > { %623 = vmax.xlane.f32.xlu2 %v622_v52 }
 0x130   : > { %520 = vmatpush.bf16.msra.mxu1 %v2084_v47 }
 0x131   : > { %v393_v53 = vpop.xlane.xlu1 %392 }
 0x132   : > { %v411_v54 = vsub.f32 %v369_v27, %v393_v53 }
 0x134   : > { %v2021_v55 = vpop.eup %1739  ;;  %v421_v56 = vmul.f32 1.442695, %v411_v54 }
 0x135   : > { %v2023_v57 = vpop.f32.mrf.mxu2  ;;  %v436_v58 = vsel %vm384_vm1, %v2021_v55, 0.0 }
 0x136   : > { %1741 = vpow2.f32 %v421_v56  ;;  %437 = vadd.xlane.f32.xlu1 %v436_v58  ;;  %v625_v59 = vsel %vm384_vm1, %v2023_v57, -inf }
 0x137   : > { %626 = vmax.xlane.f32.xlu2 %v625_v59 }
 0x139   : > { %v396_v60 = vpop.xlane.xlu2 %395 }
 0x13a   : > { %v412_v61 = vsub.f32 %v371_v30, %v396_v60 }
 0x13c   : > { %v2029_v62 = vpop.eup %1741  ;;  %v423_v63 = vmul.f32 1.442695, %v412_v61 }
 0x13d   : > { %v2031_v3 = vpop.f32.mrf.mxu2  ;;  %v439_v6 = vsel %vm384_vm1, %v2029_v62, 0.0 }
 0x13e   : > { %1743 = vpow2.f32 %v423_v63  ;;  %v628_v8 = vsel %vm384_vm1, %v2031_v3, -inf }
 0x13f   : > { %629 = vmax.xlane.f32.xlu0 %v628_v8  ;;  %440 = vadd.xlane.f32.xlu2 %v439_v6 }
 0x141   : > { %v399_v10 = vpop.xlane.xlu2 %398 }
 0x142   : > { %v413_v13 = vsub.f32 %v374_v32, %v399_v10 }
 0x144   : > { %v2037_v12 = vpop.eup %1743  ;;  %v425_v16 = vmul.f32 1.442695, %v413_v13 }
 0x145   : > { %v2039_v14 = vpop.f32.mrf.mxu2  ;;  %v442_v15 = vsel %vm384_vm1, %v2037_v12, 0.0 }
 0x146   : > { %v631_v21 = vsel %vm384_vm1, %v2039_v14, -inf  ;;  %1745 = vpow2.f32 %v425_v16 }
 0x147   : > { %443 = vadd.xlane.f32.xlu0 %v442_v15 }
 0x149   : > { %v402_v17 = vpop.xlane.xlu0 %401  ;;  %v718_v18 = vpop.permute.xlu1 %717 }
 0x14a   : > { %v414_v19 = vsub.f32 %v376_v35, %v402_v17  ;;  %739 = vmatpush.bf16.msra.mxu3 %v718_v18 }
 0x14c   : > { %v427_v20 = vmul.f32 1.442695, %v414_v19  ;;  %v2049_v24 = vpop.eup %1745 }
 0x14d   : > { %v2045_v22 = vpop.f32.mrf.mxu2  ;;  %v445_v29 = vsel %vm384_vm1, %v2049_v24, 0.0 }
 0x14e   : > { %1747 = vpow2.f32 %v427_v20  ;;  %v634_v23 = vsel %vm384_vm1, %v2045_v22, -inf }
 0x14f   : > { %632 = vmax.xlane.f32.xlu0 %v631_v21  ;;  %635 = vmax.xlane.f32.xlu1 %v634_v23 }
 0x154   : > { %v2051_v25 = vpop.eup %1747 }
 0x155   : > { %v2053_v27 = vpop.f32.mrf.mxu2  ;;  %v448_v28 = vsel %vm384_vm1, %v2051_v25, 0.0 }
 0x156   : > { %v637_v30 = vsel %vm384_vm1, %v2053_v27, -inf }
 0x157   : > { %446 = vadd.xlane.f32.xlu0 %v445_v29  ;;  %449 = vadd.xlane.f32.xlu1 %v448_v28 }
 0x158   : > { %638 = vmax.xlane.f32.xlu2 %v637_v30 }
 0x159   : > { %v408_v31 = vpop.xlane.xlu2 %407 }
 0x15a   : > { %v416_v32 = vsub.f32 %v2003_v38, %v408_v31 }
 0x15c   : > { %v431_v33 = vmul.f32 1.442695, %v416_v32 }
 0x15d   : > { %v2062_v34 = vpop.f32.mrf.mxu2 }
 0x15e   : > { %1749 = vpow2.f32 %v431_v33  ;;  %v640_v35 = vsel %vm384_vm1, %v2062_v34, -inf }
 0x15f   : > { %641 = vmax.xlane.f32.xlu0 %v640_v35 }
 0x164   : > { %v2066_v36 = vpop.eup %1749 }
 0x165   : > { %v454_v39 = vsel %vm384_vm1, %v2066_v36, 0.0 }
 0x166   : > { %455 = vadd.xlane.f32.xlu2 %v454_v39 }
 0x174   : > { %v405_v40 = vpop.xlane.xlu1 %404 }
 0x175   : > { %v415_v38 = vsub.f32 %v2001_v37, %v405_v40 }
 0x177   : > { %v429_v41 = vmul.f32 1.442695, %v415_v38 }
 0x179   : > { %1751 = vpow2.f32 %v429_v41 }
 0x17f   : > { %v2071_v42 = vpop.eup %1751 }
 0x180   : > { %v451_v43 = vsel %vm384_vm1, %v2071_v42, 0.0 }
 0x181   : > { %452 = vadd.xlane.f32.xlu1 %v451_v43 }
 0x19a   : > { %711 = vrot.lane.b32.xlu1 %v2084_v47, %s1873_s27  ;;  %v621_v37 = vpop.xlane.xlu1 %620 }
 0x19b   : > { %v643_v49 = vsub.f32 %v2009_v44, %v621_v37 }
 0x19d   : > { %v651_v51 = vmul.f32 1.442695, %v643_v49 }
 0x19f   : > { %1753 = vpow2.f32 %v651_v51 }
 0x1a1   : > { %v435_v56 = vpop.xlane.xlu0 %434 }
 0x1a2   : > { %v624_v52 = vpop.xlane.xlu2 %623 }
 0x1a3   : > { %v644_v53 = vsub.f32 %v2015_v50, %v624_v52 }
 0x1a5   : > { %v2091_v54 = vpop.eup %1753  ;;  %v653_v58 = vmul.f32 1.442695, %v644_v53 }
 0x1a6   : > { %v667_v59 = vsel %vm384_vm1, %v2091_v54, 0.0 }
 0x1a7   : > { %1755 = vpow2.f32 %v653_v58  ;;  %668 = vadd.xlane.f32.xlu2 %v667_v59 }
 0x1a8   : > { %1757 = vrcp.f32 %v435_v56 }
 0x1a9   : > { %v438_v60 = vpop.xlane.xlu1 %437 }
 0x1aa   : > { %1759 = vrcp.f32 %v438_v60  ;;  %v627_v61 = vpop.xlane.xlu2 %626 }
 0x1ab   : > { %v645_v13 = vsub.f32 %v2023_v57, %v627_v61 }
 0x1ad   : > { %v2095_v63 = vpop.eup %1755  ;;  %v655_v17 = vmul.f32 1.442695, %v645_v13 }
 0x1ae   : > { %v1758_v44 = vpop.eup %1757  ;;  %v670_v6 = vsel %vm384_vm1, %v2095_v63, 0.0 }
 0x1af   : > { %671 = vadd.xlane.f32.xlu0 %v670_v6  ;;  %v465_v8 = vmul.f32 %v1758_v44, %v2013_v48 }
 0x1b0   : > { %v1760_v50 = vpop.eup %1759 }
 0x1b1   : > { %v466_v10 = vmul.f32 %v1760_v50, %v2021_v55 }
 0x1b2   : > { %v630_v15 = vpop.xlane.xlu0 %629  ;;  %v441_v18 = vpop.xlane.xlu2 %440 }
 0x1b3   : > { %v473_v16 = vpack.c.bf16 %v466_v10, %v465_v8  ;;  %1761 = vrcp.f32 %v441_v18  ;;  %v646_v49 = vsub.f32 %v2031_v3, %v630_v15 }
 0x1b4   : > { %1763 = vpow2.f32 %v655_v17 }
 0x1b5   : > { %1611 = vmatmul.msk.bf16.vlgmr.msra.gmra.mxu1 %vm384_vm1, %v473_v16  ;;  %v657_v53 = vmul.f32 1.442695, %v646_v49 }
 0x1b9   : > { %v1762_v20 = vpop.eup %1761 }
 0x1ba   : > { %v444_v19 = vpop.xlane.xlu0 %443  ;;  %v2105_v21 = vpop.eup %1763  ;;  %v467_v57 = vmul.f32 %v1762_v20, %v2029_v62  ;;  %v1718_v20 = vld [vmem:[%s2470_s3 + $0x8] sm:$0xff] }
 0x1bb   : > { %1765 = vrcp.f32 %v444_v19  ;;  %v673_v30 = vsel %vm384_vm1, %v2105_v21, 0.0 }
 0x1bf   : > { %715 = vrot.lane.b32.xlu2 %v2076_v45, %s1873_s27 }
 0x1c1   : > { %v1766_v48 = vpop.eup %1765 }
 0x1c2   : > { %v633_v55 = vpop.xlane.xlu0 %632  ;;  %v636_v23 = vpop.xlane.xlu1 %635  ;;  %v468_v28 = vmul.f32 %v1766_v48, %v2037_v12  ;;  %v1717_v48 = vld [vmem:[%s2470_s3] sm:$0xff] }
 0x1c3   : > { %v648_v29 = vsub.f32 %v2045_v22, %v636_v23  ;;  %713 = vrot.lane.b32.xlu0 %v2080_v46, %s1873_s27  ;;  %v647_v43 = vsub.f32 %v2039_v14, %v633_v55 }
 0x1c4   : > { %674 = vadd.xlane.f32.xlu1 %v673_v30  ;;  %v474_v31 = vpack.c.bf16 %v468_v28, %v467_v57 }
 0x1c5   : > { %v661_v32 = vmul.f32 1.442695, %v648_v29  ;;  %v659_v37 = vmul.f32 1.442695, %v647_v43 }
 0x1c6   : > { %1612 = vmatmul.msk.bf16.gmra.mxu1 %vm384_vm1, %v474_v31 }
 0x1c7   : > { %1767 = vpow2.f32 %v661_v32 }
 0x1ca   : > { %v447_v33 = vpop.xlane.xlu0 %446  ;;  %v450_v35 = vpop.xlane.xlu1 %449 }
 0x1cb   : > { %1769 = vrcp.f32 %v447_v33  ;;  %v639_v56 = vpop.xlane.xlu2 %638 }
 0x1cc   : > { %1771 = vrcp.f32 %v450_v35 }
 0x1cd   : > { %v2115_v62 = vpop.eup %1767  ;;  %1773 = vpow2.f32 %v659_v37 }
 0x1ce   : > { %v682_v12 = vsel %vm384_vm1, %v2115_v62, 0.0  ;;  %1775 = vpow2.f32 %v657_v53 }
 0x1cf   : > { %683 = vadd.xlane.f32.xlu1 %v682_v12 }
 0x1d1   : > { %v1770_v22 = vpop.eup %1769 }
 0x1d2   : > { %v1772_v39 = vpop.eup %1771  ;;  %v469_v40 = vmul.f32 %v1770_v22, %v2049_v24  ;;  %v642_v51 = vpop.xlane.xlu0 %641  ;;  %v649_v24 = vsub.f32 %v2053_v27, %v639_v56 }
 0x1d3   : > { %v470_v38 = vmul.f32 %v1772_v39, %v2051_v25  ;;  %v650_v52 = vsub.f32 %v2062_v34, %v642_v51  ;;  %v2126_v59 = vpop.eup %1773 }
 0x1d4   : > { %v663_v25 = vmul.f32 1.442695, %v649_v24  ;;  %v679_v14 = vsel %vm384_vm1, %v2126_v59, 0.0  ;;  %v2130_v60 = vpop.eup %1775 }
 0x1d5   : > { %v475_v41 = vpack.c.bf16 %v470_v38, %v469_v40  ;;  %v665_v58 = vmul.f32 1.442695, %v650_v52  ;;  %v676_v27 = vsel %vm384_vm1, %v2130_v60, 0.0 }
 0x1d7   : > { %1613 = vmatmul.msk.bf16.gmra.mxu1 %vm384_vm1, %v475_v41  ;;  %1777 = vpow2.f32 %v665_v58 }
 0x1d8   : > { %1779 = vpow2.f32 %v663_v25 }
 0x1d9   : > { %v456_v61 = vpop.xlane.xlu2 %455 }
 0x1da   : > { %1781 = vrcp.f32 %v456_v61 }
 0x1dd   : > { %v2134_v3 = vpop.eup %1777 }
 0x1de   : > { %v688_v34 = vsel %vm384_vm1, %v2134_v3, 0.0  ;;  %v2140_v44 = vpop.eup %1779 }
 0x1df   : > { %v685_v50 = vsel %vm384_vm1, %v2140_v44, 0.0 }
 0x1e0   : > { %v1782_v8 = vpop.eup %1781 }
 0x1e1   : > { %v472_v15 = vmul.f32 %v1782_v8, %v2066_v36  ;;  %v1720_v8 = vld [vmem:[%s2470_s3 + $0x18] sm:$0xff] }
 0x1e2   : > { %803 = vmatpush.bf16.msrb.mxu1 %v1720_v8 }
 0x1e8   : > { %680 = vadd.xlane.f32.xlu2 %v679_v14  ;;  %1177 = vrot.lane.b32.xlu1 %v1927_v0, %s1874_s6 }
 0x1ed   : > { %677 = vadd.xlane.f32.xlu0 %v676_v27 }
 0x1f0   : > { %689 = vadd.xlane.f32.xlu2 %v688_v34  ;;  %1173 = vrot.lane.b32.xlu1 %v1929_v1, %s1874_s6 }
 0x1f4   : > { %v453_v6 = vpop.xlane.xlu1 %452 }
 0x1f5   : > { %1783 = vrcp.f32 %v453_v6  ;;  %686 = vadd.xlane.f32.xlu0 %v685_v50 }
 0x1f8   : > { %887 = vrot.lane.b32.xlu1 %v1943_v5, %s1875_s7 }
 0x1fb   : > { %v1784_v10 = vpop.eup %1783 }
 0x1fc   : > { %v471_v13 = vmul.f32 %v1784_v10, %v2071_v42 }
 0x1fe   : > { %v476_v16 = vpack.c.bf16 %v472_v15, %v471_v13  ;;  %v1719_v13 = vld [vmem:[%s2470_s3 + $0x10] sm:$0xff] }
 0x1ff   : > { %804 = vmatpush.bf16.msrb.mxu1 %v1719_v13 }
 0x200   : > { %1614 = vmatmul.msk.bf16.gmra.mxu1 %vm384_vm1, %v476_v16  ;;  %1165 = vrot.lane.b32.xlu1 %v1947_v7, %s1874_s6 }
 0x208   : > { %1175 = vrot.lane.b32.xlu2 %v1941_v4, %s1874_s6  ;;  %883 = vrot.lane.b32.xlu1 %v1957_v9, %s1875_s7 }
 0x209   : > { %893 = vrot.lane.b32.xlu0 %v1927_v0, %s1875_s7 }
 0x20c   : > { %v712_v42 = vpop.permute.xlu1 %711 }
 0x210   : > { %889 = vrot.lane.b32.xlu2 %v1929_v1, %s1875_s7 }
 0x211   : > { %891 = vrot.lane.b32.xlu0 %v1941_v4, %s1875_s7 }
 0x218   : > { %1163 = vrot.lane.b32.xlu2 %v1931_v2, %s1874_s6 }
 0x219   : > { %1171 = vrot.lane.b32.xlu0 %v1943_v5, %s1874_s6 }
 0x21a   : > { %v669_v36 = vpop.xlane.xlu2 %668 }
 0x220   : > { %881 = vrot.lane.b32.xlu2 %v1947_v7, %s1875_s7 }
 0x221   : > { %879 = vrot.lane.b32.xlu0 %v1931_v2, %s1875_s7 }
 0x222   : > { %v716_v0 = vpop.permute.xlu2 %715  ;;  %v672_v1 = vpop.xlane.xlu0 %671 }
 0x223   : > { %740 = vmatpush.bf16.msra.mxu3 %v716_v0  ;;  %1785 = vrcp.f32 %v672_v1 }
 0x224   : > { %1787 = vrcp.f32 %v669_v36 }
 0x228   : > { %1169 = vrot.lane.b32.xlu2 %v1965_v11, %s1874_s6 }
 0x229   : > { %1167 = vrot.lane.b32.xlu0 %v1957_v9, %s1874_s6  ;;  %v1786_v4 = vpop.eup %1785 }
 0x22a   : > { %v1788_v7 = vpop.eup %1787  ;;  %v700_v2 = vmul.f32 %v1786_v4, %v2095_v63 }
 0x22b   : > { %v699_v17 = vmul.f32 %v1788_v7, %v2091_v54 }
 0x22d   : > { %v707_v18 = vpack.c.bf16 %v700_v2, %v699_v17 }
 0x231   : > { %885 = vrot.lane.b32.xlu0 %v1965_v11, %s1875_s7 }
 0x232   : > { %v522_v51 = vpop.f32.mrf.mxu1 }
 0x235   : > { %v714_v5 = vpop.permute.xlu0 %713 }
 0x236   : > { %741 = vmatpush.bf16.msra.mxu3 %v714_v5 }
 0x237   : > { %v675_v9 = vpop.xlane.xlu1 %674 }
 0x238   : > { %1789 = vrcp.f32 %v675_v9 }
 0x23a   : > { %742 = vmatpush.bf16.msra.mxu3 %v712_v42  ;;  %v524_v27 = vpop.f32.mrf.mxu1 }
 0x23b   : > { %v542_v50 = vpack.c.bf16 %v524_v27, %v522_v51 }
 0x23d   : > { %1619 = vmatmul.msk.bf16.vlgmr.msra.gmra.mxu3 %vm384_vm1, %v707_v18 }
 0x23e   : > { %856 = vmatpush.bf16.msrb.mxu3 %v1718_v20  ;;  %v1790_v57 = vpop.eup %1789 }
 0x23f   : > { %v701_v29 = vmul.f32 %v1790_v57, %v2105_v21 }
 0x242   : > { %v684_v19 = vpop.xlane.xlu1 %683  ;;  %857 = vmatpush.bf16.msrb.mxu3 %v1717_v48 }
 0x243   : > { %v527_v6 = vpop.f32.mrf.mxu1 }
 0x24b   : > { %v529_v10 = vpop.f32.mrf.mxu1 }
 0x24c   : > { %v543_v16 = vpack.c.bf16 %v529_v10, %v527_v6 }
 0x254   : > { %v532_v36 = vpop.f32.mrf.mxu1 }
 0x25a   : > { %v1178_v63 = vpop.permute.xlu1 %1177 }
 0x25b   : > { %v681_v11 = vpop.xlane.xlu2 %680  ;;  %v1201_v55 = vsel %vm330_vm0, %v1178_v63, 0 }
 0x25c   : > { %1207 = vmatpush.bf16.xpose.msra.mxu3 %v1201_v55  ;;  %v534_v1 = vpop.f32.mrf.mxu1 }
 0x25d   : > { %v544_v5 = vpack.c.bf16 %v534_v1, %v532_v36 }
 0x260   : > { %v678_v54 = vpop.xlane.xlu0 %677 }
 0x261   : > { %1791 = vrcp.f32 %v678_v54 }
 0x262   : > { %1793 = vrcp.f32 %v681_v11  ;;  %v1174_v35 = vpop.permute.xlu1 %1173 }
 0x263   : > { %v690_v23 = vpop.xlane.xlu2 %689  ;;  %1795 = vrcp.f32 %v684_v19  ;;  %v1195_v12 = vsel %vm330_vm0, %v1174_v35, 0 }
 0x267   : > { %v1792_v28 = vpop.eup %1791 }
 0x268   : > { %v702_v30 = vmul.f32 %v1792_v28, %v2130_v60  ;;  %v1794_v22 = vpop.eup %1793  ;;  %v687_v39 = vpop.xlane.xlu0 %686 }
 0x269   : > { %v1796_v40 = vpop.eup %1795  ;;  %v703_v21 = vmul.f32 %v1794_v22, %v2126_v59  ;;  %1797 = vrcp.f32 %v687_v39 }
 0x26a   : > { %v708_v31 = vpack.c.bf16 %v702_v30, %v701_v29  ;;  %v704_v38 = vmul.f32 %v1796_v40, %v2115_v62  ;;  %1799 = vrcp.f32 %v690_v23  ;;  %v888_v34 = vpop.permute.xlu1 %887 }
 0x26b   : > { %v1176_v32 = vpop.permute.xlu2 %1175  ;;  %v908_v61 = vsel %vm330_vm0, %v888_v34, 0 }
 0x26c   : > { %1620 = vmatmul.msk.bf16.gmra.mxu3 %vm384_vm1, %v708_v31  ;;  %v1198_v33 = vsel %vm330_vm0, %v1176_v32, 0  ;;  %v709_v41 = vpack.c.bf16 %v704_v38, %v703_v21 }
 0x26d   : > { %1208 = vmatpush.bf16.xpose.msra.mxu3 %v1198_v33 }
 0x26f   : > { %v1798_v49 = vpop.eup %1797 }
 0x270   : > { %v1800_v56 = vpop.eup %1799  ;;  %v705_v58 = vmul.f32 %v1798_v49, %v2140_v44 }
 0x271   : > { %v706_v62 = vmul.f32 %v1800_v56, %v2134_v3 }
 0x272   : > { %v1166_v0 = vpop.permute.xlu1 %1165 }
 0x273   : > { %v890_v24 = vpop.permute.xlu2 %889  ;;  %v710_v59 = vpack.c.bf16 %v706_v62, %v705_v58 }
 0x274   : > { %v911_v25 = vsel %vm330_vm0, %v890_v24, 0 }
 0x275   : > { %1209 = vmatpush.bf16.xpose.msra.mxu3 %v1195_v12 }
 0x27a   : > { %v884_v4 = vpop.permute.xlu1 %883 }
 0x27b   : > { %v894_v43 = vpop.permute.xlu0 %893  ;;  %v1164_v3 = vpop.permute.xlu2 %1163 }
 0x27c   : > { %1621 = vmatmul.msk.bf16.gmra.mxu3 %vm384_vm1, %v709_v41  ;;  %v917_v37 = vsel %vm330_vm0, %v894_v43, 0 }
 0x27d   : > { %923 = vmatpush.bf16.xpose.msrb.mxu0 %v917_v37  ;;  %v537_v7 = vpop.f32.mrf.mxu1 }
 0x283   : > { %v892_v52 = vpop.permute.xlu0 %891  ;;  %v882_v15 = vpop.permute.xlu2 %881 }
 0x284   : > { %v914_v53 = vsel %vm330_vm0, %v892_v52, 0 }
 0x285   : > { %924 = vmatpush.bf16.xpose.msrb.mxu0 %v914_v53  ;;  %v539_v17 = vpop.f32.mrf.mxu1 }
 0x286   : > { %v545_v20 = vpack.c.bf16 %v539_v17, %v537_v7 }
 0x28b   : > { %v1172_v14 = vpop.permute.xlu0 %1171  ;;  %v1170_v57 = vpop.permute.xlu2 %1169 }
 0x28c   : > { %1622 = vmatmul.msk.bf16.gmra.mxu3 %vm384_vm1, %v710_v59  ;;  %v1192_v60 = vsel %vm330_vm0, %v1172_v14, 0 }
 0x28d   : > { %925 = vmatpush.bf16.xpose.msrb.mxu0 %v911_v25  ;;  %1210 = vmatpush.bf16.xpose.msra.mxu3 %v1192_v60 }
 0x293   : > { %v880_v44 = vpop.permute.xlu0 %879 }
 0x295   : > { %926 = vmatpush.bf16.xpose.msrb.mxu0 %v908_v61 }
 0x29b   : > { %v1168_v2 = vpop.permute.xlu0 %1167 }
 0x29c   : > { %1647 = vmatmul.msk.bf16.vlgmr.msrb.gmra.mxu3 %vm330_vm0, %v542_v50  ;;  %1651 = vmatmul.msk.bf16.vlgmr.msrb.gmra.mxu0 %vm330_vm0, %v880_v44 }
 0x2a3   : > { %v886_v19 = vpop.permute.xlu0 %885 }
 0x2ac   : > { %1648 = vmatmul.msk.bf16.gmra.mxu3 %vm330_vm0, %v543_v16  ;;  %1652 = vmatmul.msk.bf16.gmra.mxu0 %vm330_vm0, %v882_v15 }
 0x2bc   : > { %1649 = vmatmul.msk.bf16.gmra.mxu3 %vm330_vm0, %v544_v5  ;;  %1653 = vmatmul.msk.bf16.gmra.mxu0 %vm330_vm0, %v884_v4 }
 0x2c0   : > { %v744_v42 = vpop.f32.mrf.mxu3 }
 0x2c8   : > { %v746_v18 = vpop.f32.mrf.mxu3 }
 0x2c9   : > { %v764_v9 = vpack.c.bf16 %v746_v18, %v744_v42 }
 0x2cb   : > { %1635 = vmatmul.msk.bf16.vlgmr.msrb.gmra.mxu1 %vm330_vm0, %v764_v9 }
 0x2cc   : > { %1650 = vmatmul.msk.bf16.gmra.mxu3 %vm330_vm0, %v545_v20  ;;  %1654 = vmatmul.msk.bf16.gmra.mxu0 %vm330_vm0, %v886_v19 }
 0x2dc   : > { %1675 = vmatmul.msk.bf16.vlgmr.msra.gmra.mxu3 %vm330_vm0, %v1164_v3 }
 0x2ec   : > { %1676 = vmatmul.msk.bf16.gmra.mxu3 %vm330_vm0, %v1166_v0 }
 0x2ef   : > { %v749_v11 = vpop.f32.mrf.mxu3 }
 0x2f7   : > { %v751_v48 = vpop.f32.mrf.mxu3 }
 0x2f8   : > { %v765_v63 = vpack.c.bf16 %v751_v48, %v749_v11 }
 0x2fa   : > { %1636 = vmatmul.msk.bf16.gmra.mxu1 %vm330_vm0, %v765_v63 }
 0x2fc   : > { %1677 = vmatmul.msk.bf16.gmra.mxu3 %vm330_vm0, %v1168_v2 }
 0x2ff   : > { %v754_v55 = vpop.f32.mrf.mxu3 }
 0x307   : > { %v756_v54 = vpop.f32.mrf.mxu3 }
 0x308   : > { %v766_v23 = vpack.c.bf16 %v756_v54, %v754_v55 }
 0x30a   : > { %1637 = vmatmul.msk.bf16.gmra.mxu1 %vm330_vm0, %v766_v23 }
 0x30c   : > { %1678 = vmatmul.msk.bf16.gmra.mxu3 %vm330_vm0, %v1170_v57 }
 0x30f   : > { %v759_v28 = vpop.f32.mrf.mxu3 }
 0x317   : > { %v761_v29 = vpop.f32.mrf.mxu3 }
 0x318   : > { %v767_v30 = vpack.c.bf16 %v761_v29, %v759_v28 }
 0x319   : > { %v928_v31 = vpop.f32.mrf.mxu0 }
 0x31a   : > { %1638 = vmatmul.msk.bf16.gmra.mxu1 %vm330_vm0, %v767_v30  ;;  %v948_v32 = vsel %vm384_vm1, %v928_v31, -inf }
 0x31b   : > { %949 = vmax.xlane.f32.xlu1 %v948_v32 }
 0x31f   : > { %v2226_v33 = vpop.f32.mrf.mxu3 }
 0x321   : > { %v930_v35 = vpop.f32.mrf.mxu0 }
 0x322   : > { %v951_v12 = vsel %vm384_vm1, %v930_v35, -inf }
 0x323   : > { %952 = vmax.xlane.f32.xlu2 %v951_v12 }
 0x327   : > { %v2229_v22 = vpop.f32.mrf.mxu3 }
 0x329   : > { %v2231_v39 = vpop.f32.mrf.mxu0 }
 0x32a   : > { %v954_v40 = vsel %vm384_vm1, %v2231_v39, -inf }
 0x32b   : > { %955 = vmax.xlane.f32.xlu2 %v954_v40 }
 0x32f   : > { %v2235_v21 = vpop.f32.mrf.mxu3 }
 0x331   : > { %v2237_v38 = vpop.f32.mrf.mxu0 }
 0x332   : > { %v957_v41 = vsel %vm384_vm1, %v2237_v38, -inf }
 0x333   : > { %958 = vmax.xlane.f32.xlu0 %v957_v41 }
 0x337   : > { %v2241_v43 = vpop.f32.mrf.mxu3 }
 0x339   : > { %v2243_v37 = vpop.f32.mrf.mxu0 }
 0x33a   : > { %v960_v49 = vsel %vm384_vm1, %v2243_v37, -inf }
 0x33b   : > { %961 = vmax.xlane.f32.xlu0 %v960_v49 }
 0x33f   : > { %v2247_v51 = vpop.f32.mrf.mxu3 }
 0x341   : > { %v2249_v52 = vpop.f32.mrf.mxu0 }
 0x342   : > { %v963_v53 = vsel %vm384_vm1, %v2249_v52, -inf }
 0x343   : > { %964 = vmax.xlane.f32.xlu1 %v963_v53 }
 0x347   : > { %v2253_v56 = vpop.f32.mrf.mxu3 }
 0x349   : > { %v2255_v58 = vpop.f32.mrf.mxu0 }
 0x34a   : > { %v966_v24 = vsel %vm384_vm1, %v2255_v58, -inf }
 0x34b   : > { %967 = vmax.xlane.f32.xlu1 %v966_v24 }
 0x34f   : > { %v2259_v62 = vpop.f32.mrf.mxu3  ;;  %1046 = vrot.lane.b32.xlu0 %v1990_v26, %s1875_s7 }
 0x351   : > { %v2263_v59 = vpop.f32.mrf.mxu0 }
 0x352   : > { %v969_v25 = vsel %vm384_vm1, %v2263_v59, -inf }
 0x353   : > { %970 = vmax.xlane.f32.xlu2 %v969_v25 }
 0x357   : > { %v2267_v14 = vpop.f32.mrf.mxu3 }
 0x35f   : > { %v2269_v60 = vpop.f32.mrf.mxu3 }
 0x360   : > { %v1232_v11 = vsel %vm384_vm1, %v2269_v60, -inf }
 0x364   : > { %1330 = vrot.lane.b32.xlu1 %v1990_v26, %s1874_s6 }
 0x367   : > { %v1214_v27 = vpop.f32.mrf.mxu3 }
 0x368   : > { %v1235_v44 = vsel %vm384_vm1, %v1214_v27, -inf }
 0x36f   : > { %v2273_v34 = vpop.f32.mrf.mxu3 }
 0x370   : > { %v1238_v13 = vsel %vm384_vm1, %v2273_v34, -inf }
 0x377   : > { %v2275_v61 = vpop.f32.mrf.mxu3 }
 0x378   : > { %v1241_v20 = vsel %vm384_vm1, %v2275_v61, -inf }
 0x37f   : > { %v2277_v6 = vpop.f32.mrf.mxu3 }
 0x387   : > { %v2280_v3 = vpop.f32.mrf.mxu3 }
 0x388   : > { %v1247_v48 = vsel %vm384_vm1, %v2280_v3, -inf }
 0x38e   : > { %v950_v50 = vpop.xlane.xlu1 %949  ;;  %1236 = vmax.xlane.f32.xlu1 %v1235_v44 }
 0x38f   : > { %v972_v8 = vsub.f32 %v928_v31, %v950_v50  ;;  %v2284_v16 = vpop.f32.mrf.mxu3 }
 0x390   : > { %v1250_v4 = vsel %vm384_vm1, %v2284_v16, -inf }
 0x391   : > { %v980_v10 = vmul.f32 1.442695, %v972_v8 }
 0x393   : > { %1801 = vpow2.f32 %v980_v10 }
 0x396   : > { %1239 = vmax.xlane.f32.xlu1 %v1238_v13  ;;  %v953_v26 = vpop.xlane.xlu2 %952 }
 0x397   : > { %v973_v15 = vsub.f32 %v930_v35, %v953_v26  ;;  %v2308_v63 = vpop.f32.mrf.mxu3 }
 0x398   : > { %v1253_v55 = vsel %vm384_vm1, %v2308_v63, -inf }
 0x399   : > { %v1802_v36 = vpop.eup %1801  ;;  %v982_v0 = vmul.f32 1.442695, %v973_v15 }
 0x39a   : > { %v996_v1 = vsel %vm384_vm1, %v1802_v36, 0.0 }
 0x39b   : > { %1803 = vpow2.f32 %v982_v0  ;;  %997 = vadd.xlane.f32.xlu2 %v996_v1 }
 0x39e   : > { %1251 = vmax.xlane.f32.xlu1 %v1250_v4  ;;  %v956_v54 = vpop.xlane.xlu2 %955 }
 0x39f   : > { %v974_v49 = vsub.f32 %v2231_v39, %v956_v54 }
 0x3a1   : > { %v1804_v5 = vpop.eup %1803 }
 0x3a2   : > { %v999_v7 = vsel %vm384_vm1, %v1804_v5, 0.0 }
 0x3a3   : > { %1000 = vadd.xlane.f32.xlu0 %v999_v7 }
 0x3a6   : > { %v2294_v2 = vpop.xlane.xlu0 %958 }
 0x3ae   : > { %v2296_v42 = vpop.xlane.xlu0 %961 }
 0x3b3   : > { %1044 = vrot.lane.b32.xlu2 %v2076_v45, %s1875_s7 }
 0x3b6   : > { %v965_v17 = vpop.xlane.xlu1 %964 }
 0x3b7   : > { %1328 = vrot.lane.b32.xlu0 %v2076_v45, %s1874_s6  ;;  %v1244_v45 = vsel %vm384_vm1, %v2277_v6, -inf  ;;  %v977_v0 = vsub.f32 %v2249_v52, %v965_v17 }
 0x3b9   : > { %v990_v7 = vmul.f32 1.442695, %v977_v0 }
 0x3be   : > { %v2298_v9 = vpop.xlane.xlu1 %967 }
 0x3c1   : > { %v1047_v18 = vpop.permute.xlu0 %1046 }
 0x3c2   : > { %1068 = vmatpush.bf16.msrb.mxu2 %v1047_v18 }
 0x3c6   : > { %v971_v29 = vpop.xlane.xlu2 %970 }
 0x3d6   : > { %v1331_v19 = vpop.permute.xlu1 %1330 }
 0x3d7   : > { %1352 = vmatpush.bf16.msra.mxu0 %v1331_v19 }
 0x3dc   : > { %1242 = vmax.xlane.f32.xlu2 %v1241_v20  ;;  %v978_v20 = vsub.f32 %v2255_v58, %v2298_v9 }
 0x3e1   : > { %1233 = vmax.xlane.f32.xlu0 %v1232_v11 }
 0x3e4   : > { %1245 = vmax.xlane.f32.xlu2 %v1244_v45 }
 0x3e9   : > { %1248 = vmax.xlane.f32.xlu0 %v1247_v48 }
 0x3ec   : > { %1254 = vmax.xlane.f32.xlu2 %v1253_v55 }
 0x3fd   : > { %1326 = vrot.lane.b32.xlu0 %v2080_v46, %s1874_s6 }
 0x401   : > { %v1237_v23 = vpop.xlane.xlu1 %1236 }
 0x402   : > { %v1257_v57 = vsub.f32 %v1214_v27, %v1237_v23  ;;  %v984_v27 = vmul.f32 1.442695, %v974_v49  ;;  %v975_v49 = vsub.f32 %v2237_v38, %v2294_v2 }
 0x404   : > { %v1266_v28 = vmul.f32 1.442695, %v1257_v57 }
 0x405   : > { %1324 = vrot.lane.b32.xlu0 %v2084_v47, %s1874_s6  ;;  %s2439_s6 = scalar_lea.vmem %s2472_s5, %s1704_s26 }
 0x406   : > { %1805 = vpow2.f32 %v1266_v28 }
 0x409   : > { %v1240_v39 = vpop.xlane.xlu1 %1239 }
 0x40a   : > { %v1258_v10 = vsub.f32 %v2273_v34, %v1240_v39 }
 0x40c   : > { %v2316_v30 = vpop.eup %1805  ;;  %v1268_v13 = vmul.f32 1.442695, %v1258_v10 }
 0x40d   : > { %v1283_v31 = vsel %vm384_vm1, %v2316_v30, 0.0 }
 0x40e   : > { %1284 = vadd.xlane.f32.xlu2 %v1283_v31  ;;  %v998_v32 = vpop.xlane.xlu2 %997 }
 0x40f   : > { %1807 = vrcp.f32 %v998_v32 }
 0x415   : > { %v1808_v40 = vpop.eup %1807 }
 0x416   : > { %v1001_v35 = vpop.xlane.xlu0 %1000  ;;  %v1045_v12 = vpop.permute.xlu2 %1044  ;;  %v2321_v53 = vmul.f32 %v1808_v40, %v1802_v36 }
 0x417   : > { %1809 = vrcp.f32 %v1001_v35  ;;  %1069 = vmatpush.bf16.msrb.mxu2 %v1045_v12 }
 0x418   : > { %1811 = vpow2.f32 %v984_v27  ;;  %v986_v27 = vmul.f32 1.442695, %v975_v49 }
 0x419   : > { %1813 = vpow2.f32 %v1268_v13 }
 0x41d   : > { %v1810_v41 = vpop.eup %1809 }
 0x41e   : > { %v2323_v24 = vmul.f32 %v1810_v41, %v1804_v5  ;;  %v2329_v50 = vpop.eup %1811 }
 0x41f   : > { %v1002_v8 = vsel %vm384_vm1, %v2329_v50, 0.0  ;;  %v2334_v26 = vpop.eup %1813 }
 0x420   : > { %v1036_v25 = vpack.c.bf16 %v2323_v24, %v2321_v53  ;;  %v1286_v15 = vsel %vm384_vm1, %v2334_v26, 0.0 }
 0x426   : > { %1040 = vrot.lane.b32.xlu2 %v2084_v47, %s1875_s7 }
 0x429   : > { %v1329_v44 = vpop.permute.xlu0 %1328 }
 0x42a   : > { %1353 = vmatpush.bf16.msra.mxu0 %v1329_v44  ;;  %v976_v44 = vsub.f32 %v2243_v37, %v2296_v42 }
 0x42f   : > { %1003 = vadd.xlane.f32.xlu0 %v1002_v8  ;;  %v988_v8 = vmul.f32 1.442695, %v976_v44 }
 0x44f   : > { %1287 = vadd.xlane.f32.xlu2 %v1286_v15  ;;  %v1243_v47 = vpop.xlane.xlu2 %1242 }
 0x450   : > { %v1259_v36 = vsub.f32 %v2275_v61, %v1243_v47  ;;  %v979_v61 = vsub.f32 %v2263_v59, %v971_v29  ;;  %v1252_v47 = vpop.xlane.xlu1 %1251 }
 0x452   : > { %v1270_v1 = vmul.f32 1.442695, %v1259_v36  ;;  %v994_v45 = vmul.f32 1.442695, %v979_v61 }
 0x454   : > { %1815 = vpow2.f32 %v1270_v1  ;;  %v1234_v4 = vpop.xlane.xlu0 %1233 }
 0x455   : > { %v1256_v5 = vsub.f32 %v2269_v60, %v1234_v4  ;;  %v992_v60 = vmul.f32 1.442695, %v978_v20 }
 0x457   : > { %v1264_v34 = vmul.f32 1.442695, %v1256_v5  ;;  %v1246_v18 = vpop.xlane.xlu2 %1245 }
 0x458   : > { %v1260_v19 = vsub.f32 %v2277_v6, %v1246_v18 }
 0x459   : > { %1817 = vpow2.f32 %v1264_v34 }
 0x45a   : > { %v2344_v11 = vpop.eup %1815  ;;  %1819 = vpow2.f32 %v990_v7  ;;  %v1272_v52 = vmul.f32 1.442695, %v1260_v19 }
 0x45b   : > { %v1289_v17 = vsel %vm384_vm1, %v2344_v11, 0.0 }
 0x45c   : > { %1821 = vpow2.f32 %v1272_v52  ;;  %1290 = vadd.xlane.f32.xlu0 %v1289_v17  ;;  %v1249_v29 = vpop.xlane.xlu0 %1248 }
 0x45d   : > { %1823 = vpow2.f32 %v992_v60  ;;  %v1261_v10 = vsub.f32 %v2280_v3, %v1249_v29 }
 0x45e   : > { %1825 = vpow2.f32 %v994_v45 }
 0x45f   : > { %v2349_v48 = vpop.eup %1817  ;;  %v1255_v6 = vpop.xlane.xlu2 %1254  ;;  %v1274_v15 = vmul.f32 1.442695, %v1261_v10 }
 0x460   : > { %v2351_v55 = vpop.eup %1819  ;;  %v1280_v58 = vsel %vm384_vm1, %v2349_v48, 0.0  ;;  %v1263_v59 = vsub.f32 %v2308_v63, %v1255_v6 }
 0x461   : > { %1281 = vadd.xlane.f32.xlu1 %v1280_v58  ;;  %v1011_v54 = vsel %vm384_vm1, %v2351_v55, 0.0 }
 0x462   : > { %v2355_v9 = vpop.eup %1821  ;;  %v1278_v57 = vmul.f32 1.442695, %v1263_v59 }
 0x463   : > { %v1292_v23 = vsel %vm384_vm1, %v2355_v9, 0.0  ;;  %v2362_v28 = vpop.eup %1823 }
 0x464   : > { %1012 = vadd.xlane.f32.xlu0 %v1011_v54  ;;  %1293 = vadd.xlane.f32.xlu2 %v1292_v23  ;;  %v2364_v31 = vpop.eup %1825  ;;  %1827 = vpow2.f32 %v1278_v57  ;;  %v1014_v32 = vsel %vm384_vm1, %v2362_v28, 0.0 }
 0x465   : > { %v1017_v63 = vsel %vm384_vm1, %v2364_v31, 0.0  ;;  %1829 = vpow2.f32 %v986_v27 }
 0x466   : > { %1831 = vpow2.f32 %v988_v8 }
 0x467   : > { %1833 = vpow2.f32 %v1274_v15 }
 0x46a   : > { %v2370_v12 = vpop.eup %1827 }
 0x46b   : > { %v1301_v40 = vsel %vm384_vm1, %v2370_v12, 0.0  ;;  %v1830_v39 = vpop.eup %1829 }
 0x46c   : > { %1015 = vadd.xlane.f32.xlu0 %v1014_v32  ;;  %1018 = vadd.xlane.f32.xlu2 %v1017_v63  ;;  %v1005_v13 = vsel %vm384_vm1, %v1830_v39, 0.0  ;;  %v1832_v36 = vpop.eup %1831 }
 0x46d   : > { %v1008_v38 = vsel %vm384_vm1, %v1832_v36, 0.0  ;;  %v1834_v0 = vpop.eup %1833 }
 0x46e   : > { %v1295_v37 = vsel %vm384_vm1, %v1834_v0, 0.0 }
 0x46f   : > { %v1327_v35 = vpop.permute.xlu0 %1326 }
 0x470   : > { %1354 = vmatpush.bf16.msra.mxu0 %v1327_v35 }
 0x474   : > { %1302 = vadd.xlane.f32.xlu0 %v1301_v40 }
 0x477   : > { %v1325_v41 = vpop.permute.xlu0 %1324 }
 0x478   : > { %1355 = vmatpush.bf16.msra.mxu0 %v1325_v41 }
 0x47a   : > { %1042 = vrot.lane.b32.xlu1 %v2080_v46, %s1875_s7  ;;  %v1262_v46 = vsub.f32 %v2284_v16, %v1252_v47 }
 0x47c   : > { %v1276_v2 = vmul.f32 1.442695, %v1262_v46 }
 0x47e   : > { %1835 = vpow2.f32 %v1276_v2  ;;  %v1724_v2 = vld [vmem:[%s2470_s3 + $0x38] sm:$0xff] }
 0x481   : > { %v1285_v1 = vpop.xlane.xlu2 %1284 }
 0x482   : > { %1837 = vrcp.f32 %v1285_v1 }
 0x484   : > { %v2385_v42 = vpop.eup %1835 }
 0x485   : > { %v1298_v3 = vsel %vm384_vm1, %v2385_v42, 0.0 }
 0x488   : > { %v1838_v7 = vpop.eup %1837 }
 0x489   : > { %v1041_v5 = vpop.permute.xlu2 %1040  ;;  %v1313_v18 = vmul.f32 %v1838_v7, %v2316_v30 }
 0x4a2   : > { %v1004_v16 = vpop.xlane.xlu0 %1003 }
 0x4a4   : > { %1006 = vadd.xlane.f32.xlu1 %v1005_v13 }
 0x4ac   : > { %1009 = vadd.xlane.f32.xlu1 %v1008_v38 }
 0x4b4   : > { %1296 = vadd.xlane.f32.xlu1 %v1295_v37 }
 0x4bc   : > { %1299 = vadd.xlane.f32.xlu1 %v1298_v3 }
 0x4c2   : > { %v1288_v52 = vpop.xlane.xlu2 %1287 }
 0x4cf   : > { %v1291_v20 = vpop.xlane.xlu0 %1290 }
 0x4d4   : > { %v1282_v4 = vpop.xlane.xlu1 %1281 }
 0x4d5   : > { %1839 = vrcp.f32 %v1282_v4 }
 0x4d6   : > { %1841 = vrcp.f32 %v1291_v20 }
 0x4d7   : > { %1843 = vrcp.f32 %v1288_v52  ;;  %v1013_v23 = vpop.xlane.xlu0 %1012  ;;  %v1294_v32 = vpop.xlane.xlu2 %1293 }
 0x4d8   : > { %1845 = vrcp.f32 %v1004_v16 }
 0x4db   : > { %v1840_v34 = vpop.eup %1839 }
 0x4dc   : > { %v1312_v19 = vmul.f32 %v1840_v34, %v2349_v48  ;;  %v1842_v17 = vpop.eup %1841 }
 0x4dd   : > { %v1844_v60 = vpop.eup %1843  ;;  %v1315_v45 = vmul.f32 %v1842_v17, %v2344_v11 }
 0x4de   : > { %v1320_v61 = vpack.c.bf16 %v1313_v18, %v1312_v19  ;;  %v1314_v58 = vmul.f32 %v1844_v60, %v2334_v26  ;;  %v1846_v48 = vpop.eup %1845  ;;  %v806_v60 = vpop.f32.mrf.mxu1 }
 0x4df   : > { %v1030_v57 = vmul.f32 %v1846_v48, %v2329_v50  ;;  %v1016_v24 = vpop.xlane.xlu0 %1015  ;;  %v1019_v44 = vpop.xlane.xlu2 %1018 }
 0x4e0   : > { %1679 = vmatmul.msk.bf16.vlgmr.msra.gmra.mxu0 %vm384_vm1, %v1320_v61  ;;  %v1321_v59 = vpack.c.bf16 %v1315_v45, %v1314_v58 }
 0x4e7   : > { %v1303_v13 = vpop.xlane.xlu0 %1302 }
 0x4ec   : > { %v1043_v6 = vpop.permute.xlu1 %1042 }
 0x4ed   : > { %1070 = vmatpush.bf16.msrb.mxu2 %v1043_v6 }
 0x4f0   : > { %1680 = vmatmul.msk.bf16.gmra.mxu0 %vm384_vm1, %v1321_v59  ;;  %v808_v59 = vpop.f32.mrf.mxu1 }
 0x4f1   : > { %1071 = vmatpush.bf16.msrb.mxu2 %v1041_v5 }
 0x4f4   : > { %1655 = vmatmul.msk.bf16.vlgmr.msrb.gmra.mxu2 %vm384_vm1, %v1036_v25 }
 0x4f5   : > { %1416 = vmatpush.bf16.msra.mxu2 %v1724_v2 }
 0x517   : > { %v1007_v30 = vpop.xlane.xlu1 %1006 }
 0x518   : > { %1847 = vrcp.f32 %v1007_v30 }
 0x51e   : > { %v1848_v54 = vpop.eup %1847 }
 0x51f   : > { %v1010_v11 = vpop.xlane.xlu1 %1009  ;;  %v1031_v26 = vmul.f32 %v1848_v54, %v1830_v39 }
 0x520   : > { %1849 = vrcp.f32 %v1010_v11 }
 0x521   : > { %v1037_v29 = vpack.c.bf16 %v1031_v26, %v1030_v57  ;;  %1851 = vrcp.f32 %v1013_v23  ;;  %v811_v23 = vpop.f32.mrf.mxu1 }
 0x522   : > { %1853 = vrcp.f32 %v1294_v32 }
 0x523   : > { %1656 = vmatmul.msk.bf16.gmra.mxu2 %vm384_vm1, %v1037_v29 }
 0x526   : > { %v1850_v25 = vpop.eup %1849 }
 0x527   : > { %v1297_v53 = vpop.xlane.xlu1 %1296  ;;  %v1852_v63 = vpop.eup %1851  ;;  %v1032_v40 = vmul.f32 %v1850_v25, %v1832_v36 }
 0x528   : > { %1855 = vrcp.f32 %v1297_v53  ;;  %v1854_v35 = vpop.eup %1853  ;;  %v1033_v49 = vmul.f32 %v1852_v63, %v2351_v55 }
 0x529   : > { %v1316_v50 = vmul.f32 %v1854_v35, %v2355_v9  ;;  %1857 = vrcp.f32 %v1016_v24  ;;  %v813_v32 = vpop.f32.mrf.mxu1 }
 0x52a   : > { %v1038_v39 = vpack.c.bf16 %v1033_v49, %v1032_v40  ;;  %1859 = vrcp.f32 %v1019_v44  ;;  %v860_v40 = vadd.f32 %v2226_v33, %v806_v60  ;;  %v862_v33 = vadd.f32 %v2229_v22, %v808_v59 }
 0x52b   : > { %v867_v22 = vadd.f32 %v2241_v43, %v813_v32 }
 0x52e   : > { %v1856_v41 = vpop.eup %1855 }
 0x52f   : > { %v1317_v27 = vmul.f32 %v1856_v41, %v1834_v0  ;;  %v1300_v8 = vpop.xlane.xlu1 %1299  ;;  %v1858_v15 = vpop.eup %1857 }
 0x530   : > { %1861 = vrcp.f32 %v1300_v8  ;;  %v1860_v47 = vpop.eup %1859  ;;  %v1034_v9 = vmul.f32 %v1858_v15, %v2362_v28  ;;  %v1723_v28 = vld [vmem:[%s2470_s3 + $0x30] sm:$0xff] }
 0x531   : > { %v1322_v10 = vpack.c.bf16 %v1317_v27, %v1316_v50  ;;  %1863 = vrcp.f32 %v1303_v13  ;;  %v1035_v46 = vmul.f32 %v1860_v47, %v2364_v31  ;;  %1417 = vmatpush.bf16.msra.mxu2 %v1723_v28  ;;  %v1722_v31 = vld [vmem:[%s2470_s3 + $0x28] sm:$0xff]  ;;  %v816_v24 = vpop.f32.mrf.mxu1  ;;  %v1736_v27 = vld [vmem:[%s2471_s4] ss:$0 sm:$0xff] }
 0x532   : > { %1132 = vmatpush.bf16.msra.mxu1 %v1722_v31 }
 0x533   : > { %1657 = vmatmul.msk.bf16.gmra.mxu2 %vm384_vm1, %v1038_v39  ;;  %1681 = vmatmul.msk.bf16.gmra.mxu0 %vm384_vm1, %v1322_v10  ;;  %v1039_v37 = vpack.c.bf16 %v1035_v46, %v1034_v9 }
 0x536   : > { %v1862_v36 = vpop.eup %1861 }
 0x537   : > { %v1864_v55 = vpop.eup %1863  ;;  %v1318_v38 = vmul.f32 %v1862_v36, %v2385_v42 }
 0x538   : > { %v1319_v0 = vmul.f32 %v1864_v55, %v2370_v12  ;;  %v1721_v12 = vld [vmem:[%s2470_s3 + $0x20] sm:$0xff]  ;;  %v865_v55 = vadd.f32 %v2235_v21, %v811_v23 }
 0x539   : > { %1133 = vmatpush.bf16.msra.mxu1 %v1721_v12  ;;  %v818_v25 = vpop.f32.mrf.mxu1 }
 0x53a   : > { %v1323_v3 = vpack.c.bf16 %v1319_v0, %v1318_v38  ;;  %v872_v43 = vadd.f32 %v2253_v56, %v818_v25 }
 0x541   : > { %v821_v63 = vpop.f32.mrf.mxu1 }
 0x543   : > { %1658 = vmatmul.msk.bf16.gmra.mxu2 %vm384_vm1, %v1039_v37  ;;  %1682 = vmatmul.msk.bf16.gmra.mxu0 %vm384_vm1, %v1323_v3 }
 0x549   : > { %v823_v35 = vpop.f32.mrf.mxu1 }
 0x55d   : > { %v1357_v42 = vpop.f32.mrf.mxu0 }
 0x565   : > { %v1359_v1 = vpop.f32.mrf.mxu0 }
 0x566   : > { %v1377_v4 = vpack.c.bf16 %v1359_v1, %v1357_v42  ;;  %v870_v42 = vadd.f32 %v2247_v51, %v816_v24  ;;  %v875_v51 = vadd.f32 %v2259_v62, %v821_v63 }
 0x568   : > { %1695 = vmatmul.msk.bf16.vlgmr.msra.gmra.mxu2 %vm330_vm0, %v1377_v4 }
 0x56d   : > { %v1362_v16 = vpop.f32.mrf.mxu0 }
 0x575   : > { %v1364_v5 = vpop.f32.mrf.mxu0 }
 0x576   : > { %v1378_v7 = vpack.c.bf16 %v1364_v5, %v1362_v16 }
 0x577   : > { %v1073_v34 = vpop.f32.mrf.mxu2 }
 0x578   : > { %1696 = vmatmul.msk.bf16.gmra.mxu2 %vm330_vm0, %v1378_v7 }
 0x57f   : > { %v1075_v18 = vpop.f32.mrf.mxu2 }
 0x580   : > { %v1093_v19 = vpack.c.bf16 %v1075_v18, %v1073_v34 }
 0x582   : > { %1671 = vmatmul.msk.bf16.vlgmr.msra.gmra.mxu1 %vm330_vm0, %v1093_v19 }
 0x5a6   : > { %v1078_v20 = vpop.f32.mrf.mxu2 }
 0x5ae   : > { %v1080_v61 = vpop.f32.mrf.mxu2 }
 0x5af   : > { %v1094_v52 = vpack.c.bf16 %v1080_v61, %v1078_v20 }
 0x5b0   : > { %v1367_v17 = vpop.f32.mrf.mxu0 }
 0x5b1   : > { %1672 = vmatmul.msk.bf16.gmra.mxu1 %vm330_vm0, %v1094_v52 }
 0x5b6   : > { %v1083_v45 = vpop.f32.mrf.mxu2 }
 0x5b8   : > { %v1369_v6 = vpop.f32.mrf.mxu0 }
 0x5b9   : > { %v1379_v58 = vpack.c.bf16 %v1369_v6, %v1367_v17 }
 0x5bb   : > { %1697 = vmatmul.msk.bf16.gmra.mxu2 %vm330_vm0, %v1379_v58 }
 0x5be   : > { %v1085_v30 = vpop.f32.mrf.mxu2 }
 0x5bf   : > { %v1095_v48 = vpack.c.bf16 %v1085_v30, %v1083_v45  ;;  %v877_v45 = vadd.f32 %v2267_v14, %v823_v35 }
 0x5c0   : > { %v1372_v54 = vpop.f32.mrf.mxu0 }
 0x5c1   : > { %1673 = vmatmul.msk.bf16.gmra.mxu1 %vm330_vm0, %v1095_v48 }
 0x5c6   : > { %v1088_v11 = vpop.f32.mrf.mxu2 }
 0x5c8   : > { %v1374_v57 = vpop.f32.mrf.mxu0 }
 0x5c9   : > { %v1380_v26 = vpack.c.bf16 %v1374_v57, %v1372_v54 }
 0x5cb   : > { %1698 = vmatmul.msk.bf16.gmra.mxu2 %vm330_vm0, %v1380_v26 }
 0x5ce   : > { %v1090_v29 = vpop.f32.mrf.mxu2 }
 0x5cf   : > { %v1096_v53 = vpack.c.bf16 %v1090_v29, %v1088_v11 }
 0x5d1   : > { %1674 = vmatmul.msk.bf16.gmra.mxu1 %vm330_vm0, %v1096_v53 }
 0x5eb   : > { %v1419_v41 = vpop.f32.mrf.mxu2 }
 0x5f3   : > { %v1421_v13 = vpop.f32.mrf.mxu2 }
 0x5fb   : > { %v1424_v36 = vpop.f32.mrf.mxu2 }
 0x5ff   : > { %v1135_v49 = vpop.f32.mrf.mxu1 }
 0x600   : > { %v1155_v50 = vadd.f32 %v1135_v49, %v860_v40 }
 0x602   : > { %v1439_v44 = vadd.f32 %v1419_v41, %v1155_v50 }
 0x603   : > { %v1426_v0 = vpop.f32.mrf.mxu2 }
 0x604   : > { %v1451_v8 = vadd.f32 %v1736_v27, %v1439_v44 }
 0x606   : > { %1459 = vst.msk [vmem:[%s2439_s6] sm:$0xff] %vm330_vm0, %v1451_v8 }
 0x607   : > { %v1137_v39 = vpop.f32.mrf.mxu1 }
 0x608   : > { %v1156_v10 = vadd.f32 %v1137_v39, %v862_v33 }
 0x60a   : > { %v1440_v15 = vadd.f32 %v1421_v13, %v1156_v10 }
 0x60c   : > { %v1452_v47 = vadd.f32 %v1736_v27, %v1440_v15 }
 0x60e   : > { %1460 = vst.msk [vmem:[%s2439_s6 + $0x8] sm:$0xff] %vm330_vm0, %v1452_v47 }
 0x62e   : > { %v1140_v9 = vpop.f32.mrf.mxu1 }
 0x62f   : > { %v1157_v46 = vadd.f32 %v1140_v9, %v865_v55 }
 0x631   : > { %v1441_v38 = vadd.f32 %v1424_v36, %v1157_v46 }
 0x633   : > { %v1453_v2 = vadd.f32 %v1736_v27, %v1441_v38 }
 0x635   : > { %1461 = vst.msk [vmem:[%s2439_s6 + $0x10] sm:$0xff] %vm330_vm0, %v1453_v2 }
 0x636   : > { %v1142_v37 = vpop.f32.mrf.mxu1 }
 0x637   : > { %v1158_v3 = vadd.f32 %v1142_v37, %v867_v22 }
 0x639   : > { %v1442_v28 = vadd.f32 %v1426_v0, %v1158_v3 }
 0x63b   : > { %v1454_v31 = vadd.f32 %v1736_v27, %v1442_v28 }
 0x63d   : > { %1462 = vst.msk [vmem:[%s2439_s6 + $0x18] sm:$0xff] %vm330_vm0, %v1454_v31 }
 0x63e   : > { %v1145_v21 = vpop.f32.mrf.mxu1  ;;  %v1429_v12 = vpop.f32.mrf.mxu2 }
 0x63f   : > { %v1159_v1 = vadd.f32 %v1145_v21, %v870_v42 }
 0x641   : > { %v1443_v4 = vadd.f32 %v1429_v12, %v1159_v1 }
 0x643   : > { %v1455_v16 = vadd.f32 %v1736_v27, %v1443_v4 }
 0x645   : > { %1463 = vst.msk [vmem:[%s2439_s6 + $0x20] sm:$0xff] %vm330_vm0, %v1455_v16 }
 0x646   : > { %v1147_v5 = vpop.f32.mrf.mxu1  ;;  %v1431_v7 = vpop.f32.mrf.mxu2 }
 0x647   : > { %v1160_v34 = vadd.f32 %v1147_v5, %v872_v43 }
 0x649   : > { %v1444_v18 = vadd.f32 %v1431_v7, %v1160_v34 }
 0x64b   : > { %v1456_v19 = vadd.f32 %v1736_v27, %v1444_v18 }
 0x64d   : > { %1464 = vst.msk [vmem:[%s2439_s6 + $0x28] sm:$0xff] %vm330_vm0, %v1456_v19 }
 0x64e   : > { %v1150_v20 = vpop.f32.mrf.mxu1  ;;  %v1434_v61 = vpop.f32.mrf.mxu2 }
 0x64f   : > { %v1161_v52 = vadd.f32 %v1150_v20, %v875_v51 }
 0x651   : > { %v1445_v17 = vadd.f32 %v1434_v61, %v1161_v52 }
 0x653   : > { %v1457_v60 = vadd.f32 %v1736_v27, %v1445_v17 }
 0x655   : > { %1465 = vst.msk [vmem:[%s2439_s6 + $0x30] sm:$0xff] %vm330_vm0, %v1457_v60 }
 0x656   : > { %v1152_v56 = vpop.f32.mrf.mxu1  ;;  %v1436_v58 = vpop.f32.mrf.mxu2 }
 0x657   : > { %v1162_v6 = vadd.f32 %v1152_v56, %v877_v45 }
 0x659   : > { %v1446_v59 = vadd.f32 %v1436_v58, %v1162_v6 }
 0x65b   : > { %v1458_v30 = vadd.f32 %v1736_v27, %v1446_v59 }
 0x65d   : > { %1466 = vst.msk [vmem:[%s2439_s6 + $0x38] sm:$0xff] %vm330_vm0, %v1458_v30 }
 0x65e PF: > { %s15_s18 = sadd.s32 1, %s1871_s18  }
 0x65f   : > { %p12_p4 = scmp.ge.s32.totalorder %s15_s18, 4  }
 0x661   :  { %14 = sbr.rel (!%p12_p4) target bundleno = 1 (0x1), region = 79 }

// kernel: conv_attention_forward.2
= control target key start
LH: loop header
LB: loop body
LE: loop exit
PB: predicated region body
PF: predicated region fallthrough
CT: control target
= control target key end

     0   :  { %s2530_s24 = smov 0   ;;  %s3790_s0 = inlined_call_operand.vmem [shape: f32[2,10,10,32], index: 0, kind: input, shape index: {}]   ;;  %s3791_s1 = inlined_call_operand.vmem [shape: f32[3,9,32], index: 1, kind: input, shape index: {}]   ;;  %s3792_s2 = inlined_call_operand.vmem [shape: f32[3,1,32], index: 2, kind: input, shape index: {}]   ;;  %s3793_s3 = inlined_call_operand.vmem [shape: bf16[3,32,128], index: 3, kind: input, shape index: {}]   ;;  %s3794_s4 = inlined_call_operand.vmem [shape: f32[3,1,128], index: 4, kind: input, shape index: {}]   ;;  %s3795_s5 = inlined_call_operand.vmem [shape: bf16[2,64,128], index: 5, kind: output, shape index: {0}]   ;;  %s3796_s6 = inlined_call_operand.vmem [shape: bf16[2,64,128], index: 6, kind: output, shape index: {1}]   ;;  %s3797_s7 = inlined_call_operand.vmem [shape: bf16[2,64,128], index: 7, kind: output, shape index: {2}]  }
   0x1 LB: > { %s2230_s25 = sadd.s32 4294967295, %s2488_s24   ;;  %p2234_p0 = scmp.ge.s32.totalorder %s2488_s24, 1  ;;  %s2488_s24 = sphi %s2530_s24, %s18_s24  }
   0x2   : > { %p242_p1 = scmp.lt.s32.totalorder %s2488_s24, 3 }
   0x4   : > { %p243_p2 = pnand %p2234_p0, %p242_p1 }
   0x6   : > { %246 = sbr.rel (%p243_p2) target bundleno = 425 (0x1a9), region = 40 }
   0xb   : > { %v2314_v0 = vld [vmem:[%s3793_s3 + $0x8] sm:$0xff]  ;;  %v2316_v1 = vld [vmem:[%s3793_s3 + $0x18] sm:$0xff]  ;;  %p284_p3 = scmp.lt.s32.totalorder %s2230_s25, 1  ;;  %v2313_v3 = vld [vmem:[%s3793_s3] sm:$0xff]  ;;  %vm377_vm0 = vcmask 1046528   ;;  %vm452_vm1 = vcmask 1045504  }
   0xc   : > { %v2547_v2 = vld [vmem:[%s3793_s3 + $0x28] sm:$0xff]  ;;  %880 = vmatpush.bf16.msra.mxu0 %v2314_v0  ;;  %2388 = vmatpush.bf16.msra.mxu3 %v2314_v0  ;;  %v2315_v4 = vld [vmem:[%s3793_s3 + $0x10] sm:$0xff]  ;;  %v2558_v5 = vld [vmem:[%s3793_s3 + $0x20] sm:$0xff]  ;;  %vm861_vm2 = vcmask 261120  }
   0xd   : > { %s3803_s25 = smov (!%p284_p3, %s2230_s25), 1  ;;  %2390 = vmatpush.bf16.msra.mxu1 %v2316_v1  ;;  %2392 = vmatpush.bf16.msra.mxu2 %v2547_v2  ;;  %v2566_v6 = vld [vmem:[%s3791_s1] ss:$0 sm:$0xff]  ;;  %v2572_v7 = vld [vmem:[%s3791_s1 + $0x1] ss:$0 sm:$0xff] }
   0xe   : > { %s2394_s17 = smul.u32 160, %s3803_s25  ;;  %v2577_v8 = vld [vmem:[%s3791_s1 + $0x2] ss:$0 sm:$0xff]  ;;  %v2608_v17 = vld [vmem:[%s3791_s1 + $0x3] ss:$0 sm:$0xff]  ;;  %s2310_s23 = sshll.u32 %s3803_s25, 5 }
   0xf   : > { %v2621_v22 = vld [vmem:[%s3791_s1 + $0x4] ss:$0 sm:$0xff]  ;;  %v2630_v27 = vld [vmem:[%s3791_s1 + $0x5] ss:$0 sm:$0xff]  ;;  %v2659_v50 = vld [vmem:[%s3791_s1 + $0x6] ss:$0 sm:$0xff]  ;;  %s3741_s25 = scalar_lea.vmem %s3795_s5, %s2310_s23  ;;  %s3750_s8 = scalar_lea.vmem %s3796_s6, %s2310_s23 }
  0x10   : > { %881 = vmatpush.bf16.msra.mxu0 %v2313_v3  ;;  %2389 = vmatpush.bf16.msra.mxu3 %v2313_v3  ;;  %s2582_s26 = scalar_lea.vmem %s3790_s0, %s2394_s17  ;;  %v2664_v51 = vld [vmem:[%s3791_s1 + $0x7] ss:$0 sm:$0xff]  ;;  %s3757_s11 = scalar_lea.vmem %s3797_s7, %s2310_s23 }
  0x11   : > { %2391 = vmatpush.bf16.msra.mxu1 %v2315_v4  ;;  %2393 = vmatpush.bf16.msra.mxu2 %v2558_v5  ;;  %v2586_v9 = vld [vmem:[%s2582_s26] sm:$0xff]  ;;  %v2589_v10 = vld [vmem:[%s2582_s26 + $0x8] sm:$0x3]  ;;  %v2592_v11 = vld [vmem:[%s2582_s26 + $0x10] sm:$0xff] }
  0x12   : > { %v2595_v12 = vld [vmem:[%s2582_s26 + $0x18] sm:$0x3]  ;;  %v327_v13 = vmul.f32 %v2566_v6, %v2586_v9  ;;  %v328_v14 = vmul.f32 %v2566_v6, %v2592_v11  ;;  %v345_v15 = vmul.f32 %v2572_v7, %v2586_v9  ;;  %v346_v16 = vmul.f32 %v2572_v7, %v2589_v10  ;;  %v2633_v32 = vld [vmem:[%s2582_s26 + $0x20] sm:$0xff]  ;;  %v2643_v41 = vld [vmem:[%s2582_s26 + $0x28] sm:$0x3] }
  0x13   : > { %v347_v18 = vmul.f32 %v2572_v7, %v2592_v11  ;;  %v348_v19 = vmul.f32 %v2572_v7, %v2595_v12  ;;  %v420_v20 = vmul.f32 %v2577_v8, %v2586_v9  ;;  %v421_v21 = vmul.f32 %v2577_v8, %v2589_v10  ;;  %v2671_v60 = vld [vmem:[%s2582_s26 + $0x30] sm:$0xff]  ;;  %v2682_v3 = vld [vmem:[%s2582_s26 + $0x38] sm:$0x3] }
  0x14   : > { %1475 = vmatpush.bf16.msrb.mxu0 %v2316_v1  ;;  %v378_v23 = vrot.slane %v345_v15, 1  ;;  %v379_v24 = vrot.slane %v346_v16, 1  ;;  %v422_v25 = vmul.f32 %v2577_v8, %v2592_v11  ;;  %v423_v26 = vmul.f32 %v2577_v8, %v2595_v12  ;;  %v2679_v1 = vld [vmem:[%s3791_s1 + $0x8] ss:$0 sm:$0xff] }
  0x15   : > { %v381_v28 = vrot.slane %v347_v18, 1  ;;  %v382_v29 = vrot.slane %v348_v19, 1  ;;  %v453_v30 = vrot.slane %v420_v20, 2  ;;  %v454_v31 = vrot.slane %v421_v21, 2 }
  0x16   : > { %v380_v33 = vsel %vm377_vm0, %v378_v23, %v379_v24  ;;  %v456_v34 = vrot.slane %v422_v25, 2  ;;  %v457_v35 = vrot.slane %v423_v26, 2  ;;  %v495_v36 = vmul.f32 %v2608_v17, %v2592_v11 }
  0x17   : > { %v383_v37 = vsel %vm377_vm0, %v381_v28, %v382_v29  ;;  %v410_v38 = vadd.f32 %v380_v33, %v327_v13  ;;  %v455_v39 = vsel %vm452_vm1, %v453_v30, %v454_v31  ;;  %v496_v40 = vmul.f32 %v2608_v17, %v2633_v32 }
  0x18   : > { %1476 = vmatpush.bf16.msrb.mxu0 %v2315_v4  ;;  %v411_v42 = vadd.f32 %v383_v37, %v328_v14  ;;  %v458_v43 = vsel %vm452_vm1, %v456_v34, %v457_v35  ;;  %v513_v44 = vmul.f32 %v2621_v22, %v2592_v11  ;;  %v514_v45 = vmul.f32 %v2621_v22, %v2595_v12 }
  0x19   : > { %v485_v46 = vadd.f32 %v455_v39, %v410_v38  ;;  %v515_v47 = vmul.f32 %v2621_v22, %v2633_v32  ;;  %v516_v48 = vmul.f32 %v2621_v22, %v2643_v41  ;;  %v587_v49 = vmul.f32 %v2630_v27, %v2592_v11 }
  0x1a   : > { %v486_v52 = vadd.f32 %v458_v43, %v411_v42  ;;  %v545_v53 = vrot.slane %v513_v44, 1  ;;  %v546_v54 = vrot.slane %v514_v45, 1  ;;  %v588_v55 = vmul.f32 %v2630_v27, %v2595_v12 }
  0x1b   : > { %v503_v56 = vadd.f32 %v495_v36, %v485_v46  ;;  %v548_v57 = vrot.slane %v515_v47, 1  ;;  %v549_v58 = vrot.slane %v516_v48, 1  ;;  %v589_v59 = vmul.f32 %v2630_v27, %v2633_v32 }
  0x1c   : > { %v504_v61 = vadd.f32 %v496_v40, %v486_v52  ;;  %v547_v62 = vsel %vm377_vm0, %v545_v53, %v546_v54  ;;  %v590_v63 = vmul.f32 %v2630_v27, %v2643_v41  ;;  %v619_v0 = vrot.slane %v587_v49, 2  ;;  %v2712_v49 = vld [vmem:[%s3792_s2] ss:$0 sm:$0xff] }
  0x1d   : > { %v550_v4 = vsel %vm377_vm0, %v548_v57, %v549_v58  ;;  %v577_v13 = vadd.f32 %v547_v62, %v503_v56  ;;  %v620_v14 = vrot.slane %v588_v55, 2  ;;  %v622_v15 = vrot.slane %v589_v59, 2 }
  0x1e   : > { %v578_v16 = vadd.f32 %v550_v4, %v504_v61  ;;  %v623_v18 = vrot.slane %v590_v63, 2  ;;  %v661_v19 = vmul.f32 %v2659_v50, %v2633_v32  ;;  %v662_v20 = vmul.f32 %v2659_v50, %v2671_v60 }
  0x1f   : > { %v621_v21 = vsel %vm452_vm1, %v619_v0, %v620_v14  ;;  %v679_v23 = vmul.f32 %v2664_v51, %v2633_v32  ;;  %v680_v24 = vmul.f32 %v2664_v51, %v2643_v41  ;;  %v681_v25 = vmul.f32 %v2664_v51, %v2671_v60 }
  0x20   : > { %v624_v26 = vsel %vm452_vm1, %v622_v15, %v623_v18  ;;  %v651_v28 = vadd.f32 %v621_v21, %v577_v13  ;;  %v682_v29 = vmul.f32 %v2664_v51, %v2682_v3  ;;  %v753_v30 = vmul.f32 %v2679_v1, %v2633_v32 }
  0x21   : > { %v652_v31 = vadd.f32 %v624_v26, %v578_v16  ;;  %v711_v33 = vrot.slane %v679_v23, 1  ;;  %v712_v34 = vrot.slane %v680_v24, 1  ;;  %v714_v35 = vrot.slane %v681_v25, 1  ;;  %v2737_v23 = vld [vmem:[%s2582_s26 + $0x40] sm:$0xff] }
  0x22   : > { %v669_v36 = vadd.f32 %v661_v19, %v651_v28  ;;  %v715_v37 = vrot.slane %v682_v29, 1  ;;  %v754_v38 = vmul.f32 %v2679_v1, %v2643_v41  ;;  %v755_v39 = vmul.f32 %v2679_v1, %v2671_v60  ;;  %v2743_v28 = vld [vmem:[%s2582_s26 + $0x48] sm:$0x3] }
  0x23   : > { %v670_v40 = vadd.f32 %v662_v20, %v652_v31  ;;  %v713_v42 = vsel %vm377_vm0, %v711_v33, %v712_v34  ;;  %v756_v43 = vmul.f32 %v2679_v1, %v2682_v3  ;;  %v785_v44 = vrot.slane %v753_v30, 2 }
  0x24   : > { %v716_v45 = vsel %vm377_vm0, %v714_v35, %v715_v37  ;;  %v743_v46 = vadd.f32 %v713_v42, %v669_v36  ;;  %v786_v47 = vrot.slane %v754_v38, 2  ;;  %v788_v48 = vrot.slane %v755_v39, 2 }
  0x25   : > { %v744_v52 = vadd.f32 %v716_v45, %v670_v40  ;;  %v789_v53 = vrot.slane %v756_v43, 2  ;;  %v329_v54 = vmul.f32 %v2566_v6, %v2633_v32  ;;  %v330_v55 = vmul.f32 %v2566_v6, %v2671_v60 }
  0x26   : > { %v787_v56 = vsel %vm452_vm1, %v785_v44, %v786_v47  ;;  %v349_v57 = vmul.f32 %v2572_v7, %v2633_v32  ;;  %v350_v58 = vmul.f32 %v2572_v7, %v2643_v41  ;;  %v351_v59 = vmul.f32 %v2572_v7, %v2671_v60 }
  0x27   : > { %v790_v61 = vsel %vm452_vm1, %v788_v48, %v789_v53  ;;  %v817_v62 = vadd.f32 %v787_v56, %v743_v46  ;;  %v352_v63 = vmul.f32 %v2572_v7, %v2682_v3  ;;  %v424_v0 = vmul.f32 %v2577_v8, %v2633_v32 }
  0x28   : > { %v818_v4 = vadd.f32 %v790_v61, %v744_v52  ;;  %v384_v13 = vrot.slane %v349_v57, 1  ;;  %v385_v14 = vrot.slane %v350_v58, 1  ;;  %v387_v15 = vrot.slane %v351_v59, 1  ;;  %v2767_v58 = vld [vmem:[%s2582_s26 + $0x50] sm:$0xff] }
  0x29   : > { %v829_v16 = vadd.f32 %v2712_v49, %v817_v62  ;;  %v388_v18 = vrot.slane %v352_v63, 1  ;;  %v425_v19 = vmul.f32 %v2577_v8, %v2643_v41  ;;  %v426_v20 = vmul.f32 %v2577_v8, %v2671_v60 }
  0x2a   : > { %v830_v21 = vadd.f32 %v2712_v49, %v818_v4  ;;  %v386_v24 = vsel %vm377_vm0, %v384_v13, %v385_v14  ;;  %v427_v25 = vmul.f32 %v2577_v8, %v2682_v3  ;;  %v459_v26 = vrot.slane %v424_v0, 2  ;;  %v2775_v0 = vld [vmem:[%s2582_s26 + $0x58] sm:$0x3] }
  0x2b   : > { %v389_v29 = vsel %vm377_vm0, %v387_v15, %v388_v18  ;;  %v412_v30 = vadd.f32 %v386_v24, %v329_v54  ;;  %v460_v31 = vrot.slane %v425_v19, 2  ;;  %v462_v33 = vrot.slane %v426_v20, 2 }
  0x2c   : > { %v837_v34 = vpack.c.bf16 %v830_v21, %v829_v16  ;;  %v413_v35 = vadd.f32 %v389_v29, %v330_v55  ;;  %v463_v36 = vrot.slane %v427_v25, 2  ;;  %v497_v37 = vmul.f32 %v2608_v17, %v2671_v60 }
  0x2d   : > { %v461_v38 = vsel %vm452_vm1, %v459_v26, %v460_v31  ;;  %v498_v39 = vmul.f32 %v2608_v17, %v2737_v23  ;;  %v517_v40 = vmul.f32 %v2621_v22, %v2671_v60  ;;  %v518_v42 = vmul.f32 %v2621_v22, %v2682_v3 }
  0x2e   : > { %2250 = vmatmul.msk.bf16.vlgmr.msra.gmra.mxu0 %vm861_vm2, %v837_v34  ;;  %v464_v43 = vsel %vm452_vm1, %v462_v33, %v463_v36  ;;  %v487_v44 = vadd.f32 %v461_v38, %v412_v30  ;;  %v519_v45 = vmul.f32 %v2621_v22, %v2737_v23  ;;  %v520_v46 = vmul.f32 %v2621_v22, %v2743_v28  ;;  %v2798_v36 = vld [vmem:[%s3791_s1 + $0x10] ss:$0 sm:$0xff] }
  0x2f   : > { %v488_v47 = vadd.f32 %v464_v43, %v413_v35  ;;  %v551_v48 = vrot.slane %v517_v40, 1  ;;  %v552_v52 = vrot.slane %v518_v42, 1  ;;  %v591_v53 = vmul.f32 %v2630_v27, %v2671_v60  ;;  %2070 = vmatpush.bf16.msra.mxu0 %v2547_v2  ;;  %v2805_v42 = vld [vmem:[%s3791_s1 + $0x11] ss:$0 sm:$0xff] }
  0x30   : > { %v505_v54 = vadd.f32 %v497_v37, %v487_v44  ;;  %v554_v55 = vrot.slane %v519_v45, 1  ;;  %v555_v56 = vrot.slane %v520_v46, 1  ;;  %v592_v57 = vmul.f32 %v2630_v27, %v2682_v3 }
  0x31   : > { %v506_v59 = vadd.f32 %v498_v39, %v488_v47  ;;  %v553_v61 = vsel %vm377_vm0, %v551_v48, %v552_v52  ;;  %v593_v62 = vmul.f32 %v2630_v27, %v2737_v23  ;;  %v594_v63 = vmul.f32 %v2630_v27, %v2743_v28 }
  0x32   : > { %v556_v2 = vsel %vm377_vm0, %v554_v55, %v555_v56  ;;  %v579_v4 = vadd.f32 %v553_v61, %v505_v54  ;;  %v625_v13 = vrot.slane %v591_v53, 2  ;;  %v626_v14 = vrot.slane %v592_v57, 2  ;;  %v2816_v54 = vld [vmem:[%s3791_s1 + $0x12] ss:$0 sm:$0xff] }
  0x33   : > { %v580_v15 = vadd.f32 %v556_v2, %v506_v59  ;;  %v628_v16 = vrot.slane %v593_v62, 2  ;;  %v629_v18 = vrot.slane %v594_v63, 2  ;;  %v663_v19 = vmul.f32 %v2659_v50, %v2737_v23  ;;  %2071 = vmatpush.bf16.msra.mxu0 %v2558_v5 }
  0x34   : > { %v627_v20 = vsel %vm452_vm1, %v625_v13, %v626_v14  ;;  %v664_v21 = vmul.f32 %v2659_v50, %v2767_v58  ;;  %v683_v24 = vmul.f32 %v2664_v51, %v2737_v23  ;;  %v684_v25 = vmul.f32 %v2664_v51, %v2743_v28 }
  0x35   : > { %v630_v26 = vsel %vm452_vm1, %v628_v16, %v629_v18  ;;  %v653_v29 = vadd.f32 %v627_v20, %v579_v4  ;;  %v685_v30 = vmul.f32 %v2664_v51, %v2767_v58  ;;  %v686_v5 = vmul.f32 %v2664_v51, %v2775_v0 }
  0x36   : > { %v654_v31 = vadd.f32 %v630_v26, %v580_v15  ;;  %v717_v33 = vrot.slane %v683_v24, 1  ;;  %v718_v34 = vrot.slane %v684_v25, 1  ;;  %v757_v35 = vmul.f32 %v2679_v1, %v2737_v23 }
  0x37   : > { %v671_v37 = vadd.f32 %v663_v19, %v653_v29  ;;  %v720_v38 = vrot.slane %v685_v30, 1  ;;  %v721_v39 = vrot.slane %v686_v5, 1  ;;  %v758_v40 = vmul.f32 %v2679_v1, %v2743_v28  ;;  %v2840_v29 = vld [vmem:[%s3791_s1 + $0x13] ss:$0 sm:$0xff]  ;;  %v2845_v30 = vld [vmem:[%s3791_s1 + $0x14] ss:$0 sm:$0xff] }
  0x38   : > { %v672_v43 = vadd.f32 %v664_v21, %v654_v31  ;;  %v719_v44 = vsel %vm377_vm0, %v717_v33, %v718_v34  ;;  %v759_v45 = vmul.f32 %v2679_v1, %v2767_v58  ;;  %v760_v46 = vmul.f32 %v2679_v1, %v2775_v0 }
  0x39   : > { %v722_v47 = vsel %vm377_vm0, %v720_v38, %v721_v39  ;;  %v745_v48 = vadd.f32 %v719_v44, %v671_v37  ;;  %v791_v52 = vrot.slane %v757_v35, 2  ;;  %v792_v53 = vrot.slane %v758_v40, 2  ;;  %v2857_v40 = vld [vmem:[%s3791_s1 + $0x15] ss:$0 sm:$0xff] }
  0x3a   : > { %v746_v55 = vadd.f32 %v722_v47, %v672_v43  ;;  %v794_v56 = vrot.slane %v759_v45, 2  ;;  %v795_v57 = vrot.slane %v760_v46, 2  ;;  %v924_v59 = vmul.f32 %v2798_v36, %v2633_v32 }
  0x3b   : > { %v793_v61 = vsel %vm452_vm1, %v791_v52, %v792_v53  ;;  %v925_v62 = vmul.f32 %v2798_v36, %v2671_v60  ;;  %v944_v63 = vmul.f32 %v2805_v42, %v2633_v32  ;;  %v945_v2 = vmul.f32 %v2805_v42, %v2643_v41 }
  0x3c   : > { %v796_v4 = vsel %vm452_vm1, %v794_v56, %v795_v57  ;;  %v819_v13 = vadd.f32 %v793_v61, %v745_v48  ;;  %v946_v14 = vmul.f32 %v2805_v42, %v2671_v60  ;;  %v947_v15 = vmul.f32 %v2805_v42, %v2682_v3  ;;  %v2875_v61 = vld [vmem:[%s3791_s1 + $0x16] ss:$0 sm:$0xff] }
  0x3d   : > { %v820_v16 = vadd.f32 %v796_v4, %v746_v55  ;;  %v978_v18 = vrot.slane %v944_v63, 1  ;;  %v979_v19 = vrot.slane %v945_v2, 1  ;;  %v1018_v20 = vmul.f32 %v2816_v54, %v2633_v32 }
  0x3e   : > { %v831_v21 = vadd.f32 %v2712_v49, %v819_v13  ;;  %v981_v24 = vrot.slane %v946_v14, 1  ;;  %v982_v25 = vrot.slane %v947_v15, 1  ;;  %v1019_v26 = vmul.f32 %v2816_v54, %v2643_v41 }
  0x3f   : > { %v832_v5 = vadd.f32 %v2712_v49, %v820_v16  ;;  %v980_v31 = vsel %vm377_vm0, %v978_v18, %v979_v19  ;;  %v1020_v33 = vmul.f32 %v2816_v54, %v2671_v60  ;;  %v1021_v34 = vmul.f32 %v2816_v54, %v2682_v3  ;;  %v2886_v18 = vld [vmem:[%s3791_s1 + $0x17] ss:$0 sm:$0xff] }
  0x40   : > { %v983_v35 = vsel %vm377_vm0, %v981_v24, %v982_v25  ;;  %v1006_v37 = vadd.f32 %v980_v31, %v924_v59  ;;  %v1052_v38 = vrot.slane %v1018_v20, 2  ;;  %v1053_v39 = vrot.slane %v1019_v26, 2 }
  0x41   : > { %v838_v43 = vpack.c.bf16 %v832_v5, %v831_v21  ;;  %v1007_v44 = vadd.f32 %v983_v35, %v925_v62  ;;  %v1055_v45 = vrot.slane %v1020_v33, 2  ;;  %v1056_v46 = vrot.slane %v1021_v34, 2  ;;  %v2898_v33 = vld [vmem:[%s3791_s1 + $0x18] ss:$0 sm:$0xff] }
  0x42   : > { %v1054_v47 = vsel %vm452_vm1, %v1052_v38, %v1053_v39  ;;  %v1090_v48 = vmul.f32 %v2840_v29, %v2671_v60  ;;  %v1091_v52 = vmul.f32 %v2840_v29, %v2737_v23  ;;  %v1110_v53 = vmul.f32 %v2845_v30, %v2671_v60 }
  0x43   : > { %2251 = vmatmul.msk.bf16.vlgmr.msra.gmra.mxu3 %vm861_vm2, %v838_v43  ;;  %v1057_v55 = vsel %vm452_vm1, %v1055_v45, %v1056_v46  ;;  %v1080_v56 = vadd.f32 %v1054_v47, %v1006_v37  ;;  %v1111_v57 = vmul.f32 %v2845_v30, %v2682_v3  ;;  %v1112_v59 = vmul.f32 %v2845_v30, %v2737_v23 }
  0x44   : > { %v1081_v62 = vadd.f32 %v1057_v55, %v1007_v44  ;;  %v1113_v63 = vmul.f32 %v2845_v30, %v2743_v28  ;;  %v1144_v2 = vrot.slane %v1110_v53, 1  ;;  %v1184_v4 = vmul.f32 %v2857_v40, %v2671_v60  ;;  %v2914_v53 = vld [vmem:[%s3791_s1 + $0x20] ss:$0 sm:$0xff] }
  0x45   : > { %v1098_v13 = vadd.f32 %v1090_v48, %v1080_v56  ;;  %v1145_v14 = vrot.slane %v1111_v57, 1  ;;  %v1147_v15 = vrot.slane %v1112_v59, 1  ;;  %v1185_v16 = vmul.f32 %v2857_v40, %v2682_v3 }
  0x46   : > { %v1099_v19 = vadd.f32 %v1091_v52, %v1081_v62  ;;  %v1148_v20 = vrot.slane %v1113_v63, 1  ;;  %v1186_v21 = vmul.f32 %v2857_v40, %v2737_v23  ;;  %v1187_v24 = vmul.f32 %v2857_v40, %v2743_v28 }
  0x47   : > { %v1146_v25 = vsel %vm377_vm0, %v1144_v2, %v1145_v14  ;;  %v1218_v26 = vrot.slane %v1184_v4, 2  ;;  %v1219_v5 = vrot.slane %v1185_v16, 2  ;;  %v1256_v31 = vmul.f32 %v2875_v61, %v2737_v23 }
  0x48   : > { %v1149_v34 = vsel %vm377_vm0, %v1147_v15, %v1148_v20  ;;  %v1172_v35 = vadd.f32 %v1146_v25, %v1098_v13  ;;  %v1221_v37 = vrot.slane %v1186_v21, 2  ;;  %v1222_v38 = vrot.slane %v1187_v24, 2  ;;  %v2925_v13 = vld [vmem:[%s3791_s1 + $0x21] ss:$0 sm:$0xff] }
  0x49   : > { %v1173_v39 = vadd.f32 %v1149_v34, %v1099_v19  ;;  %v1220_v43 = vsel %vm452_vm1, %v1218_v26, %v1219_v5  ;;  %v1257_v44 = vmul.f32 %v2875_v61, %v2767_v58  ;;  %v1276_v45 = vmul.f32 %v2886_v18, %v2737_v23  ;;  %v2937_v26 = vld [vmem:[%s3791_s1 + $0x22] ss:$0 sm:$0xff] }
  0x4a   : > { %v1223_v46 = vsel %vm452_vm1, %v1221_v37, %v1222_v38  ;;  %v1246_v47 = vadd.f32 %v1220_v43, %v1172_v35  ;;  %v1277_v48 = vmul.f32 %v2886_v18, %v2743_v28  ;;  %v1278_v52 = vmul.f32 %v2886_v18, %v2767_v58  ;;  %v2943_v37 = vld [vmem:[%s3792_s2 + $0x1] ss:$0 sm:$0xff] }
  0x4b   : > { %v1247_v55 = vadd.f32 %v1223_v46, %v1173_v39  ;;  %v1279_v56 = vmul.f32 %v2886_v18, %v2775_v0  ;;  %v1310_v57 = vrot.slane %v1276_v45, 1  ;;  %v1350_v59 = vmul.f32 %v2898_v33, %v2737_v23 }
  0x4c   : > { %v1264_v62 = vadd.f32 %v1256_v31, %v1246_v47  ;;  %v1311_v63 = vrot.slane %v1277_v48, 1  ;;  %v1313_v2 = vrot.slane %v1278_v52, 1  ;;  %v1351_v4 = vmul.f32 %v2898_v33, %v2743_v28  ;;  %v2958_v52 = vld [vmem:[%s3791_s1 + $0x23] ss:$0 sm:$0xff] }
  0x4d   : > { %v1265_v14 = vadd.f32 %v1257_v44, %v1247_v55  ;;  %v1314_v15 = vrot.slane %v1279_v56, 1  ;;  %v1352_v16 = vmul.f32 %v2898_v33, %v2767_v58  ;;  %v1353_v19 = vmul.f32 %v2898_v33, %v2775_v0 }
  0x4e   : > { %v1312_v20 = vsel %vm377_vm0, %v1310_v57, %v1311_v63  ;;  %v1384_v21 = vrot.slane %v1350_v59, 2  ;;  %v1385_v24 = vrot.slane %v1351_v4, 2  ;;  %v1519_v25 = vmul.f32 %v2914_v53, %v2633_v32 }
  0x4f   : > { %v1315_v5 = vsel %vm377_vm0, %v1313_v2, %v1314_v15  ;;  %v1338_v31 = vadd.f32 %v1312_v20, %v1264_v62  ;;  %v1387_v34 = vrot.slane %v1352_v16, 2  ;;  %v1388_v35 = vrot.slane %v1353_v19, 2  ;;  %v2975_v20 = vld [vmem:[%s3791_s1 + $0x24] ss:$0 sm:$0xff] }
  0x50   : > { %v1339_v38 = vadd.f32 %v1315_v5, %v1265_v14  ;;  %v1386_v39 = vsel %vm452_vm1, %v1384_v21, %v1385_v24  ;;  %v1520_v43 = vmul.f32 %v2914_v53, %v2671_v60  ;;  %v1539_v44 = vmul.f32 %v2925_v13, %v2633_v32 }
  0x51   : > { %v1389_v45 = vsel %vm452_vm1, %v1387_v34, %v1388_v35  ;;  %v1412_v46 = vadd.f32 %v1386_v39, %v1338_v31  ;;  %v1540_v47 = vmul.f32 %v2925_v13, %v2643_v41  ;;  %v1541_v48 = vmul.f32 %v2925_v13, %v2671_v60  ;;  %v2983_v34 = vld [vmem:[%s3791_s1 + $0x25] ss:$0 sm:$0xff] }
  0x52   : > { %v1413_v55 = vadd.f32 %v1389_v45, %v1339_v38  ;;  %v1542_v56 = vmul.f32 %v2925_v13, %v2682_v3  ;;  %v1573_v57 = vrot.slane %v1539_v44, 1  ;;  %v1613_v59 = vmul.f32 %v2937_v26, %v2633_v32 }
  0x53   : > { %v1425_v62 = vadd.f32 %v2943_v37, %v1412_v46  ;;  %v1574_v63 = vrot.slane %v1540_v47, 1  ;;  %v1576_v2 = vrot.slane %v1541_v48, 1  ;;  %v1614_v4 = vmul.f32 %v2937_v26, %v2643_v41 }
  0x54   : > { %v1426_v14 = vadd.f32 %v2943_v37, %v1413_v55  ;;  %v1577_v15 = vrot.slane %v1542_v56, 1  ;;  %v1615_v16 = vmul.f32 %v2937_v26, %v2671_v60  ;;  %v1616_v19 = vmul.f32 %v2937_v26, %v2682_v3 }
  0x55   : > { %v1575_v21 = vsel %vm377_vm0, %v1573_v57, %v1574_v63  ;;  %v1647_v24 = vrot.slane %v1613_v59, 2  ;;  %v1648_v5 = vrot.slane %v1614_v4, 2  ;;  %v1685_v31 = vmul.f32 %v2958_v52, %v2671_v60 }
  0x56   : > { %v1432_v35 = vpack.c.bf16 %v1426_v14, %v1425_v62  ;;  %v1578_v38 = vsel %vm377_vm0, %v1576_v2, %v1577_v15  ;;  %v1601_v39 = vadd.f32 %v1575_v21, %v1519_v25  ;;  %v1650_v44 = vrot.slane %v1615_v16, 2  ;;  %v3006_v16 = vld [vmem:[%s3791_s1 + $0x26] ss:$0 sm:$0xff] }
  0x57   : > { %v1602_v45 = vadd.f32 %v1578_v38, %v1520_v43  ;;  %v1649_v46 = vsel %vm452_vm1, %v1647_v24, %v1648_v5  ;;  %v1651_v47 = vrot.slane %v1616_v19, 2  ;;  %v1686_v48 = vmul.f32 %v2958_v52, %v2737_v23 }
  0x58   : > { %2278 = vmatmul.msk.bf16.vlgmr.msra.gmra.mxu1 %vm861_vm2, %v1432_v35  ;;  %v1675_v55 = vadd.f32 %v1649_v46, %v1601_v39  ;;  %v1705_v56 = vmul.f32 %v2975_v20, %v2671_v60  ;;  %v1706_v57 = vmul.f32 %v2975_v20, %v2682_v3  ;;  %v1707_v25 = vmul.f32 %v2975_v20, %v2737_v23  ;;  %v3015_v35 = vld [vmem:[%s3791_s1 + $0x27] ss:$0 sm:$0xff] }
  0x59   : > { %v1652_v43 = vsel %vm452_vm1, %v1650_v44, %v1651_v47  ;;  %v1708_v59 = vmul.f32 %v2975_v20, %v2743_v28  ;;  %v1779_v62 = vmul.f32 %v2983_v34, %v2671_v60  ;;  %v1780_v63 = vmul.f32 %v2983_v34, %v2682_v3 }
  0x5a   : > { %v1676_v2 = vadd.f32 %v1652_v43, %v1602_v45  ;;  %v1693_v4 = vadd.f32 %v1685_v31, %v1675_v55  ;;  %v1739_v14 = vrot.slane %v1705_v56, 1  ;;  %v1740_v15 = vrot.slane %v1706_v57, 1  ;;  %v3021_v45 = vld [vmem:[%s3791_s1 + $0x28] ss:$0 sm:$0xff] }
  0x5b   : > { %v1742_v19 = vrot.slane %v1707_v25, 1  ;;  %v1743_v21 = vrot.slane %v1708_v59, 1  ;;  %v1781_v24 = vmul.f32 %v2983_v34, %v2737_v23  ;;  %v1782_v5 = vmul.f32 %v2983_v34, %v2743_v28 }
  0x5c   : > { %v1694_v31 = vadd.f32 %v1686_v48, %v1676_v2  ;;  %v1741_v38 = vsel %vm377_vm0, %v1739_v14, %v1740_v15  ;;  %v1813_v39 = vrot.slane %v1779_v62, 2  ;;  %v1814_v44 = vrot.slane %v1780_v63, 2 }
  0x5d   : > { %v1744_v46 = vsel %vm377_vm0, %v1742_v19, %v1743_v21  ;;  %v1767_v47 = vadd.f32 %v1741_v38, %v1693_v4  ;;  %v1816_v55 = vrot.slane %v1781_v24, 2  ;;  %v1817_v56 = vrot.slane %v1782_v5, 2 }
  0x5e   : > { %v1768_v57 = vadd.f32 %v1744_v46, %v1694_v31  ;;  %v1815_v25 = vsel %vm452_vm1, %v1813_v39, %v1814_v44  ;;  %v1851_v48 = vmul.f32 %v3006_v16, %v2737_v23  ;;  %v1852_v43 = vmul.f32 %v3006_v16, %v2767_v58 }
  0x5f   : > { %v1818_v59 = vsel %vm452_vm1, %v1816_v55, %v1817_v56  ;;  %v1841_v62 = vadd.f32 %v1815_v25, %v1767_v47  ;;  %v1871_v63 = vmul.f32 %v3015_v35, %v2737_v23  ;;  %v1872_v2 = vmul.f32 %v3015_v35, %v2743_v28 }
  0x60   : > { %v1842_v4 = vadd.f32 %v1818_v59, %v1768_v57  ;;  %v1873_v14 = vmul.f32 %v3015_v35, %v2767_v58  ;;  %v1874_v15 = vmul.f32 %v3015_v35, %v2775_v0  ;;  %v1945_v19 = vmul.f32 %v3021_v45, %v2737_v23 }
  0x61   : > { %v1859_v21 = vadd.f32 %v1851_v48, %v1841_v62  ;;  %v1905_v24 = vrot.slane %v1871_v63, 1  ;;  %v1906_v5 = vrot.slane %v1872_v2, 1  ;;  %v1946_v31 = vmul.f32 %v3021_v45, %v2743_v28 }
  0x62   : > { %v1860_v38 = vadd.f32 %v1852_v43, %v1842_v4  ;;  %v1908_v39 = vrot.slane %v1873_v14, 1  ;;  %v1909_v44 = vrot.slane %v1874_v15, 1  ;;  %v1947_v46 = vmul.f32 %v3021_v45, %v2767_v58  ;;  %v3051_v43 = vld [vmem:[%s3792_s2 + $0x2] ss:$0 sm:$0xff] }
  0x63   : > { %v1907_v47 = vsel %vm377_vm0, %v1905_v24, %v1906_v5  ;;  %v1948_v55 = vmul.f32 %v3021_v45, %v2775_v0  ;;  %v1979_v56 = vrot.slane %v1945_v19, 2  ;;  %v1980_v57 = vrot.slane %v1946_v31, 2  ;;  %3800 = vst [vmem:[#allocation2_spill] sm:$0xff] %v3051_v43 }
  0x64   : > { %v1910_v25 = vsel %vm377_vm0, %v1908_v39, %v1909_v44  ;;  %v1933_v48 = vadd.f32 %v1907_v47, %v1859_v21  ;;  %v1982_v59 = vrot.slane %v1947_v46, 2  ;;  %v331_v62 = vmul.f32 %v2566_v6, %v2737_v23 }
  0x65   : > { %v1934_v63 = vadd.f32 %v1910_v25, %v1860_v38  ;;  %v1981_v2 = vsel %vm452_vm1, %v1979_v56, %v1980_v57  ;;  %v1983_v4 = vrot.slane %v1948_v55, 2  ;;  %v332_v14 = vmul.f32 %v2566_v6, %v2767_v58 }
  0x66   : > { %v2007_v15 = vadd.f32 %v1981_v2, %v1933_v48  ;;  %v353_v19 = vmul.f32 %v2572_v7, %v2737_v23  ;;  %v354_v21 = vmul.f32 %v2572_v7, %v2743_v28  ;;  %v355_v24 = vmul.f32 %v2572_v7, %v2767_v58  ;;  %v3078_v48 = vld [vmem:[%s2582_s26 + $0x60] sm:$0xff] }
  0x67   : > { %v1984_v5 = vsel %vm452_vm1, %v1982_v59, %v1983_v4  ;;  %v356_v31 = vmul.f32 %v2572_v7, %v2775_v0  ;;  %v428_v6 = vmul.f32 %v2577_v8, %v2737_v23  ;;  %v429_v38 = vmul.f32 %v2577_v8, %v2743_v28  ;;  %v3082_v4 = vld [vmem:[%s2582_s26 + $0x68] sm:$0x3] }
  0x68   : > { %v2008_v39 = vadd.f32 %v1984_v5, %v1934_v63  ;;  %v2020_v44 = vadd.f32 %v3051_v43, %v2007_v15  ;;  %v390_v46 = vrot.slane %v353_v19, 1  ;;  %v391_v47 = vrot.slane %v354_v21, 1 }
  0x69   : > { %v393_v55 = vrot.slane %v355_v24, 1  ;;  %v394_v56 = vrot.slane %v356_v31, 1  ;;  %v430_v57 = vmul.f32 %v2577_v8, %v2767_v58  ;;  %v431_v7 = vmul.f32 %v2577_v8, %v2775_v0 }
  0x6a   : > { %v2021_v25 = vadd.f32 %v3051_v43, %v2008_v39  ;;  %v392_v59 = vsel %vm377_vm0, %v390_v46, %v391_v47  ;;  %v465_v2 = vrot.slane %v428_v6, 2  ;;  %v466_v63 = vrot.slane %v429_v38, 2 }
  0x6b   : > { %v395_v15 = vsel %vm377_vm0, %v393_v55, %v394_v56  ;;  %v414_v19 = vadd.f32 %v392_v59, %v331_v62  ;;  %v468_v21 = vrot.slane %v430_v57, 2  ;;  %v469_v24 = vrot.slane %v431_v7, 2  ;;  %v3101_v55 = vld [vmem:[%s2582_s26 + $0x70] sm:$0xff] }
  0x6c   : > { %v2027_v5 = vpack.c.bf16 %v2021_v25, %v2020_v44  ;;  %v415_v31 = vadd.f32 %v395_v15, %v332_v14  ;;  %v467_v8 = vsel %vm452_vm1, %v465_v2, %v466_v63  ;;  %v499_v39 = vmul.f32 %v2608_v17, %v2767_v58 }
  0x6d   : > { %v470_v43 = vsel %vm452_vm1, %v468_v21, %v469_v24  ;;  %v489_v46 = vadd.f32 %v467_v8, %v414_v19  ;;  %v500_v6 = vmul.f32 %v2608_v17, %v3078_v48  ;;  %v521_v38 = vmul.f32 %v2621_v22, %v2767_v58  ;;  %v3112_v21 = vld [vmem:[%s2582_s26 + $0x78] sm:$0x3] }
  0x6e   : > { %2305 = vmatmul.msk.bf16.vlgmr.msra.gmra.mxu2 %vm861_vm2, %v2027_v5  ;;  %v490_v62 = vadd.f32 %v470_v43, %v415_v31  ;;  %v522_v14 = vmul.f32 %v2621_v22, %v2775_v0  ;;  %v523_v44 = vmul.f32 %v2621_v22, %v3078_v48  ;;  %v524_v47 = vmul.f32 %v2621_v22, %v3082_v4 }
  0x6f   : > { %v507_v56 = vadd.f32 %v499_v39, %v489_v46  ;;  %v557_v17 = vrot.slane %v521_v38, 1  ;;  %v595_v57 = vmul.f32 %v2630_v27, %v2767_v58  ;;  %v596_v43 = vmul.f32 %v2630_v27, %v2775_v0 }
  0x70   : > { %v508_v7 = vadd.f32 %v500_v6, %v490_v62  ;;  %v558_v25 = vrot.slane %v522_v14, 1  ;;  %v560_v59 = vrot.slane %v523_v44, 1  ;;  %v561_v2 = vrot.slane %v524_v47, 1 }
  0x71   : > { %v597_v63 = vmul.f32 %v2630_v27, %v3078_v48  ;;  %v598_v22 = vmul.f32 %v2630_v27, %v3082_v4  ;;  %v631_v15 = vrot.slane %v595_v57, 2  ;;  %v632_v19 = vrot.slane %v596_v43, 2 }
  0x72   : > { %v559_v24 = vsel %vm377_vm0, %v557_v17, %v558_v25  ;;  %v562_v5 = vsel %vm377_vm0, %v560_v59, %v561_v2  ;;  %v665_v31 = vmul.f32 %v2659_v50, %v3078_v48  ;;  %v666_v8 = vmul.f32 %v2659_v50, %v3101_v55 }
  0x73   : > { %v581_v39 = vadd.f32 %v559_v24, %v507_v56  ;;  %v582_v46 = vadd.f32 %v562_v5, %v508_v7  ;;  %v633_v6 = vsel %vm452_vm1, %v631_v15, %v632_v19  ;;  %v634_v38 = vrot.slane %v597_v63, 2 }
  0x74   : > { %v635_v27 = vrot.slane %v598_v22, 2  ;;  %v687_v62 = vmul.f32 %v2664_v51, %v3078_v48  ;;  %v688_v14 = vmul.f32 %v2664_v51, %v3082_v4  ;;  %v689_v44 = vmul.f32 %v2664_v51, %v3101_v55 }
  0x75   : > { %v655_v47 = vadd.f32 %v633_v6, %v581_v39  ;;  %v690_v17 = vmul.f32 %v2664_v51, %v3112_v21  ;;  %v761_v50 = vmul.f32 %v2679_v1, %v3078_v48  ;;  %v762_v56 = vmul.f32 %v2679_v1, %v3082_v4 }
  0x76   : > { %v636_v57 = vsel %vm452_vm1, %v634_v38, %v635_v27  ;;  %v723_v43 = vrot.slane %v687_v62, 1  ;;  %v724_v7 = vrot.slane %v688_v14, 1  ;;  %v726_v25 = vrot.slane %v689_v44, 1 }
  0x77   : > { %v656_v59 = vadd.f32 %v636_v57, %v582_v46  ;;  %v673_v2 = vadd.f32 %v665_v31, %v655_v47  ;;  %v727_v63 = vrot.slane %v690_v17, 1  ;;  %v763_v22 = vmul.f32 %v2679_v1, %v3101_v55 }
  0x78   : > { %v725_v15 = vsel %vm377_vm0, %v723_v43, %v724_v7  ;;  %v764_v51 = vmul.f32 %v2679_v1, %v3112_v21  ;;  %v797_v19 = vrot.slane %v761_v50, 2  ;;  %v798_v24 = vrot.slane %v762_v56, 2 }
  0x79   : > { %v674_v5 = vadd.f32 %v666_v8, %v656_v59  ;;  %v728_v39 = vsel %vm377_vm0, %v726_v25, %v727_v63  ;;  %v747_v6 = vadd.f32 %v725_v15, %v673_v2  ;;  %v800_v38 = vrot.slane %v763_v22, 2  ;;  %v3163_v22 = vld [vmem:[%s2582_s26 + $0x10] sm:$0xff]  ;;  %v3170_v15 = vld [vmem:[%s2582_s26 + $0x18] sm:$0x3] }
  0x7a   : > { %v799_v27 = vsel %vm452_vm1, %v797_v19, %v798_v24  ;;  %v801_v46 = vrot.slane %v764_v51, 2  ;;  %v922_v31 = vmul.f32 %v2798_v36, %v2586_v9  ;;  %v923_v62 = vmul.f32 %v2798_v36, %v2592_v11 }
  0x7b   : > { %v748_v14 = vadd.f32 %v728_v39, %v674_v5  ;;  %v821_v1 = vadd.f32 %v799_v27, %v747_v6  ;;  %v940_v8 = vmul.f32 %v2805_v42, %v2586_v9  ;;  %v941_v44 = vmul.f32 %v2805_v42, %v2589_v10  ;;  %v3158_v10 = vld [vmem:[%s2582_s26 + $0x8] sm:$0x3] }
  0x7c   : > { %v802_v47 = vsel %vm452_vm1, %v800_v38, %v801_v46  ;;  %v942_v17 = vmul.f32 %v2805_v42, %v2592_v11  ;;  %v943_v50 = vmul.f32 %v2805_v42, %v2595_v12  ;;  %v1014_v56 = vmul.f32 %v2816_v54, %v2586_v9 }
  0x7d   : > { %v822_v57 = vadd.f32 %v802_v47, %v748_v14  ;;  %v833_v43 = vadd.f32 %v2712_v49, %v821_v1  ;;  %v972_v7 = vrot.slane %v940_v8, 1  ;;  %v973_v25 = vrot.slane %v941_v44, 1 }
  0x7e   : > { %v975_v59 = vrot.slane %v942_v17, 1  ;;  %v976_v2 = vrot.slane %v943_v50, 1  ;;  %v1015_v63 = vmul.f32 %v3158_v10, %v2816_v54  ;;  %v1016_v11 = vmul.f32 %v3163_v22, %v2816_v54 }
  0x7f   : > { %v834_v12 = vadd.f32 %v2712_v49, %v822_v57  ;;  %v974_v9 = vsel %vm377_vm0, %v972_v7, %v973_v25  ;;  %v1017_v51 = vmul.f32 %v3170_v15, %v2816_v54  ;;  %v1046_v19 = vrot.slane %v1014_v56, 2 }
  0x80   : > { %v977_v24 = vsel %vm377_vm0, %v975_v59, %v976_v2  ;;  %v1004_v5 = vadd.f32 %v974_v9, %v922_v31  ;;  %v1047_v39 = vrot.slane %v1015_v63, 2  ;;  %v1049_v6 = vrot.slane %v1016_v11, 2 }
  0x81   : > { %v839_v38 = vpack.c.bf16 %v834_v12, %v833_v43  ;;  %v1005_v27 = vadd.f32 %v977_v24, %v923_v62  ;;  %v1050_v46 = vrot.slane %v1017_v51, 2  ;;  %v1088_v14 = vmul.f32 %v3163_v22, %v2840_v29 }
  0x82   : > { %v1048_v49 = vsel %vm452_vm1, %v1046_v19, %v1047_v39  ;;  %v1089_v1 = vmul.f32 %v2840_v29, %v2633_v32  ;;  %v1106_v8 = vmul.f32 %v3163_v22, %v2845_v30  ;;  %v1107_v44 = vmul.f32 %v3170_v15, %v2845_v30 }
  0x83   : > { %2252 = vmatmul.msk.bf16.gmra.mxu3 %vm861_vm2, %v839_v38  ;;  %v1051_v31 = vsel %vm452_vm1, %v1049_v6, %v1050_v46  ;;  %v1078_v62 = vadd.f32 %v1048_v49, %v1004_v5  ;;  %v1108_v47 = vmul.f32 %v2845_v30, %v2633_v32  ;;  %v1109_v17 = vmul.f32 %v2845_v30, %v2643_v41  ;;  %v3196_v32 = vld [vmem:[%s2582_s26 + $0x20] sm:$0xff] }
  0x84   : > { %v1079_v50 = vadd.f32 %v1051_v31, %v1005_v27  ;;  %v1138_v56 = vrot.slane %v1106_v8, 1  ;;  %v1139_v57 = vrot.slane %v1107_v44, 1  ;;  %v1180_v43 = vmul.f32 %v3163_v22, %v2857_v40 }
  0x85   : > { %v1096_v7 = vadd.f32 %v1088_v14, %v1078_v62  ;;  %v1141_v25 = vrot.slane %v1108_v47, 1  ;;  %v1142_v59 = vrot.slane %v1109_v17, 1  ;;  %v1181_v2 = vmul.f32 %v3170_v15, %v2857_v40 }
  0x86   : > { %v1097_v63 = vadd.f32 %v1089_v1, %v1079_v50  ;;  %v1140_v11 = vsel %vm377_vm0, %v1138_v56, %v1139_v57  ;;  %v1182_v12 = vmul.f32 %v3196_v32, %v2857_v40  ;;  %v1183_v9 = vmul.f32 %v2857_v40, %v2643_v41  ;;  %v3211_v41 = vld [vmem:[%s2582_s26 + $0x28] sm:$0x3] }
  0x87   : > { %v1143_v51 = vsel %vm377_vm0, %v1141_v25, %v1142_v59  ;;  %v1170_v19 = vadd.f32 %v1140_v11, %v1096_v7  ;;  %v1212_v24 = vrot.slane %v1180_v43, 2  ;;  %v1213_v5 = vrot.slane %v1181_v2, 2 }
  0x88   : > { %v1171_v39 = vadd.f32 %v1143_v51, %v1097_v63  ;;  %v1215_v6 = vrot.slane %v1182_v12, 2  ;;  %v1216_v38 = vrot.slane %v1183_v9, 2  ;;  %v1254_v27 = vmul.f32 %v3196_v32, %v2875_v61 }
  0x89   : > { %v1214_v46 = vsel %vm452_vm1, %v1212_v24, %v1213_v5  ;;  %v1255_v14 = vmul.f32 %v2875_v61, %v2671_v60  ;;  %v1272_v49 = vmul.f32 %v3196_v32, %v2886_v18  ;;  %v1273_v1 = vmul.f32 %v3211_v41, %v2886_v18 }
  0x8a   : > { %v1217_v8 = vsel %vm452_vm1, %v1215_v6, %v1216_v38  ;;  %v1244_v44 = vadd.f32 %v1214_v46, %v1170_v19  ;;  %v1274_v31 = vmul.f32 %v2886_v18, %v2671_v60  ;;  %v1275_v62 = vmul.f32 %v2886_v18, %v2682_v3 }
  0x8b   : > { %v1245_v47 = vadd.f32 %v1217_v8, %v1171_v39  ;;  %v1304_v17 = vrot.slane %v1272_v49, 1  ;;  %v1305_v50 = vrot.slane %v1273_v1, 1  ;;  %v1346_v56 = vmul.f32 %v3196_v32, %v2898_v33 }
  0x8c   : > { %v1262_v57 = vadd.f32 %v1254_v27, %v1244_v44  ;;  %v1307_v43 = vrot.slane %v1274_v31, 1  ;;  %v1308_v7 = vrot.slane %v1275_v62, 1  ;;  %v1347_v25 = vmul.f32 %v3211_v41, %v2898_v33 }
  0x8d   : > { %v1263_v59 = vadd.f32 %v1255_v14, %v1245_v47  ;;  %v1306_v2 = vsel %vm377_vm0, %v1304_v17, %v1305_v50  ;;  %v1348_v63 = vmul.f32 %v2898_v33, %v2671_v60  ;;  %v1349_v11 = vmul.f32 %v2898_v33, %v2682_v3 }
  0x8e   : > { %v1309_v12 = vsel %vm377_vm0, %v1307_v43, %v1308_v7  ;;  %v1336_v9 = vadd.f32 %v1306_v2, %v1262_v57  ;;  %v1378_v51 = vrot.slane %v1346_v56, 2  ;;  %v1379_v19 = vrot.slane %v1347_v25, 2 }
  0x8f   : > { %v1337_v24 = vadd.f32 %v1309_v12, %v1263_v59  ;;  %v1381_v5 = vrot.slane %v1348_v63, 2  ;;  %v1382_v39 = vrot.slane %v1349_v11, 2  ;;  %v926_v6 = vmul.f32 %v2798_v36, %v2737_v23 }
  0x90   : > { %v1380_v38 = vsel %vm452_vm1, %v1378_v51, %v1379_v19  ;;  %v927_v27 = vmul.f32 %v2798_v36, %v2767_v58  ;;  %v948_v60 = vmul.f32 %v2805_v42, %v2737_v23  ;;  %v949_v3 = vmul.f32 %v2805_v42, %v2743_v28 }
  0x91   : > { %v1383_v46 = vsel %vm452_vm1, %v1381_v5, %v1382_v39  ;;  %v1410_v14 = vadd.f32 %v1380_v38, %v1336_v9  ;;  %v950_v49 = vmul.f32 %v2805_v42, %v2767_v58  ;;  %v951_v1 = vmul.f32 %v2805_v42, %v2775_v0 }
  0x92   : > { %v1411_v8 = vadd.f32 %v1383_v46, %v1337_v24  ;;  %v984_v44 = vrot.slane %v948_v60, 1  ;;  %v985_v31 = vrot.slane %v949_v3, 1  ;;  %v1022_v36 = vmul.f32 %v2816_v54, %v2737_v23 }
  0x93   : > { %v1423_v62 = vadd.f32 %v2943_v37, %v1410_v14  ;;  %v987_v47 = vrot.slane %v950_v49, 1  ;;  %v988_v17 = vrot.slane %v951_v1, 1  ;;  %v1023_v50 = vmul.f32 %v2816_v54, %v2743_v28 }
  0x94   : > { %v1424_v56 = vadd.f32 %v2943_v37, %v1411_v8  ;;  %v986_v57 = vsel %vm377_vm0, %v984_v44, %v985_v31  ;;  %v1024_v42 = vmul.f32 %v2816_v54, %v2767_v58  ;;  %v1025_v43 = vmul.f32 %v2816_v54, %v2775_v0 }
  0x95   : > { %v989_v7 = vsel %vm377_vm0, %v987_v47, %v988_v17  ;;  %v1008_v23 = vadd.f32 %v986_v57, %v926_v6  ;;  %v1058_v25 = vrot.slane %v1022_v36, 2  ;;  %v1059_v59 = vrot.slane %v1023_v50, 2 }
  0x96   : > { %v1431_v2 = vpack.c.bf16 %v1424_v56, %v1423_v62  ;;  %v1009_v63 = vadd.f32 %v989_v7, %v927_v27  ;;  %v1061_v11 = vrot.slane %v1024_v42, 2  ;;  %v1062_v12 = vrot.slane %v1025_v43, 2 }
  0x97   : > { %v1060_v28 = vsel %vm452_vm1, %v1058_v25, %v1059_v59  ;;  %v1092_v9 = vmul.f32 %v2840_v29, %v2767_v58  ;;  %v1093_v51 = vmul.f32 %v2840_v29, %v3078_v48  ;;  %v1114_v54 = vmul.f32 %v2845_v30, %v2767_v58 }
  0x98   : > { %2277 = vmatmul.msk.bf16.vlgmr.msrb.gmra.mxu0 %vm861_vm2, %v1431_v2  ;;  %v1063_v19 = vsel %vm452_vm1, %v1061_v11, %v1062_v12  ;;  %v1082_v24 = vadd.f32 %v1060_v28, %v1008_v23  ;;  %v1115_v5 = vmul.f32 %v2845_v30, %v2775_v0  ;;  %v1116_v39 = vmul.f32 %v2845_v30, %v3078_v48 }
  0x99   : > { %v1083_v6 = vadd.f32 %v1063_v19, %v1009_v63  ;;  %v1117_v38 = vmul.f32 %v2845_v30, %v3082_v4  ;;  %v1150_v27 = vrot.slane %v1114_v54, 1  ;;  %v1188_v29 = vmul.f32 %v2857_v40, %v2767_v58 }
  0x9a   : > { %v1100_v60 = vadd.f32 %v1092_v9, %v1082_v24  ;;  %v1151_v3 = vrot.slane %v1115_v5, 1  ;;  %v1153_v46 = vrot.slane %v1116_v39, 1  ;;  %v1189_v14 = vmul.f32 %v2857_v40, %v2775_v0 }
  0x9b   : > { %v1101_v49 = vadd.f32 %v1093_v51, %v1083_v6  ;;  %v1154_v1 = vrot.slane %v1117_v38, 1  ;;  %v1190_v8 = vmul.f32 %v2857_v40, %v3078_v48  ;;  %v1191_v44 = vmul.f32 %v2857_v40, %v3082_v4  ;;  %v2441_v38 = vld [vmem:[%s2582_s26 + $0x40] sm:$0xff] }
  0x9c   : > { %v1152_v30 = vsel %vm377_vm0, %v1150_v27, %v1151_v3  ;;  %v1224_v31 = vrot.slane %v1188_v29, 2  ;;  %v1225_v36 = vrot.slane %v1189_v14, 2  ;;  %v1258_v62 = vmul.f32 %v2875_v61, %v3078_v48 }
  0x9d   : > { %v1155_v47 = vsel %vm377_vm0, %v1153_v46, %v1154_v1  ;;  %v1174_v17 = vadd.f32 %v1152_v30, %v1100_v60  ;;  %v1227_v50 = vrot.slane %v1190_v8, 2  ;;  %v1228_v56 = vrot.slane %v1191_v44, 2  ;;  %v2442_v30 = vld [vmem:[%s2582_s26 + $0x48] sm:$0x3] }
  0x9e   : > { %v1175_v57 = vadd.f32 %v1155_v47, %v1101_v49  ;;  %v1226_v42 = vsel %vm452_vm1, %v1224_v31, %v1225_v36  ;;  %v1259_v43 = vmul.f32 %v2875_v61, %v3101_v55  ;;  %v1280_v40 = vmul.f32 %v2886_v18, %v3078_v48 }
  0x9f   : > { %v1229_v7 = vsel %vm452_vm1, %v1227_v50, %v1228_v56  ;;  %v1248_v23 = vadd.f32 %v1226_v42, %v1174_v17  ;;  %v1281_v25 = vmul.f32 %v2886_v18, %v3082_v4  ;;  %v1282_v59 = vmul.f32 %v2886_v18, %v3101_v55 }
  0xa0   : > { %v1249_v2 = vadd.f32 %v1229_v7, %v1175_v57  ;;  %v1283_v63 = vmul.f32 %v2886_v18, %v3112_v21  ;;  %v1316_v11 = vrot.slane %v1280_v40, 1  ;;  %v1354_v61 = vmul.f32 %v2898_v33, %v3078_v48  ;;  %v2443_v7 = vld [vmem:[%s2582_s26 + $0x50] sm:$0xff] }
  0xa1   : > { %v1266_v12 = vadd.f32 %v1258_v62, %v1248_v23  ;;  %v1317_v28 = vrot.slane %v1281_v25, 1  ;;  %v1319_v9 = vrot.slane %v1282_v59, 1  ;;  %v1355_v51 = vmul.f32 %v2898_v33, %v3082_v4 }
  0xa2   : > { %v1267_v54 = vadd.f32 %v1259_v43, %v1249_v2  ;;  %v1320_v19 = vrot.slane %v1283_v63, 1  ;;  %v1356_v24 = vmul.f32 %v2898_v33, %v3101_v55  ;;  %v1357_v5 = vmul.f32 %v2898_v33, %v3112_v21 }
  0xa3   : > { %v1318_v18 = vsel %vm377_vm0, %v1316_v11, %v1317_v28  ;;  %v1390_v39 = vrot.slane %v1354_v61, 2  ;;  %v1391_v6 = vrot.slane %v1355_v51, 2  ;;  %v1521_v27 = vmul.f32 %v2441_v38, %v2914_v53 }
  0xa4   : > { %v1321_v29 = vsel %vm377_vm0, %v1319_v9, %v1320_v19  ;;  %v1340_v60 = vadd.f32 %v1318_v18, %v1266_v12  ;;  %v1393_v3 = vrot.slane %v1356_v24, 2  ;;  %v1394_v46 = vrot.slane %v1357_v5, 2 }
  0xa5   : > { %v1341_v14 = vadd.f32 %v1321_v29, %v1267_v54  ;;  %v1392_v49 = vsel %vm452_vm1, %v1390_v39, %v1391_v6  ;;  %v1522_v1 = vmul.f32 %v2914_v53, %v2767_v58  ;;  %v1543_v33 = vmul.f32 %v2441_v38, %v2925_v13  ;;  %v2444_v54 = vld [vmem:[%s2582_s26 + $0x58] sm:$0x3] }
  0xa6   : > { %v1395_v8 = vsel %vm452_vm1, %v1393_v3, %v1394_v46  ;;  %v1414_v44 = vadd.f32 %v1392_v49, %v1340_v60  ;;  %v1544_v31 = vmul.f32 %v2442_v30, %v2925_v13  ;;  %v1545_v36 = vmul.f32 %v2925_v13, %v2767_v58 }
  0xa7   : > { %v1415_v62 = vadd.f32 %v1395_v8, %v1341_v14  ;;  %v1546_v47 = vmul.f32 %v2925_v13, %v2775_v0  ;;  %v1579_v17 = vrot.slane %v1543_v33, 1  ;;  %v1617_v50 = vmul.f32 %v2441_v38, %v2937_v26 }
  0xa8   : > { %v1427_v53 = vadd.f32 %v2943_v37, %v1414_v44  ;;  %v1580_v56 = vrot.slane %v1544_v31, 1  ;;  %v1582_v57 = vrot.slane %v1545_v36, 1  ;;  %v1618_v42 = vmul.f32 %v2442_v30, %v2937_v26 }
  0xa9   : > { %v1428_v43 = vadd.f32 %v2943_v37, %v1415_v62  ;;  %v1583_v40 = vrot.slane %v1546_v47, 1  ;;  %v1619_v23 = vmul.f32 %v2443_v7, %v2937_v26  ;;  %v1620_v58 = vmul.f32 %v2937_v26, %v2775_v0 }
  0xaa   : > { %v1581_v13 = vsel %vm377_vm0, %v1579_v17, %v1580_v56  ;;  %v1653_v25 = vrot.slane %v1617_v50, 2  ;;  %v1654_v59 = vrot.slane %v1618_v42, 2  ;;  %v1687_v2 = vmul.f32 %v2443_v7, %v2958_v52 }
  0xab   : > { %v1433_v63 = vpack.c.bf16 %v1428_v43, %v1427_v53  ;;  %v1584_v11 = vsel %vm377_vm0, %v1582_v57, %v1583_v40  ;;  %v1603_v61 = vadd.f32 %v1581_v13, %v1521_v27  ;;  %v1656_v12 = vrot.slane %v1619_v23, 2 }
  0xac   : > { %v1604_v37 = vadd.f32 %v1584_v11, %v1522_v1  ;;  %v1655_v28 = vsel %vm452_vm1, %v1653_v25, %v1654_v59  ;;  %v1657_v9 = vrot.slane %v1620_v58, 2  ;;  %v1688_v51 = vmul.f32 %v2958_v52, %v3078_v48 }
  0xad   : > { %2279 = vmatmul.msk.bf16.gmra.mxu1 %vm861_vm2, %v1433_v63  ;;  %v1677_v0 = vadd.f32 %v1655_v28, %v1603_v61  ;;  %v1709_v26 = vmul.f32 %v2443_v7, %v2975_v20  ;;  %v1710_v19 = vmul.f32 %v2444_v54, %v2975_v20  ;;  %v1711_v24 = vmul.f32 %v2975_v20, %v3078_v48 }
  0xae   : > { %v1658_v5 = vsel %vm452_vm1, %v1656_v12, %v1657_v9  ;;  %v1712_v18 = vmul.f32 %v2975_v20, %v3082_v4  ;;  %v1783_v39 = vmul.f32 %v2443_v7, %v2983_v34  ;;  %v1784_v52 = vmul.f32 %v2444_v54, %v2983_v34  ;;  %v2445_v9 = vld [vmem:[%s3791_s1] ss:$0 sm:$0xff] }
  0xaf   : > { %v1678_v6 = vadd.f32 %v1658_v5, %v1604_v37  ;;  %v1695_v38 = vadd.f32 %v1687_v2, %v1677_v0  ;;  %v1745_v27 = vrot.slane %v1709_v26, 1  ;;  %v1746_v29 = vrot.slane %v1710_v19, 1 }
  0xb0   : > { %v1748_v60 = vrot.slane %v1711_v24, 1  ;;  %v1749_v3 = vrot.slane %v1712_v18, 1  ;;  %v1785_v46 = vmul.f32 %v2983_v34, %v3078_v48  ;;  %v1786_v14 = vmul.f32 %v2983_v34, %v3082_v4 }
  0xb1   : > { %v1696_v49 = vadd.f32 %v1688_v51, %v1678_v6  ;;  %v1747_v1 = vsel %vm377_vm0, %v1745_v27, %v1746_v29  ;;  %v1819_v20 = vrot.slane %v1783_v39, 2  ;;  %v1820_v33 = vrot.slane %v1784_v52, 2 }
  0xb2   : > { %v1750_v8 = vsel %vm377_vm0, %v1748_v60, %v1749_v3  ;;  %v1769_v44 = vadd.f32 %v1747_v1, %v1695_v38  ;;  %v1822_v30 = vrot.slane %v1785_v46, 2  ;;  %v1823_v31 = vrot.slane %v1786_v14, 2  ;;  %v2447_v38 = vld [vmem:[%s3791_s1 + $0x2] ss:$0 sm:$0xff] }
  0xb3   : > { %v1770_v36 = vadd.f32 %v1750_v8, %v1696_v49  ;;  %v1821_v62 = vsel %vm452_vm1, %v1819_v20, %v1820_v33  ;;  %v1853_v47 = vmul.f32 %v3006_v16, %v3078_v48  ;;  %v1854_v17 = vmul.f32 %v3006_v16, %v3101_v55  ;;  %v3801_v3 = vld [vmem:[#allocation2_spill] sm:$0xff] }
  0xb4   : > { %v1824_v34 = vsel %vm452_vm1, %v1822_v30, %v1823_v31  ;;  %v1843_v50 = vadd.f32 %v1821_v62, %v1769_v44  ;;  %v1875_v53 = vmul.f32 %v3015_v35, %v3078_v48  ;;  %v1876_v56 = vmul.f32 %v3015_v35, %v3082_v4  ;;  %v3397_v30 = vld [vmem:[%s2582_s26 + $0x80] sm:$0xff] }
  0xb5   : > { %v1844_v57 = vadd.f32 %v1824_v34, %v1770_v36  ;;  %v1877_v42 = vmul.f32 %v3015_v35, %v3101_v55  ;;  %v1878_v43 = vmul.f32 %v3015_v35, %v3112_v21  ;;  %v1949_v40 = vmul.f32 %v3021_v45, %v3078_v48 }
  0xb6   : > { %v1861_v16 = vadd.f32 %v1853_v47, %v1843_v50  ;;  %v1911_v7 = vrot.slane %v1875_v53, 1  ;;  %v1912_v23 = vrot.slane %v1876_v56, 1  ;;  %v1950_v58 = vmul.f32 %v3021_v45, %v3082_v4  ;;  %v3401_v47 = vld [vmem:[%s2582_s26 + $0x88] sm:$0x3] }
  0xb7   : > { %v1862_v13 = vadd.f32 %v1854_v17, %v1844_v57  ;;  %v1914_v25 = vrot.slane %v1877_v42, 1  ;;  %v1915_v59 = vrot.slane %v1878_v43, 1  ;;  %v1951_v2 = vmul.f32 %v3021_v45, %v3101_v55  ;;  %v2448_v43 = vld [vmem:[%s3791_s1 + $0x3] ss:$0 sm:$0xff] }
  0xb8   : > { %v1913_v63 = vsel %vm377_vm0, %v1911_v7, %v1912_v23  ;;  %v1952_v35 = vmul.f32 %v3021_v45, %v3112_v21  ;;  %v1985_v11 = vrot.slane %v1949_v40, 2  ;;  %v1986_v61 = vrot.slane %v1950_v58, 2  ;;  %v2446_v45 = vld [vmem:[%s3791_s1 + $0x1] ss:$0 sm:$0xff]  ;;  %v2449_v58 = vld [vmem:[%s3791_s1 + $0x4] ss:$0 sm:$0xff] }
  0xb9   : > { %v1916_v12 = vsel %vm377_vm0, %v1914_v25, %v1915_v59  ;;  %v1935_v37 = vadd.f32 %v1913_v63, %v1861_v16  ;;  %v1988_v28 = vrot.slane %v1951_v2, 2  ;;  %v333_v51 = vmul.f32 %v2445_v9, %v3078_v48 }
  0xba   : > { %v1936_v0 = vadd.f32 %v1916_v12, %v1862_v13  ;;  %v1987_v26 = vsel %vm452_vm1, %v1985_v11, %v1986_v61  ;;  %v1989_v54 = vrot.slane %v1952_v35, 2  ;;  %v334_v19 = vmul.f32 %v2445_v9, %v3101_v55  ;;  %v3420_v35 = vld [vmem:[%s2582_s26 + $0x90] sm:$0xff]  ;;  %v2450_v12 = vld [vmem:[%s3791_s1 + $0x5] ss:$0 sm:$0xff] }
  0xbb   : > { %v2009_v24 = vadd.f32 %v1987_v26, %v1935_v37  ;;  %v357_v5 = vmul.f32 %v2446_v45, %v3078_v48  ;;  %v358_v18 = vmul.f32 %v2446_v45, %v3082_v4  ;;  %v359_v39 = vmul.f32 %v2446_v45, %v3101_v55 }
  0xbc   : > { %v1990_v52 = vsel %vm452_vm1, %v1988_v28, %v1989_v54  ;;  %v360_v6 = vmul.f32 %v2446_v45, %v3112_v21  ;;  %v432_v27 = vmul.f32 %v2447_v38, %v3078_v48  ;;  %v433_v29 = vmul.f32 %v2447_v38, %v3082_v4 }
  0xbd   : > { %v2010_v60 = vadd.f32 %v1990_v52, %v1936_v0  ;;  %v2022_v46 = vadd.f32 %v3801_v3, %v2009_v24  ;;  %v396_v14 = vrot.slane %v357_v5, 1  ;;  %v397_v49 = vrot.slane %v358_v18, 1  ;;  %v3430_v5 = vld [vmem:[%s2582_s26 + $0x98] sm:$0x3]  ;;  %v2451_v52 = vld [vmem:[%s3791_s1 + $0x6] ss:$0 sm:$0xff] }
  0xbe   : > { %v399_v1 = vrot.slane %v359_v39, 1  ;;  %v400_v20 = vrot.slane %v360_v6, 1  ;;  %v434_v33 = vmul.f32 %v2447_v38, %v3101_v55  ;;  %v435_v8 = vmul.f32 %v2447_v38, %v3112_v21 }
  0xbf   : > { %v2023_v44 = vadd.f32 %v3801_v3, %v2010_v60  ;;  %v398_v31 = vsel %vm377_vm0, %v396_v14, %v397_v49  ;;  %v471_v36 = vrot.slane %v432_v27, 2  ;;  %v472_v62 = vrot.slane %v433_v29, 2  ;;  %v2452_v14 = vld [vmem:[%s3791_s1 + $0x7] ss:$0 sm:$0xff] }
  0xc0   : > { %v401_v17 = vsel %vm377_vm0, %v399_v1, %v400_v20  ;;  %v416_v34 = vadd.f32 %v398_v31, %v333_v51  ;;  %v474_v50 = vrot.slane %v434_v33, 2  ;;  %v475_v53 = vrot.slane %v435_v8, 2 }
  0xc1   : > { %v2028_v56 = vpack.c.bf16 %v2023_v44, %v2022_v46  ;;  %v417_v57 = vadd.f32 %v401_v17, %v334_v19  ;;  %v473_v42 = vsel %vm452_vm1, %v471_v36, %v472_v62  ;;  %v501_v40 = vmul.f32 %v2448_v43, %v3101_v55  ;;  %v2453_v44 = vld [vmem:[%s3791_s1 + $0x8] ss:$0 sm:$0xff] }
  0xc2   : > { %v476_v16 = vsel %vm452_vm1, %v474_v50, %v475_v53  ;;  %v491_v7 = vadd.f32 %v473_v42, %v416_v34  ;;  %v502_v23 = vmul.f32 %v2448_v43, %v3397_v30  ;;  %v525_v13 = vmul.f32 %v2449_v58, %v3101_v55 }
  0xc3   : > { %2306 = vmatmul.msk.bf16.gmra.mxu2 %vm861_vm2, %v2028_v56  ;;  %v492_v25 = vadd.f32 %v476_v16, %v417_v57  ;;  %v526_v59 = vmul.f32 %v2449_v58, %v3112_v21  ;;  %v527_v2 = vmul.f32 %v2449_v58, %v3397_v30  ;;  %v528_v63 = vmul.f32 %v2449_v58, %v3401_v47 }
  0xc4   : > { %v509_v11 = vadd.f32 %v501_v40, %v491_v7  ;;  %v563_v61 = vrot.slane %v525_v13, 1  ;;  %v599_v37 = vmul.f32 %v2450_v12, %v3101_v55  ;;  %v600_v28 = vmul.f32 %v2450_v12, %v3112_v21 }
  0xc5   : > { %v510_v9 = vadd.f32 %v502_v23, %v492_v25  ;;  %v564_v51 = vrot.slane %v526_v59, 1  ;;  %v566_v0 = vrot.slane %v527_v2, 1  ;;  %v567_v26 = vrot.slane %v528_v63, 1  ;;  %v2454_v63 = vld [vmem:[%s3791_s1 + $0x10] ss:$0 sm:$0xff] }
  0xc6   : > { %v601_v54 = vmul.f32 %v2450_v12, %v3397_v30  ;;  %v602_v19 = vmul.f32 %v2450_v12, %v3401_v47  ;;  %v637_v24 = vrot.slane %v599_v37, 2  ;;  %v638_v45 = vrot.slane %v600_v28, 2  ;;  %v2455_v28 = vld [vmem:[%s3791_s1 + $0x11] ss:$0 sm:$0xff] }
  0xc7   : > { %v565_v18 = vsel %vm377_vm0, %v563_v61, %v564_v51  ;;  %v568_v39 = vsel %vm377_vm0, %v566_v0, %v567_v26  ;;  %v667_v6 = vmul.f32 %v2451_v52, %v3397_v30  ;;  %v668_v38 = vmul.f32 %v2451_v52, %v3420_v35 }
  0xc8   : > { %v583_v27 = vadd.f32 %v565_v18, %v509_v11  ;;  %v584_v29 = vadd.f32 %v568_v39, %v510_v9  ;;  %v639_v60 = vsel %vm452_vm1, %v637_v24, %v638_v45  ;;  %v640_v3 = vrot.slane %v601_v54, 2  ;;  %v2457_v18 = vld [vmem:[%s3792_s2] ss:$0 sm:$0xff] }
  0xc9   : > { %v641_v46 = vrot.slane %v602_v19, 2  ;;  %v691_v49 = vmul.f32 %v2452_v14, %v3397_v30  ;;  %v692_v1 = vmul.f32 %v2452_v14, %v3401_v47  ;;  %v693_v20 = vmul.f32 %v2452_v14, %v3420_v35  ;;  %v2456_v19 = vld [vmem:[%s3791_s1 + $0x12] ss:$0 sm:$0xff] }
  0xca   : > { %v657_v33 = vadd.f32 %v639_v60, %v583_v27  ;;  %v694_v8 = vmul.f32 %v2452_v14, %v3430_v5  ;;  %v765_v31 = vmul.f32 %v2453_v44, %v3397_v30  ;;  %v766_v36 = vmul.f32 %v2453_v44, %v3401_v47 }
  0xcb   : > { %v642_v62 = vsel %vm452_vm1, %v640_v3, %v641_v46  ;;  %v729_v17 = vrot.slane %v691_v49, 1  ;;  %v730_v34 = vrot.slane %v692_v1, 1  ;;  %v732_v50 = vrot.slane %v693_v20, 1 }
  0xcc   : > { %v658_v53 = vadd.f32 %v642_v62, %v584_v29  ;;  %v675_v56 = vadd.f32 %v667_v6, %v657_v33  ;;  %v733_v57 = vrot.slane %v694_v8, 1  ;;  %v767_v42 = vmul.f32 %v2453_v44, %v3420_v35 }
  0xcd   : > { %v731_v43 = vsel %vm377_vm0, %v729_v17, %v730_v34  ;;  %v768_v40 = vmul.f32 %v2453_v44, %v3430_v5  ;;  %v803_v16 = vrot.slane %v765_v31, 2  ;;  %v804_v7 = vrot.slane %v766_v36, 2  ;;  %v2459_v34 = vld [vmem:[%s3791_s1 + $0x14] ss:$0 sm:$0xff] }
  0xce   : > { %v676_v23 = vadd.f32 %v668_v38, %v658_v53  ;;  %v734_v58 = vsel %vm377_vm0, %v732_v50, %v733_v57  ;;  %v749_v13 = vadd.f32 %v731_v43, %v675_v56  ;;  %v806_v25 = vrot.slane %v767_v42, 2 }
  0xcf   : > { %v805_v59 = vsel %vm452_vm1, %v803_v16, %v804_v7  ;;  %v807_v2 = vrot.slane %v768_v40, 2  ;;  %v928_v11 = vmul.f32 %v2454_v63, %v3078_v48  ;;  %v929_v61 = vmul.f32 %v2454_v63, %v3101_v55 }
  0xd0   : > { %v750_v12 = vadd.f32 %v734_v58, %v676_v23  ;;  %v823_v37 = vadd.f32 %v805_v59, %v749_v13  ;;  %v952_v9 = vmul.f32 %v2455_v28, %v3078_v48  ;;  %v953_v51 = vmul.f32 %v2455_v28, %v3082_v4  ;;  %v2460_v23 = vld [vmem:[%s3791_s1 + $0x15] ss:$0 sm:$0xff] }
  0xd1   : > { %v808_v0 = vsel %vm452_vm1, %v806_v25, %v807_v2  ;;  %v954_v26 = vmul.f32 %v2455_v28, %v3101_v55  ;;  %v955_v54 = vmul.f32 %v2455_v28, %v3112_v21  ;;  %v1026_v24 = vmul.f32 %v2456_v19, %v3078_v48 }
  0xd2   : > { %v824_v45 = vadd.f32 %v808_v0, %v750_v12  ;;  %v835_v39 = vadd.f32 %v2457_v18, %v823_v37  ;;  %v990_v52 = vrot.slane %v952_v9, 1  ;;  %v991_v6 = vrot.slane %v953_v51, 1 }
  0xd3   : > { %v993_v38 = vrot.slane %v954_v26, 1  ;;  %v994_v27 = vrot.slane %v955_v54, 1  ;;  %v1027_v29 = vmul.f32 %v2456_v19, %v3082_v4  ;;  %v1028_v60 = vmul.f32 %v2456_v19, %v3101_v55  ;;  %v2458_v4 = vld [vmem:[%s3791_s1 + $0x13] ss:$0 sm:$0xff]  ;;  %v2461_v54 = vld [vmem:[%s3791_s1 + $0x16] ss:$0 sm:$0xff] }
  0xd4   : > { %v836_v3 = vadd.f32 %v2457_v18, %v824_v45  ;;  %v992_v46 = vsel %vm377_vm0, %v990_v52, %v991_v6  ;;  %v1029_v14 = vmul.f32 %v2456_v19, %v3112_v21  ;;  %v1064_v48 = vrot.slane %v1026_v24, 2  ;;  %v2462_v45 = vld [vmem:[%s3791_s1 + $0x17] ss:$0 sm:$0xff] }
  0xd5   : > { %v995_v49 = vsel %vm377_vm0, %v993_v38, %v994_v27  ;;  %v1010_v1 = vadd.f32 %v992_v46, %v928_v11  ;;  %v1065_v20 = vrot.slane %v1027_v29, 2  ;;  %v1067_v33 = vrot.slane %v1028_v60, 2  ;;  %v2463_v46 = vld [vmem:[%s3791_s1 + $0x18] ss:$0 sm:$0xff] }
  0xd6   : > { %v840_v8 = vpack.c.bf16 %v836_v3, %v835_v39  ;;  %v1011_v44 = vadd.f32 %v995_v49, %v929_v61  ;;  %v1068_v31 = vrot.slane %v1029_v14, 2  ;;  %v1094_v36 = vmul.f32 %v2458_v4, %v3101_v55 }
  0xd7   : > { %v1066_v62 = vsel %vm452_vm1, %v1064_v48, %v1065_v20  ;;  %v1095_v17 = vmul.f32 %v2458_v4, %v3397_v30  ;;  %v1118_v50 = vmul.f32 %v2459_v34, %v3101_v55  ;;  %v1119_v53 = vmul.f32 %v2459_v34, %v3112_v21 }
  0xd8   : > { %2253 = vmatmul.msk.bf16.gmra.mxu3 %vm861_vm2, %v840_v8  ;;  %v1069_v56 = vsel %vm452_vm1, %v1067_v33, %v1068_v31  ;;  %v1084_v57 = vadd.f32 %v1066_v62, %v1010_v1  ;;  %v1120_v42 = vmul.f32 %v2459_v34, %v3397_v30  ;;  %v1121_v43 = vmul.f32 %v2459_v34, %v3401_v47 }
  0xd9   : > { %v1085_v40 = vadd.f32 %v1069_v56, %v1011_v44  ;;  %v1156_v16 = vrot.slane %v1118_v50, 1  ;;  %v1157_v7 = vrot.slane %v1119_v53, 1  ;;  %v1192_v58 = vmul.f32 %v2460_v23, %v3101_v55  ;;  %v2464_v56 = vld [vmem:[%s2582_s26] sm:$0xff] }
  0xda   : > { %v1102_v13 = vadd.f32 %v1094_v36, %v1084_v57  ;;  %v1159_v25 = vrot.slane %v1120_v42, 1  ;;  %v1160_v59 = vrot.slane %v1121_v43, 1  ;;  %v1193_v2 = vmul.f32 %v2460_v23, %v3112_v21  ;;  %v3534_v57 = vld [vmem:[%s3791_s1 + $0x20] ss:$0 sm:$0xff] }
  0xdb   : > { %v1103_v63 = vadd.f32 %v1095_v17, %v1085_v40  ;;  %v1158_v11 = vsel %vm377_vm0, %v1156_v16, %v1157_v7  ;;  %v1194_v61 = vmul.f32 %v2460_v23, %v3397_v30  ;;  %v1195_v12 = vmul.f32 %v2460_v23, %v3401_v47  ;;  %v3543_v16 = vld [vmem:[%s3791_s1 + $0x21] ss:$0 sm:$0xff] }
  0xdc   : > { %v1161_v37 = vsel %vm377_vm0, %v1159_v25, %v1160_v59  ;;  %v1176_v28 = vadd.f32 %v1158_v11, %v1102_v13  ;;  %v1230_v9 = vrot.slane %v1192_v58, 2  ;;  %v1231_v51 = vrot.slane %v1193_v2, 2 }
  0xdd   : > { %v1177_v0 = vadd.f32 %v1161_v37, %v1103_v63  ;;  %v1233_v26 = vrot.slane %v1194_v61, 2  ;;  %v1234_v55 = vrot.slane %v1195_v12, 2  ;;  %v1260_v21 = vmul.f32 %v2461_v54, %v3397_v30  ;;  %v3556_v61 = vld [vmem:[%s3791_s1 + $0x22] ss:$0 sm:$0xff]  ;;  %v2468_v37 = vld [vmem:[%s3792_s2 + $0x1] ss:$0 sm:$0xff] }
  0xde   : > { %v1232_v19 = vsel %vm452_vm1, %v1230_v9, %v1231_v51  ;;  %v1261_v24 = vmul.f32 %v2461_v54, %v3420_v35  ;;  %v1284_v18 = vmul.f32 %v2462_v45, %v3397_v30  ;;  %v1285_v39 = vmul.f32 %v2462_v45, %v3401_v47 }
  0xdf   : > { %v1235_v52 = vsel %vm452_vm1, %v1233_v26, %v1234_v55  ;;  %v1250_v6 = vadd.f32 %v1232_v19, %v1176_v28  ;;  %v1286_v38 = vmul.f32 %v2462_v45, %v3420_v35  ;;  %v1287_v27 = vmul.f32 %v2462_v45, %v3430_v5 }
  0xe0   : > { %v1251_v29 = vadd.f32 %v1235_v52, %v1177_v0  ;;  %v1322_v60 = vrot.slane %v1284_v18, 1  ;;  %v1323_v3 = vrot.slane %v1285_v39, 1  ;;  %v1358_v14 = vmul.f32 %v2463_v46, %v3397_v30 }
  0xe1   : > { %v1268_v48 = vadd.f32 %v1260_v21, %v1250_v6  ;;  %v1325_v49 = vrot.slane %v1286_v38, 1  ;;  %v1326_v1 = vrot.slane %v1287_v27, 1  ;;  %v1359_v20 = vmul.f32 %v2463_v46, %v3401_v47  ;;  %v3574_v27 = vld [vmem:[%s3791_s1 + $0x23] ss:$0 sm:$0xff] }
  0xe2   : > { %v1269_v33 = vadd.f32 %v1261_v24, %v1251_v29  ;;  %v1324_v8 = vsel %vm377_vm0, %v1322_v60, %v1323_v3  ;;  %v1360_v44 = vmul.f32 %v2463_v46, %v3420_v35  ;;  %v1361_v31 = vmul.f32 %v2463_v46, %v3430_v5  ;;  %v3583_v3 = vld [vmem:[%s3791_s1 + $0x24] ss:$0 sm:$0xff] }
  0xe3   : > { %v1327_v4 = vsel %vm377_vm0, %v1325_v49, %v1326_v1  ;;  %v1342_v36 = vadd.f32 %v1324_v8, %v1268_v48  ;;  %v1396_v62 = vrot.slane %v1358_v14, 2  ;;  %v1397_v17 = vrot.slane %v1359_v20, 2 }
  0xe4   : > { %v1343_v34 = vadd.f32 %v1327_v4, %v1269_v33  ;;  %v1399_v50 = vrot.slane %v1360_v44, 2  ;;  %v1400_v53 = vrot.slane %v1361_v31, 2  ;;  %v1517_v42 = vmul.f32 %v3534_v57, %v2464_v56  ;;  %v3598_v44 = vld [vmem:[%s3791_s1 + $0x25] ss:$0 sm:$0xff] }
  0xe5   : > { %v1398_v43 = vsel %vm452_vm1, %v1396_v62, %v1397_v17  ;;  %v1518_v40 = vmul.f32 %v3534_v57, %v3163_v22  ;;  %v1535_v7 = vmul.f32 %v3543_v16, %v2464_v56  ;;  %v1536_v23 = vmul.f32 %v3543_v16, %v3158_v10 }
  0xe6   : > { %v1401_v58 = vsel %vm452_vm1, %v1399_v50, %v1400_v53  ;;  %v1416_v13 = vadd.f32 %v1398_v43, %v1342_v36  ;;  %v1537_v25 = vmul.f32 %v3543_v16, %v3163_v22  ;;  %v1538_v59 = vmul.f32 %v3543_v16, %v3170_v15 }
  0xe7   : > { %v1417_v2 = vadd.f32 %v1401_v58, %v1343_v34  ;;  %v1567_v63 = vrot.slane %v1535_v7, 1  ;;  %v1568_v11 = vrot.slane %v1536_v23, 1  ;;  %v1609_v12 = vmul.f32 %v3556_v61, %v2464_v56 }
  0xe8   : > { %v1429_v28 = vadd.f32 %v2468_v37, %v1416_v13  ;;  %v1570_v9 = vrot.slane %v1537_v25, 1  ;;  %v1571_v51 = vrot.slane %v1538_v59, 1  ;;  %v1610_v0 = vmul.f32 %v3556_v61, %v3158_v10 }
  0xe9   : > { %v1430_v26 = vadd.f32 %v2468_v37, %v1417_v2  ;;  %v1569_v55 = vsel %vm377_vm0, %v1567_v63, %v1568_v11  ;;  %v1611_v54 = vmul.f32 %v3556_v61, %v3163_v22  ;;  %v1612_v21 = vmul.f32 %v3556_v61, %v3170_v15  ;;  %v2473_v2 = vld [vmem:[%s2582_s26 + $0x30] sm:$0xff]  ;;  %v3623_v11 = vld [vmem:[%s3791_s1 + $0x27] ss:$0 sm:$0xff] }
  0xea   : > { %v1572_v19 = vsel %vm377_vm0, %v1570_v9, %v1571_v51  ;;  %v1599_v24 = vadd.f32 %v1569_v55, %v1517_v42  ;;  %v1641_v45 = vrot.slane %v1609_v12, 2  ;;  %v1642_v18 = vrot.slane %v1610_v0, 2 }
  0xeb   : > { %v1434_v39 = vpack.c.bf16 %v1430_v26, %v1429_v28  ;;  %v1600_v52 = vadd.f32 %v1572_v19, %v1518_v40  ;;  %v1644_v6 = vrot.slane %v1611_v54, 2  ;;  %v1645_v38 = vrot.slane %v1612_v21, 2  ;;  %v2475_v26 = vld [vmem:[%s2582_s26 + $0x38] sm:$0x3]  ;;  %v3636_v21 = vld [vmem:[%s3791_s1 + $0x28] ss:$0 sm:$0xff] }
  0xec   : > { %v1643_v10 = vsel %vm452_vm1, %v1641_v45, %v1642_v18  ;;  %v1683_v29 = vmul.f32 %v3574_v27, %v3163_v22  ;;  %v1684_v60 = vmul.f32 %v3574_v27, %v3196_v32  ;;  %v1701_v46 = vmul.f32 %v3583_v3, %v3163_v22 }
  0xed   : > { %2280 = vmatmul.msk.bf16.gmra.mxu1 %vm861_vm2, %v1434_v39  ;;  %v1646_v14 = vsel %vm452_vm1, %v1644_v6, %v1645_v38  ;;  %v1673_v48 = vadd.f32 %v1643_v10, %v1599_v24  ;;  %v1702_v49 = vmul.f32 %v3583_v3, %v3170_v15  ;;  %v1703_v1 = vmul.f32 %v3583_v3, %v3196_v32 }
  0xee   : > { %v1674_v20 = vadd.f32 %v1646_v14, %v1600_v52  ;;  %v1704_v33 = vmul.f32 %v3583_v3, %v3211_v41  ;;  %v1733_v8 = vrot.slane %v1701_v46, 1  ;;  %v1775_v31 = vmul.f32 %v3598_v44, %v3163_v22  ;;  %v3612_v22 = vld [vmem:[%s3791_s1 + $0x26] ss:$0 sm:$0xff] }
  0xef   : > { %v1691_v4 = vadd.f32 %v1683_v29, %v1673_v48  ;;  %v1734_v36 = vrot.slane %v1702_v49, 1  ;;  %v1736_v62 = vrot.slane %v1703_v1, 1  ;;  %v1776_v17 = vmul.f32 %v3598_v44, %v3170_v15  ;;  %v2477_v14 = vld [vmem:[%s2582_s26 + $0x60] sm:$0xff] }
  0xf0   : > { %v1692_v34 = vadd.f32 %v1684_v60, %v1674_v20  ;;  %v1737_v50 = vrot.slane %v1704_v33, 1  ;;  %v1777_v53 = vmul.f32 %v3598_v44, %v3196_v32  ;;  %v1778_v56 = vmul.f32 %v3598_v44, %v3211_v41 }
  0xf1   : > { %v1735_v42 = vsel %vm377_vm0, %v1733_v8, %v1734_v36  ;;  %v1807_v43 = vrot.slane %v1775_v31, 2  ;;  %v1808_v40 = vrot.slane %v1776_v17, 2  ;;  %v1849_v15 = vmul.f32 %v3612_v22, %v3196_v32  ;;  %v2478_v8 = vld [vmem:[%s2582_s26 + $0x70] sm:$0xff]  ;;  %v2479_v17 = vld [vmem:[%s2582_s26 + $0x68] sm:$0x3] }
  0xf2   : > { %v1738_v7 = vsel %vm377_vm0, %v1736_v62, %v1737_v50  ;;  %v1765_v23 = vadd.f32 %v1735_v42, %v1691_v4  ;;  %v1810_v58 = vrot.slane %v1777_v53, 2  ;;  %v1811_v13 = vrot.slane %v1778_v56, 2  ;;  %v2480_v56 = vld [vmem:[%s2582_s26 + $0x78] sm:$0x3] }
  0xf3   : > { %v1766_v25 = vadd.f32 %v1738_v7, %v1692_v34  ;;  %v1809_v59 = vsel %vm452_vm1, %v1807_v43, %v1808_v40  ;;  %v1850_v63 = vmul.f32 %v2473_v2, %v3612_v22  ;;  %v1867_v12 = vmul.f32 %v3623_v11, %v3196_v32 }
  0xf4   : > { %v1812_v37 = vsel %vm452_vm1, %v1810_v58, %v1811_v13  ;;  %v1839_v28 = vadd.f32 %v1809_v59, %v1765_v23  ;;  %v1868_v9 = vmul.f32 %v3623_v11, %v3211_v41  ;;  %v1869_v51 = vmul.f32 %v3623_v11, %v2473_v2 }
  0xf5   : > { %v1840_v0 = vadd.f32 %v1812_v37, %v1766_v25  ;;  %v1870_v55 = vmul.f32 %v2475_v26, %v3623_v11  ;;  %v1899_v54 = vrot.slane %v1867_v12, 1  ;;  %v1941_v19 = vmul.f32 %v3636_v21, %v3196_v32 }
  0xf6   : > { %v1857_v24 = vadd.f32 %v1849_v15, %v1839_v28  ;;  %v1900_v45 = vrot.slane %v1868_v9, 1  ;;  %v1902_v18 = vrot.slane %v1869_v51, 1  ;;  %v1942_v39 = vmul.f32 %v3636_v21, %v3211_v41 }
  0xf7   : > { %v1858_v52 = vadd.f32 %v1850_v63, %v1840_v0  ;;  %v1903_v6 = vrot.slane %v1870_v55, 1  ;;  %v1943_v38 = vmul.f32 %v3636_v21, %v2473_v2  ;;  %v1944_v10 = vmul.f32 %v3636_v21, %v2475_v26 }
  0xf8   : > { %v1901_v29 = vsel %vm377_vm0, %v1899_v54, %v1900_v45  ;;  %v1973_v60 = vrot.slane %v1941_v19, 2  ;;  %v1974_v46 = vrot.slane %v1942_v39, 2  ;;  %v1523_v32 = vmul.f32 %v2477_v14, %v3534_v57 }
  0xf9   : > { %v1904_v48 = vsel %vm377_vm0, %v1902_v18, %v1903_v6  ;;  %v1931_v49 = vadd.f32 %v1901_v29, %v1857_v24  ;;  %v1976_v41 = vrot.slane %v1943_v38, 2  ;;  %v1977_v1 = vrot.slane %v1944_v10, 2  ;;  %v1483_v10 = vpop.f32.mrf.mxu1 }
  0xfa   : > { %v1932_v20 = vadd.f32 %v1904_v48, %v1858_v52  ;;  %v1975_v33 = vsel %vm452_vm1, %v1973_v60, %v1974_v46  ;;  %v1524_v31 = vmul.f32 %v2478_v8, %v3534_v57  ;;  %v1547_v4 = vmul.f32 %v2477_v14, %v3543_v16  ;;  %v3662_v57 = vld [vmem:[%s3792_s2 + $0x2] ss:$0 sm:$0xff]  ;;  %v2078_v48 = vpop.f32.mrf.mxu2 }
  0xfb   : > { %v1978_v36 = vsel %vm452_vm1, %v1976_v41, %v1977_v1  ;;  %v2005_v62 = vadd.f32 %v1975_v33, %v1931_v49  ;;  %v1548_v34 = vmul.f32 %v2479_v17, %v3543_v16  ;;  %v1549_v50 = vmul.f32 %v2478_v8, %v3543_v16 }
  0xfc   : > { %v2006_v53 = vadd.f32 %v1978_v36, %v1932_v20  ;;  %v1550_v42 = vmul.f32 %v2480_v56, %v3543_v16  ;;  %v1585_v43 = vrot.slane %v1547_v4, 1  ;;  %v1621_v40 = vmul.f32 %v2477_v14, %v3556_v61 }
  0xfd   : > { %v2018_v15 = vadd.f32 %v3662_v57, %v2005_v62  ;;  %v1586_v7 = vrot.slane %v1548_v34, 1  ;;  %v1588_v23 = vrot.slane %v1549_v50, 1  ;;  %v1622_v58 = vmul.f32 %v2479_v17, %v3556_v61 }
  0xfe   : > { %v2019_v13 = vadd.f32 %v3662_v57, %v2006_v53  ;;  %v1589_v25 = vrot.slane %v1550_v42, 1  ;;  %v1623_v59 = vmul.f32 %v2478_v8, %v3556_v61  ;;  %v1624_v16 = vmul.f32 %v2480_v56, %v3556_v61 }
  0xff   : > { %v1587_v2 = vsel %vm377_vm0, %v1585_v43, %v1586_v7  ;;  %v1659_v63 = vrot.slane %v1621_v40, 2  ;;  %v1660_v12 = vrot.slane %v1622_v58, 2  ;;  %v1689_v37 = vmul.f32 %v2478_v8, %v3574_v27 }
 0x100   : > { %v2026_v28 = vpack.c.bf16 %v2019_v13, %v2018_v15  ;;  %v1590_v9 = vsel %vm377_vm0, %v1588_v23, %v1589_v25  ;;  %v1605_v51 = vadd.f32 %v1587_v2, %v1523_v32  ;;  %v1662_v0 = vrot.slane %v1623_v59, 2  ;;  %v888_v32 = vpop.f32.mrf.mxu3  ;;  %v3717_v2 = vld [vmem:[%s3794_s4 + $0x1] ss:$0 sm:$0xff] }
 0x101   : > { %v1606_v26 = vadd.f32 %v1590_v9, %v1524_v31  ;;  %v1661_v55 = vsel %vm452_vm1, %v1659_v63, %v1660_v12  ;;  %v1663_v54 = vrot.slane %v1624_v16, 2  ;;  %v1690_v19 = vmul.f32 %v3574_v27, %v3397_v30  ;;  %v883_v27 = vpop.f32.mrf.mxu0 }
 0x102   : > { %2304 = vmatmul.msk.bf16.vlgmr.msra.gmra.mxu0 %vm861_vm2, %v2026_v28  ;;  %v1679_v61 = vadd.f32 %v1661_v55, %v1605_v51  ;;  %v1713_v24 = vmul.f32 %v2478_v8, %v3583_v3  ;;  %v1714_v45 = vmul.f32 %v2480_v56, %v3583_v3  ;;  %v1715_v18 = vmul.f32 %v3583_v3, %v3397_v30 }
 0x103   : > { %v1664_v39 = vsel %vm452_vm1, %v1662_v0, %v1663_v54  ;;  %v1716_v52 = vmul.f32 %v3583_v3, %v3401_v47  ;;  %v1787_v6 = vmul.f32 %v2478_v8, %v3598_v44  ;;  %v1788_v38 = vmul.f32 %v2480_v56, %v3598_v44 }
 0x104   : > { %v1680_v29 = vadd.f32 %v1664_v39, %v1606_v26  ;;  %v1697_v60 = vadd.f32 %v1689_v37, %v1679_v61  ;;  %v1751_v46 = vrot.slane %v1713_v24, 1  ;;  %v1752_v14 = vrot.slane %v1714_v45, 1  ;;  %v3724_v37 = vld [vmem:[%s3794_s4 + $0x2] ss:$0 sm:$0xff]  ;;  %v1485_v26 = vpop.f32.mrf.mxu1  ;;  %v2080_v24 = vpop.f32.mrf.mxu2 }
 0x105   : > { %v1754_v49 = vrot.slane %v1715_v18, 1  ;;  %v1755_v41 = vrot.slane %v1716_v52, 1  ;;  %v1789_v1 = vmul.f32 %v3598_v44, %v3397_v30  ;;  %v1790_v3 = vmul.f32 %v3598_v44, %v3401_v47 }
 0x106   : > { %v1698_v20 = vadd.f32 %v1690_v19, %v1680_v29  ;;  %v1753_v33 = vsel %vm377_vm0, %v1751_v46, %v1752_v14  ;;  %v1825_v8 = vrot.slane %v1787_v6, 2  ;;  %v1826_v31 = vrot.slane %v1788_v38, 2 }
 0x107   : > { %v1756_v4 = vsel %vm377_vm0, %v1754_v49, %v1755_v41  ;;  %v1771_v36 = vadd.f32 %v1753_v33, %v1697_v60  ;;  %v1828_v62 = vrot.slane %v1789_v1, 2  ;;  %v1829_v17 = vrot.slane %v1790_v3, 2 }
 0x108   : > { %v1772_v34 = vadd.f32 %v1756_v4, %v1698_v20  ;;  %v1827_v50 = vsel %vm452_vm1, %v1825_v8, %v1826_v31  ;;  %v1855_v53 = vmul.f32 %v3612_v22, %v3397_v30  ;;  %v1856_v56 = vmul.f32 %v3612_v22, %v3420_v35  ;;  %v3710_v22 = vld [vmem:[%s3794_s4] ss:$0 sm:$0xff]  ;;  %v890_v61 = vpop.f32.mrf.mxu3 }
 0x109   : > { %v1830_v44 = vsel %vm452_vm1, %v1828_v62, %v1829_v17  ;;  %v1845_v42 = vadd.f32 %v1827_v50, %v1771_v36  ;;  %v1879_v43 = vmul.f32 %v3623_v11, %v3397_v30  ;;  %v1880_v40 = vmul.f32 %v3623_v11, %v3401_v47  ;;  %v885_v0 = vpop.f32.mrf.mxu0 }
 0x10a   : > { %v1846_v15 = vadd.f32 %v1830_v44, %v1772_v34  ;;  %v1881_v7 = vmul.f32 %v3623_v11, %v3420_v35  ;;  %v1882_v23 = vmul.f32 %v3623_v11, %v3430_v5  ;;  %v1953_v58 = vmul.f32 %v3636_v21, %v3397_v30 }
 0x10b   : > { %v1863_v13 = vadd.f32 %v1855_v53, %v1845_v42  ;;  %v1917_v25 = vrot.slane %v1879_v43, 1  ;;  %v1918_v59 = vrot.slane %v1880_v40, 1  ;;  %v1954_v16 = vmul.f32 %v3636_v21, %v3401_v47 }
 0x10c   : > { %v1864_v11 = vadd.f32 %v1856_v56, %v1846_v15  ;;  %v1920_v63 = vrot.slane %v1881_v7, 1  ;;  %v1921_v30 = vrot.slane %v1882_v23, 1  ;;  %v1955_v12 = vmul.f32 %v3636_v21, %v3420_v35 }
 0x10d   : > { %v1919_v28 = vsel %vm377_vm0, %v1917_v25, %v1918_v59  ;;  %v1956_v47 = vmul.f32 %v3636_v21, %v3430_v5  ;;  %v1991_v9 = vrot.slane %v1953_v58, 2  ;;  %v1992_v51 = vrot.slane %v1954_v16, 2 }
 0x10e   : > { %v1922_v55 = vsel %vm377_vm0, %v1920_v63, %v1921_v30  ;;  %v1937_v54 = vadd.f32 %v1919_v28, %v1863_v13  ;;  %v1994_v19 = vrot.slane %v1955_v12, 2  ;;  %v884_v35 = vadd.f32 %v3710_v22, %v883_v27 }
 0x10f   : > { %v1938_v45 = vadd.f32 %v1922_v55, %v1864_v11  ;;  %v1993_v18 = vsel %vm452_vm1, %v1991_v9, %v1992_v51  ;;  %v1995_v39 = vrot.slane %v1956_v47, 2  ;;  %v1484_v52 = vadd.f32 %v3717_v2, %v1483_v10 }
 0x110   : > { %v2011_v5 = vadd.f32 %v1993_v18, %v1937_v54  ;;  %v889_v21 = vadd.f32 %v3710_v22, %v888_v32  ;;  %v2079_v6 = vadd.f32 %v3724_v37, %v2078_v48  ;;  %v886_v38 = vadd.f32 %v3710_v22, %v885_v0  ;;  %v893_v33 = vpop.f32.mrf.mxu3 }
 0x111   : > { %v1996_v29 = vsel %vm452_vm1, %v1994_v19, %v1995_v39  ;;  %v1486_v27 = vadd.f32 %v3717_v2, %v1485_v26  ;;  %v891_v10 = vadd.f32 %v3710_v22, %v890_v61  ;;  %v2081_v60 = vadd.f32 %v3724_v37, %v2080_v24 }
 0x112   : > { %v2012_v46 = vadd.f32 %v1996_v29, %v1938_v45  ;;  %v2024_v14 = vadd.f32 %v3662_v57, %v2011_v5  ;;  %v2322_v32 = vpack.c.bf16 %v886_v38, %v884_v35  ;;  %v894_v4 = vadd.f32 %v3710_v22, %v893_v33 }
 0x113   : > { %v2347_v48 = vpack.c.bf16 %v1486_v27, %v1484_v52  ;;  %v2327_v49 = vpack.c.bf16 %v891_v10, %v889_v21  ;;  %v2367_v41 = vpack.c.bf16 %v2081_v60, %v2079_v6 }
 0x114   : > { %v2025_v1 = vadd.f32 %v3662_v57, %v2012_v46  ;;  %2323 = vst [vmem:[%s3741_s25] sm:$0xff] %v2322_v32  }
 0x115   : > { %2382 = vst [vmem:[%s3750_s8 + $0x8] sm:$0xff] %v2347_v48   ;;  %v1478_v20 = vpop.f32.mrf.mxu0 }
 0x116   : > { %v2029_v3 = vpack.c.bf16 %v2025_v1, %v2024_v14  ;;  %2379 = vst [vmem:[%s3741_s25 + $0x8] sm:$0xff] %v2327_v49   ;;  %v1479_v31 = vadd.f32 %v3717_v2, %v1478_v20 }
 0x117   : > { %2385 = vst [vmem:[%s3757_s11 + $0x8] sm:$0xff] %v2367_v41  }
 0x118   : > { %2307 = vmatmul.msk.bf16.gmra.mxu2 %vm861_vm2, %v2029_v3  ;;  %v895_v57 = vpop.f32.mrf.mxu3 }
 0x119   : > { %v896_v62 = vadd.f32 %v3710_v22, %v895_v57 }
 0x11b   : > { %v2332_v50 = vpack.c.bf16 %v896_v62, %v894_v4 }
 0x11d   : > { %v1480_v8 = vpop.f32.mrf.mxu0  ;;  %2380 = vst [vmem:[%s3741_s25 + $0x10] sm:$0xff] %v2332_v50  }
 0x11e   : > { %v1481_v36 = vadd.f32 %v3717_v2, %v1480_v8 }
 0x120   : > { %v2342_v34 = vpack.c.bf16 %v1481_v36, %v1479_v31 }
 0x122   : > { %2343 = vst [vmem:[%s3750_s8] sm:$0xff] %v2342_v34  }
 0x12a   : > { %v1488_v17 = vpop.f32.mrf.mxu1 }
 0x12b   : > { %v1489_v56 = vadd.f32 %v3717_v2, %v1488_v17 }
 0x132   : > { %v1490_v53 = vpop.f32.mrf.mxu1 }
 0x133   : > { %v1491_v44 = vadd.f32 %v3717_v2, %v1490_v53 }
 0x135   : > { %v2352_v42 = vpack.c.bf16 %v1491_v44, %v1489_v56 }
 0x137   : > { %2383 = vst [vmem:[%s3750_s8 + $0x10] sm:$0xff] %v2352_v42  }
 0x146   : > { %v2083_v43 = vpop.f32.mrf.mxu2 }
 0x147   : > { %v2084_v15 = vadd.f32 %v3724_v37, %v2083_v43 }
 0x14e   : > { %v2085_v40 = vpop.f32.mrf.mxu2 }
 0x14f   : > { %v2086_v7 = vadd.f32 %v3724_v37, %v2085_v40 }
 0x151   : > { %v2372_v23 = vpack.c.bf16 %v2086_v7, %v2084_v15 }
 0x153   : > { %2386 = vst [vmem:[%s3757_s11 + $0x10] sm:$0xff] %v2372_v23  }
 0x15b   : > { %v898_v13 = vpop.f32.mrf.mxu3 }
 0x15c   : > { %v899_v11 = vadd.f32 %v3710_v22, %v898_v13 }
 0x163   : > { %v900_v59 = vpop.f32.mrf.mxu3 }
 0x164   : > { %v901_v30 = vadd.f32 %v3710_v22, %v900_v59 }
 0x166   : > { %v2337_v47 = vpack.c.bf16 %v901_v30, %v899_v11 }
 0x168   : > { %2381 = vst [vmem:[%s3741_s25 + $0x18] sm:$0xff] %v2337_v47  }
 0x16a   : > { %v1493_v58 = vpop.f32.mrf.mxu1 }
 0x16b   : > { %v1494_v16 = vadd.f32 %v3717_v2, %v1493_v58 }
 0x172   : > { %v1495_v25 = vpop.f32.mrf.mxu1 }
 0x173   : > { %v1496_v63 = vadd.f32 %v3717_v2, %v1495_v25 }
 0x175   : > { %v2357_v28 = vpack.c.bf16 %v1496_v63, %v1494_v16 }
 0x177   : > { %2384 = vst [vmem:[%s3750_s8 + $0x18] sm:$0xff] %v2357_v28  }
 0x17f   : > { %v2073_v12 = vpop.f32.mrf.mxu0 }
 0x180   : > { %v2074_v51 = vadd.f32 %v3724_v37, %v2073_v12 }
 0x187   : > { %v2075_v9 = vpop.f32.mrf.mxu0 }
 0x188   : > { %v2076_v0 = vadd.f32 %v3724_v37, %v2075_v9 }
 0x18a   : > { %v2362_v26 = vpack.c.bf16 %v2076_v0, %v2074_v51 }
 0x18c   : > { %2363 = vst [vmem:[%s3757_s11] sm:$0xff] %v2362_v26  }
 0x19b   : > { %v2088_v55 = vpop.f32.mrf.mxu2 }
 0x19c   : > { %v2089_v19 = vadd.f32 %v3724_v37, %v2088_v55 }
 0x1a3   : > { %v2090_v54 = vpop.f32.mrf.mxu2 }
 0x1a4   : > { %v2091_v2 = vadd.f32 %v3724_v37, %v2090_v54 }
 0x1a6   : > { %v2377_v22 = vpack.c.bf16 %v2091_v2, %v2089_v19 }
 0x1a8   : > { %2387 = vst [vmem:[%s3757_s11 + $0x18] sm:$0xff] %v2377_v22  }
 0x1a9 PF: > { %s18_s24 = sadd.s32 1, %s2488_s24  }
 0x1aa   : > { %p15_p4 = scmp.ge.s32.totalorder %s18_s24, 4  }
 0x1ac   :  { %17 = sbr.rel (!%p15_p4) target bundleno = 1 (0x1), region = 102 }

</bundles_post_ra>
